<compile_context>
chip_gen: v7x
topology: tpu7x:2x2x1
jax: 0.10.0
libtpu: 0.0.40
codegen_flags: <defaults>
</compile_context>

<pallas_src>
import functools
import numpy as np

import jax
import jax.numpy as jnp
from jax.experimental import pallas as pl
from jax.experimental.pallas import tpu as pltpu

# ----------------------------------------------------------------------------
# Model configuration (scaled-down Swin)
# ----------------------------------------------------------------------------
CFG = dict(
    img=32,          # input spatial size
    in_chans=3,
    patch=4,         # patch-embed conv 4x4 stride 4
    embed_dim=32,
    depths=(2, 2),
    heads=(2, 4),
    window=4,
    mlp_ratio=4,
    num_features=16,  # feat head output dim (stands in for 512)
)

_EPS = 1e-5                 # LayerNorm eps (timm Swin default)
ACT_DT = jnp.bfloat16       # inter-kernel activation dtype
WGT_DT = jnp.bfloat16       # matmul-weight storage dtype


# ----------------------------------------------------------------------------
# In-kernel helpers (traced inside Pallas kernels)
# ----------------------------------------------------------------------------
def _ln(x, g, b, eps=_EPS):
    x = x.astype(jnp.float32)
    mu = jnp.mean(x, axis=-1, keepdims=True)
    var = jnp.mean(jnp.square(x - mu), axis=-1, keepdims=True)
    return (x - mu) * jax.lax.rsqrt(var + eps) * g + b


def _gelu(x):
    # exact GELU (nn.GELU default, erf form)
    return 0.5 * x * (1.0 + jax.lax.erf(x * 0.7071067811865476))


def _bf16_dot(a, w):
    # bf16 MXU operands, f32 accumulation
    return jnp.dot(a.astype(jnp.bfloat16), w.astype(jnp.bfloat16),
                   preferred_element_type=jnp.float32)


# ----------------------------------------------------------------------------
# Pallas kernels
# ----------------------------------------------------------------------------
def _linear_ln_kernel(x_ref, w_ref, bias_ref, g_ref, b_ref, o_ref):
    # patch embed: matmul (+bias) -> LayerNorm
    y = _bf16_dot(x_ref[...], w_ref[...]) + bias_ref[...]
    o_ref[...] = _ln(y, g_ref[...], b_ref[...]).astype(o_ref.dtype)


def _ln_linear_kernel(x_ref, g_ref, b_ref, w_ref, bias_ref, o_ref):
    # LN1 + QKV projection (per-token, commutes with roll / window partition)
    z = _ln(x_ref[...], g_ref[...], b_ref[...])
    o_ref[...] = (_bf16_dot(z, w_ref[...]) + bias_ref[...]).astype(o_ref.dtype)


def _ln_linear_nobias_kernel(x_ref, g_ref, b_ref, w_ref, o_ref):
    # patch merging: LN + bias-free reduction linear (no zero-bias DMA)
    z = _ln(x_ref[...], g_ref[...], b_ref[...])
    o_ref[...] = _bf16_dot(z, w_ref[...]).astype(o_ref.dtype)


def _attn_body(qkv_ref, bias_ref, mask_ref, pw_ref, pb_ref, o_ref,
               *, num_heads, scale):
    # qkv: (nW, N, 3C) for all windows of one image; the 3C lanes are packed
    # [q(heads,Dh) | k(heads,Dh) | v(heads,Dh)]  (head-major within q/k/v).
    nW, N, three_c = qkv_ref.shape
    C = three_c // 3
    Dh = C // num_heads

    xw = qkv_ref[...].astype(jnp.float32)                  # (nW, N, 3C)

    def split_heads(base):
        # heads become a leading axis (stack = leading-dim concat), then get
        # merged into the batch dim -> one batched matmul over all nW*heads.
        parts = [xw[:, :, base + h * Dh: base + (h + 1) * Dh]
                 for h in range(num_heads)]
        return (jnp.stack(parts, axis=1)
                .reshape(nW * num_heads, N, Dh)
                .astype(jnp.bfloat16))

    q = split_heads(0)
    k = split_heads(C)
    v = split_heads(2 * C)

    # scores for all windows and heads in one batched MXU op
    s = jnp.einsum("bnd,bmd->bnm", q, k,
                   preferred_element_type=jnp.float32) * scale
    s = s.reshape(nW, num_heads, N, N) + bias_ref[...]     # rel-pos bias (h,N,N)
    if mask_ref is not None:
        s = s + mask_ref[...][:, None, :, :]               # shift mask (nW,N,N)
    s = s - jnp.max(s, axis=-1, keepdims=True)
    p = jnp.exp(s)
    p = p * pl.reciprocal(jnp.sum(p, axis=-1, keepdims=True), approx=True)
    p = p.reshape(nW * num_heads, N, N).astype(jnp.bfloat16)

    o = jnp.einsum("bnm,bmd->bnd", p, v,
                   preferred_element_type=jnp.float32)     # (nW*heads, N, Dh)
    o = o.reshape(nW, num_heads, N, Dh)
    # concat heads back along lanes -> single full-depth (K=C) proj matmul
    o = jnp.concatenate([o[:, h] for h in range(num_heads)], axis=-1)  # (nW,N,C)
    y = _bf16_dot(o.reshape(nW * N, C), pw_ref[...]) + pb_ref[...]
    o_ref[...] = y.reshape(nW, N, C).astype(o_ref.dtype)


def _attn_nomask_kernel(qkv_ref, bias_ref, pw_ref, pb_ref, o_ref,
                        *, num_heads, scale):
    _attn_body(qkv_ref, bias_ref, None, pw_ref, pb_ref, o_ref,
               num_heads=num_heads, scale=scale)


def _attn_mask_kernel(qkv_ref, bias_ref, mask_ref, pw_ref, pb_ref, o_ref,
                      *, num_heads, scale):
    _attn_body(qkv_ref, bias_ref, mask_ref, pw_ref, pb_ref, o_ref,
               num_heads=num_heads, scale=scale)


def _mlp_block_kernel(t_ref, y_ref, g_ref, b_ref,
                      w1_ref, b1_ref, w2_ref, b2_ref, o_ref):
    # residual1 + LN2 + fc1 + GELU + fc2 + residual2
    t1 = t_ref[...].astype(jnp.float32) + y_ref[...].astype(jnp.float32)
    z = _ln(t1, g_ref[...], b_ref[...])
    h = _gelu(_bf16_dot(z, w1_ref[...]) + b1_ref[...])
    out = t1 + _bf16_dot(h, w2_ref[...]) + b2_ref[...]
    o_ref[...] = out.astype(o_ref.dtype)


def _head_kernel(x_ref, g_ref, b_ref, w_ref, bias_ref, o_ref):
    # final LayerNorm + mean-pool over tokens + feat Linear, fused
    z = _ln(x_ref[...], g_ref[...], b_ref[...])       # (B, L, C)
    pooled = jnp.mean(z, axis=1)                      # (B, C)
    o_ref[...] = (_bf16_dot(pooled, w_ref[...]) + bias_ref[...]).astype(o_ref.dtype)


# ----------------------------------------------------------------------------
# Pallas wrappers
# ----------------------------------------------------------------------------
def _row_tile(M, target=128):
    """Largest 16-aligned divisor of M that is <= target while leaving >=2 grid
    steps (v7x has 2 TCs; the pipeline needs >=2 steps to overlap).  Falls back
    to the full array when M is too small to split.  16-aligned keeps bf16
    blocks sublane-tile friendly."""
    best = M
    upper = min(target, M // 2)
    for t in range(upper, 15, -1):
        if M % t == 0 and t % 16 == 0:
            best = t
            break
    assert M % best == 0, (M, best)   # no silently-dropped remainder rows
    return best


def _mosaic_params():
    # "parallel" lets v7x shard the grid across its 2 TensorCores (measured
    # neutral on single-TC v5e/v6e — there the lever is the fused-call
    # structure and lane-dense tiles, not the semantics flag).
    return pltpu.CompilerParams(dimension_semantics=("parallel",))


def pallas_linear_ln(x, w, bias, g, b):
    M, K = x.shape
    N = w.shape[1]
    tm = _row_tile(M)
    return pl.pallas_call(
        _linear_ln_kernel,
        out_shape=jax.ShapeDtypeStruct((M, N), ACT_DT),
        grid=(M // tm,),
        in_specs=[
            pl.BlockSpec((tm, K), lambda i: (i, 0)),
            pl.BlockSpec((K, N), lambda i: (0, 0)),
            pl.BlockSpec((1, N), lambda i: (0, 0)),
            pl.BlockSpec((1, N), lambda i: (0, 0)),
            pl.BlockSpec((1, N), lambda i: (0, 0)),
        ],
        out_specs=pl.BlockSpec((tm, N), lambda i: (i, 0)),
        compiler_params=_mosaic_params(),
    )(x, w, bias.reshape(1, N), g.reshape(1, N), b.reshape(1, N))


def pallas_ln_linear(x, g, b, w, bias=None):
    M, K = x.shape
    N = w.shape[1]
    tm = _row_tile(M)
    g2 = g.reshape(1, K)
    b2 = b.reshape(1, K)
    if bias is None:
        kernel = _ln_linear_nobias_kernel
        in_specs = [
            pl.BlockSpec((tm, K), lambda i: (i, 0)),
            pl.BlockSpec((1, K), lambda i: (0, 0)),
            pl.BlockSpec((1, K), lambda i: (0, 0)),
            pl.BlockSpec((K, N), lambda i: (0, 0)),
        ]
        args = (x, g2, b2, w)
    else:
        kernel = _ln_linear_kernel
        in_specs = [
            pl.BlockSpec((tm, K), lambda i: (i, 0)),
            pl.BlockSpec((1, K), lambda i: (0, 0)),
            pl.BlockSpec((1, K), lambda i: (0, 0)),
            pl.BlockSpec((K, N), lambda i: (0, 0)),
            pl.BlockSpec((1, N), lambda i: (0, 0)),
        ]
        args = (x, g2, b2, w, bias.reshape(1, N))
    return pl.pallas_call(
        kernel,
        out_shape=jax.ShapeDtypeStruct((M, N), ACT_DT),
        grid=(M // tm,),
        in_specs=in_specs,
        out_specs=pl.BlockSpec((tm, N), lambda i: (i, 0)),
        compiler_params=_mosaic_params(),
    )(*args)


def pallas_window_attention(qkv_win, rel_bias, mask, proj_w, proj_b,
                            *, num_heads, nW):
    # qkv_win: (B*nW, N, 3C); one grid step = all windows of one image.
    G, N, three_c = qkv_win.shape
    C = three_c // 3
    assert G % nW == 0
    B = G // nW
    scale = float(C // num_heads) ** -0.5
    pb2 = proj_b.reshape(1, C)

    if mask is None:
        kernel = functools.partial(_attn_nomask_kernel,
                                   num_heads=num_heads, scale=scale)
        in_specs = [
            pl.BlockSpec((nW, N, three_c), lambda bi: (bi, 0, 0)),
            pl.BlockSpec(rel_bias.shape, lambda bi: (0, 0, 0)),
            pl.BlockSpec(proj_w.shape, lambda bi: (0, 0)),
            pl.BlockSpec((1, C), lambda bi: (0, 0)),
        ]
        args = (qkv_win, rel_bias, proj_w, pb2)
    else:
        kernel = functools.partial(_attn_mask_kernel,
                                   num_heads=num_heads, scale=scale)
        in_specs = [
            pl.BlockSpec((nW, N, three_c), lambda bi: (bi, 0, 0)),
            pl.BlockSpec(rel_bias.shape, lambda bi: (0, 0, 0)),
            pl.BlockSpec(mask.shape, lambda bi: (0, 0, 0)),
            pl.BlockSpec(proj_w.shape, lambda bi: (0, 0)),
            pl.BlockSpec((1, C), lambda bi: (0, 0)),
        ]
        args = (qkv_win, rel_bias, mask, proj_w, pb2)

    return pl.pallas_call(
        kernel,
        out_shape=jax.ShapeDtypeStruct((G, N, C), ACT_DT),
        grid=(B,),
        in_specs=in_specs,
        out_specs=pl.BlockSpec((nW, N, C), lambda bi: (bi, 0, 0)),
        compiler_params=_mosaic_params(),
    )(*args)


def pallas_mlp_block(t, y, g, b, w1, b1, w2, b2):
    M, C = t.shape
    Hd = w1.shape[1]
    tm = _row_tile(M)
    return pl.pallas_call(
        _mlp_block_kernel,
        out_shape=jax.ShapeDtypeStruct((M, C), ACT_DT),
        grid=(M // tm,),
        in_specs=[
            pl.BlockSpec((tm, C), lambda i: (i, 0)),
            pl.BlockSpec((tm, C), lambda i: (i, 0)),
            pl.BlockSpec((1, C), lambda i: (0, 0)),
            pl.BlockSpec((1, C), lambda i: (0, 0)),
            pl.BlockSpec((C, Hd), lambda i: (0, 0)),
            pl.BlockSpec((1, Hd), lambda i: (0, 0)),
            pl.BlockSpec((Hd, C), lambda i: (0, 0)),
            pl.BlockSpec((1, C), lambda i: (0, 0)),
        ],
        out_specs=pl.BlockSpec((tm, C), lambda i: (i, 0)),
        compiler_params=_mosaic_params(),
    )(t, y, g.reshape(1, C), b.reshape(1, C),
      w1, b1.reshape(1, Hd), w2, b2.reshape(1, C))


def pallas_head(t, g, b, w, bias):
    B, L, C = t.shape
    F = w.shape[1]
    return pl.pallas_call(
        _head_kernel,
        out_shape=jax.ShapeDtypeStruct((B, F), jnp.float32),
        grid=(1,),
        in_specs=[
            pl.BlockSpec((B, L, C), lambda i: (0, 0, 0)),
            pl.BlockSpec((1, C), lambda i: (0, 0)),
            pl.BlockSpec((1, C), lambda i: (0, 0)),
            pl.BlockSpec((C, F), lambda i: (0, 0)),
            pl.BlockSpec((1, F), lambda i: (0, 0)),
        ],
        out_specs=pl.BlockSpec((B, F), lambda i: (0, 0)),
    )(t, g.reshape(1, C), b.reshape(1, C), w, bias.reshape(1, F))


# ----------------------------------------------------------------------------
# Pure-JAX glue (window partition, rolls, static index tables)
# ----------------------------------------------------------------------------
def window_partition(x, ws):
    B, H, W, C = x.shape
    x = x.reshape(B, H // ws, ws, W // ws, ws, C)
    return x.transpose(0, 1, 3, 2, 4, 5).reshape(-1, ws, ws, C)


def window_reverse(windows, ws, H, W, B):
    x = windows.reshape(B, H // ws, W // ws, ws, ws, -1)
    return x.transpose(0, 1, 3, 2, 4, 5).reshape(B, H, W, -1)


def rel_pos_index(ws):
    coords = np.stack(np.meshgrid(np.arange(ws), np.arange(ws), indexing="ij"))
    flat = coords.reshape(2, -1)
    rel = flat[:, :, None] - flat[:, None, :]
    rel = rel.transpose(1, 2, 0).astype(np.int64)
    rel[:, :, 0] += ws - 1
    rel[:, :, 1] += ws - 1
    rel[:, :, 0] *= 2 * ws - 1
    return rel.sum(-1)  # (N, N)


def shifted_window_mask(H, W, ws, shift):
    img = np.zeros((1, H, W, 1), np.float32)
    cnt = 0
    for hs in (slice(0, -ws), slice(-ws, -shift), slice(-shift, None)):
        for wsl in (slice(0, -ws), slice(-ws, -shift), slice(-shift, None)):
            img[:, hs, wsl, :] = cnt
            cnt += 1
    mw = img.reshape(1, H // ws, ws, W // ws, ws, 1)
    mw = mw.transpose(0, 1, 3, 2, 4, 5).reshape(-1, ws * ws)
    diff = mw[:, None, :] - mw[:, :, None]
    return np.where(diff != 0, -100.0, 0.0).astype(np.float32)  # (nW, N, N)


# ----------------------------------------------------------------------------
# Swin building blocks
# ----------------------------------------------------------------------------
def swin_block(t, B, H, W, blk, num_heads, ws, shift, rel_bias, attn_mask):
    L = H * W
    C = t.shape[-1]
    t2 = t.reshape(B * L, C)

    # fused LN1 + QKV projection (per-token; commutes with roll / partition)
    qkv = pallas_ln_linear(t2, blk["norm1_g"], blk["norm1_b"],
                           blk["qkv_w"], blk["qkv_b"])          # (B*L, 3C) bf16
    qkv = qkv.reshape(B, H, W, 3 * C)
    if shift > 0:
        qkv = jnp.roll(qkv, shift=(-shift, -shift), axis=(1, 2))
    nW = (H // ws) * (W // ws)
    # TODO(synk): fold this partition (and the reverse below) into the
    # attention kernel's index maps to drop the remaining XLA transpose passes.
    qkv_win = window_partition(qkv, ws).reshape(B * nW, ws * ws, 3 * C)

    # fused windowed multi-head attention + softmax + output projection
    aw = pallas_window_attention(qkv_win, rel_bias, attn_mask,
                                 blk["proj_w"], blk["proj_b"],
                                 num_heads=num_heads, nW=nW)    # (B*nW, N, C)
    y = window_reverse(aw.reshape(-1, ws, ws, C), ws, H, W, B)
    if shift > 0:
        y = jnp.roll(y, shift=(shift, shift), axis=(1, 2))

    # fused residual1 + LN2 + MLP + residual2
    out = pallas_mlp_block(t2, y.reshape(B * L, C),
                           blk["norm2_g"], blk["norm2_b"],
                           blk["fc1_w"], blk["fc1_b"],
                           blk["fc2_w"], blk["fc2_b"])
    return out.reshape(B, L, C)


def patch_merging(t, B, H, W, pm):
    C = t.shape[-1]
    # single reshape + transpose instead of four strided slices + concat;
    # channel order matches timm's [x0, x1, x2, x3] = (2*wpar + hpar) blocks.
    x = t.reshape(B, H // 2, 2, W // 2, 2, C)
    x = x.transpose(0, 1, 3, 4, 2, 5)                  # (B, H/2, W/2, wpar, hpar, C)
    x = x.reshape(B * (H // 2) * (W // 2), 4 * C)
    y = pallas_ln_linear(x, pm["norm_g"], pm["norm_b"], pm["red_w"], None)
    return y.reshape(B, (H // 2) * (W // 2), 2 * C)


# ----------------------------------------------------------------------------
# Parameters (deterministic synthetic init)
# ----------------------------------------------------------------------------
def init_params(key):
    cfg = CFG
    kit = iter(jax.random.split(key, 256))

    def dense(shape, scale=0.02, dtype=jnp.float32):
        return (jax.random.normal(next(kit), shape, jnp.float32) * scale).astype(dtype)

    params = {}
    embed_dim = cfg["embed_dim"]
    in_dim = cfg["in_chans"] * cfg["patch"] * cfg["patch"]
    params["patch_embed"] = dict(
        proj_w=dense((in_dim, embed_dim), dtype=WGT_DT),
        proj_b=jnp.zeros((embed_dim,), jnp.float32),
        norm_g=jnp.ones((embed_dim,), jnp.float32),
        norm_b=jnp.zeros((embed_dim,), jnp.float32),
    )

    stages = []
    dim = embed_dim
    H = cfg["img"] // cfg["patch"]
    for si, depth in enumerate(cfg["depths"]):
        ws = min(cfg["window"], H)
        heads = cfg["heads"][si]
        N = ws * ws
        rp_idx = rel_pos_index(ws).reshape(-1)        # static numpy
        can_shift = H > ws
        blocks = []
        for _ in range(depth):
            hidden = cfg["mlp_ratio"] * dim
            # Relative-position bias expanded once at init (no per-forward
            # gather/transpose).  With real timm weights the qkv_w columns
            # would also be permuted here (free) so the projection emits the
            # (3, heads, Dh)-major lane layout; the synthetic init below
            # already uses that interpretation.
            rpb_table = dense(((2 * ws - 1) ** 2, heads))
            rel_bias = rpb_table[rp_idx].reshape(N, N, heads).transpose(2, 0, 1)
            blocks.append(dict(
                norm1_g=jnp.ones((dim,), jnp.float32),
                norm1_b=jnp.zeros((dim,), jnp.float32),
                qkv_w=dense((dim, 3 * dim), dtype=WGT_DT),
                qkv_b=jnp.zeros((3 * dim,), jnp.float32),
                rel_bias=rel_bias,                    # (heads, N, N) f32
                proj_w=dense((dim, dim), dtype=WGT_DT),
                proj_b=jnp.zeros((dim,), jnp.float32),
                norm2_g=jnp.ones((dim,), jnp.float32),
                norm2_b=jnp.zeros((dim,), jnp.float32),
                fc1_w=dense((dim, hidden), dtype=WGT_DT),
                fc1_b=jnp.zeros((hidden,), jnp.float32),
                fc2_w=dense((hidden, dim), dtype=WGT_DT),
                fc2_b=jnp.zeros((dim,), jnp.float32),
            ))
        stage = dict(blocks=blocks)
        # shift mask precomputed once per stage (static config)
        stage["attn_mask"] = (jnp.asarray(shifted_window_mask(H, H, ws, ws // 2))
                              if can_shift else None)
        if si < len(cfg["depths"]) - 1:  # patch merging downsample
            stage["downsample"] = dict(
                norm_g=jnp.ones((4 * dim,), jnp.float32),
                norm_b=jnp.zeros((4 * dim,), jnp.float32),
                red_w=dense((4 * dim, 2 * dim), dtype=WGT_DT),
            )
            dim *= 2
            H //= 2
        stages.append(stage)
    params["stages"] = stages

    params["final_norm"] = dict(
        g=jnp.ones((dim,), jnp.float32),
        b=jnp.zeros((dim,), jnp.float32),
    )
    params["feat"] = dict(
        w=dense((dim, cfg["num_features"]), dtype=WGT_DT),
        b=jnp.zeros((cfg["num_features"],), jnp.float32),
    )
    return params


# ----------------------------------------------------------------------------
# Forward pass  (== model.forward_features(x) followed by feat Linear)
# ----------------------------------------------------------------------------
def swin_forward(params, x_nchw):
    cfg = CFG
    B, Cin, Himg, Wimg = x_nchw.shape
    p = cfg["patch"]
    H, W = Himg // p, Wimg // p

    # patch embed: 4x4 stride-4 conv as im2col + (matmul + LayerNorm) kernel
    xe = x_nchw.reshape(B, Cin, H, p, W, p).transpose(0, 2, 4, 1, 3, 5)
    xe = xe.reshape(B * H * W, Cin * p * p).astype(jnp.float32)
    pe = params["patch_embed"]
    t = pallas_linear_ln(xe, pe["proj_w"], pe["proj_b"],
                         pe["norm_g"], pe["norm_b"])
    C = cfg["embed_dim"]
    t = t.reshape(B, H * W, C)

    for si, stage in enumerate(params["stages"]):
        heads = cfg["heads"][si]
        ws = min(cfg["window"], H, W)
        can_shift = min(H, W) > ws
        for bi, blk in enumerate(stage["blocks"]):
            shift = (ws // 2) if (can_shift and bi % 2 == 1) else 0
            mask = stage["attn_mask"] if shift > 0 else None
            t = swin_block(t, B, H, W, blk, heads, ws, shift,
                           blk["rel_bias"], mask)
        if "downsample" in stage:
            t = patch_merging(t, B, H, W, stage["downsample"])
            H, W = H // 2, W // 2
            C = 2 * C

    # fused final LayerNorm + global average pool + feat Linear
    out = pallas_head(t, params["final_norm"]["g"], params["final_norm"]["b"],
                      params["feat"]["w"], params["feat"]["b"])
    return out                                              # (B, num_features)


# TODO(synk): full swin_base_patch4_window7_224 scale (224 input, embed 128,
# depths (2,2,18,2)) is architecturally identical but omitted for brevity; this
# reproduces the same forward semantics at reduced size. Dropout/DropPath are
# identity (inference semantics).

if __name__ == "__main__":
    key = jax.random.PRNGKey(0)
    pkey, xkey = jax.random.split(key)
    params = init_params(pkey)
    x = jax.random.normal(xkey, (2, CFG["in_chans"], CFG["img"], CFG["img"]),
                          jnp.float32)
    fwd = jax.jit(swin_forward)
    out = fwd(params, x)
    jax.block_until_ready(out)
    assert out.shape == (2, CFG["num_features"])
    print("KERNEL_OK")
</pallas_src>

<mosaic_0001>
module attributes {stable_mosaic.version = 11 : i64} {
  func.func @_linear_ln_kernel(%arg0: i32, %arg1: memref<64x48xf32, #tpu.memory_space<vmem>>, %arg2: memref<48x32xbf16, #tpu.memory_space<vmem>>, %arg3: memref<1x32xf32, #tpu.memory_space<vmem>>, %arg4: memref<1x32xf32, #tpu.memory_space<vmem>>, %arg5: memref<1x32xf32, #tpu.memory_space<vmem>>, %arg6: memref<64x32xbf16, #tpu.memory_space<vmem>>) attributes {dimension_semantics = [#tpu.dimension_semantics<parallel>], iteration_bounds = array<i64: 2>, scalar_prefetch = 0 : i64, scratch_operands = 0 : i64, tpu.core_type = #tpu.core_type<tc>, window_params = [{transform_indices = @transform_0, window_bounds = array<i64: 64, 48>}, {pipeline_mode = #tpu.pipeline_mode<synchronous>, transform_indices = @transform_1, window_bounds = array<i64: 48, 32>}, {pipeline_mode = #tpu.pipeline_mode<synchronous>, transform_indices = @transform_2, window_bounds = array<i64: 1, 32>}, {pipeline_mode = #tpu.pipeline_mode<synchronous>, transform_indices = @transform_3, window_bounds = array<i64: 1, 32>}, {pipeline_mode = #tpu.pipeline_mode<synchronous>, transform_indices = @transform_4, window_bounds = array<i64: 1, 32>}, {transform_indices = @transform_5, window_bounds = array<i64: 64, 32>}]} {
    %c0 = arith.constant 0 : index
    %c0_0 = arith.constant 0 : index
    %0 = vector.load %arg1[%c0, %c0_0] : memref<64x48xf32, #tpu.memory_space<vmem>>, vector<64x48xf32>
    %c0_1 = arith.constant 0 : index
    %c0_2 = arith.constant 0 : index
    %1 = vector.load %arg2[%c0_1, %c0_2] : memref<48x32xbf16, #tpu.memory_space<vmem>>, vector<48x32xbf16>
    %2 = arith.truncf %0 : vector<64x48xf32> to vector<64x48xbf16>
    %cst = arith.constant dense<0.000000e+00> : vector<64x32xf32>
    %3 = tpu.matmul %2, %1, %cst {dimension_numbers = #tpu.dot_dimension_numbers<[1], [0], [0], [1], [0, 0, 1, 1], [], []>} : vector<64x48xbf16>, vector<48x32xbf16>, vector<64x32xf32> -> vector<64x32xf32>
    %c0_3 = arith.constant 0 : index
    %c0_4 = arith.constant 0 : index
    %4 = vector.load %arg3[%c0_3, %c0_4] : memref<1x32xf32, #tpu.memory_space<vmem>>, vector<1x32xf32>
    %5 = vector.broadcast %4 : vector<1x32xf32> to vector<64x32xf32>
    %6 = arith.addf %3, %5 : vector<64x32xf32>
    %c0_5 = arith.constant 0 : index
    %c0_6 = arith.constant 0 : index
    %7 = vector.load %arg4[%c0_5, %c0_6] : memref<1x32xf32, #tpu.memory_space<vmem>>, vector<1x32xf32>
    %c0_7 = arith.constant 0 : index
    %c0_8 = arith.constant 0 : index
    %8 = vector.load %arg5[%c0_7, %c0_8] : memref<1x32xf32, #tpu.memory_space<vmem>>, vector<1x32xf32>
    %cst_9 = arith.constant dense<0.000000e+00> : vector<64xf32>
    %9 = vector.multi_reduction <add>, %6, %cst_9 [1] : vector<64x32xf32> to vector<64xf32>
    %10 = vector.shape_cast %9 : vector<64xf32> to vector<64x1xf32>
    %cst_10 = arith.constant 3.200000e+01 : f32
    %11 = vector.broadcast %cst_10 : f32 to vector<64x1xf32>
    %12 = arith.divf %10, %11 : vector<64x1xf32>
    %13 = vector.broadcast %12 : vector<64x1xf32> to vector<64x32xf32>
    %14 = arith.subf %6, %13 : vector<64x32xf32>
    %15 = arith.mulf %14, %14 : vector<64x32xf32>
    %cst_11 = arith.constant dense<0.000000e+00> : vector<64xf32>
    %16 = vector.multi_reduction <add>, %15, %cst_11 [1] : vector<64x32xf32> to vector<64xf32>
    %17 = vector.shape_cast %16 : vector<64xf32> to vector<64x1xf32>
    %cst_12 = arith.constant 3.200000e+01 : f32
    %18 = vector.broadcast %cst_12 : f32 to vector<64x1xf32>
    %19 = arith.divf %17, %18 : vector<64x1xf32>
    %20 = vector.broadcast %12 : vector<64x1xf32> to vector<64x32xf32>
    %21 = arith.subf %6, %20 : vector<64x32xf32>
    %cst_13 = arith.constant 9.99999974E-6 : f32
    %22 = vector.broadcast %cst_13 : f32 to vector<64x1xf32>
    %23 = arith.addf %19, %22 : vector<64x1xf32>
    %24 = math.rsqrt %23 : vector<64x1xf32>
    %25 = vector.broadcast %24 : vector<64x1xf32> to vector<64x32xf32>
    %26 = arith.mulf %21, %25 : vector<64x32xf32>
    %27 = vector.broadcast %7 : vector<1x32xf32> to vector<64x32xf32>
    %28 = arith.mulf %26, %27 : vector<64x32xf32>
    %29 = vector.broadcast %8 : vector<1x32xf32> to vector<64x32xf32>
    %30 = arith.addf %28, %29 : vector<64x32xf32>
    %31 = arith.truncf %30 : vector<64x32xf32> to vector<64x32xbf16>
    %c0_14 = arith.constant 0 : index
    %c0_15 = arith.constant 0 : index
    %32 = vector.load %arg6[%c0_14, %c0_15] : memref<64x32xbf16, #tpu.memory_space<vmem>>, vector<64x32xbf16>
    tpu.vector_store %arg6[%c0_14, %c0_15], %31 {strides = array<i32>} : memref<64x32xbf16, #tpu.memory_space<vmem>>, vector<64x32xbf16>,
    return
  }
  func.func @transform_0(%arg0: i32) -> (i32, i32) {
    %c0_i32 = arith.constant 0 : i32
    %c0_i32_0 = arith.constant 0 : i32
    return %arg0, %c0_i32 : i32, i32
  }
  func.func @transform_1(%arg0: i32) -> (i32, i32) {
    %c0_i32 = arith.constant 0 : i32
    %c0_i32_0 = arith.constant 0 : i32
    %c0_i32_1 = arith.constant 0 : i32
    return %c0_i32, %c0_i32_0 : i32, i32
  }
  func.func @transform_2(%arg0: i32) -> (i32, i32) {
    %c0_i32 = arith.constant 0 : i32
    %c0_i32_0 = arith.constant 0 : i32
    %c0_i32_1 = arith.constant 0 : i32
    return %c0_i32, %c0_i32_0 : i32, i32
  }
  func.func @transform_3(%arg0: i32) -> (i32, i32) {
    %c0_i32 = arith.constant 0 : i32
    %c0_i32_0 = arith.constant 0 : i32
    %c0_i32_1 = arith.constant 0 : i32
    return %c0_i32, %c0_i32_0 : i32, i32
  }
  func.func @transform_4(%arg0: i32) -> (i32, i32) {
    %c0_i32 = arith.constant 0 : i32
    %c0_i32_0 = arith.constant 0 : i32
    %c0_i32_1 = arith.constant 0 : i32
    return %c0_i32, %c0_i32_0 : i32, i32
  }
  func.func @transform_5(%arg0: i32) -> (i32, i32) {
    %c0_i32 = arith.constant 0 : i32
    %c0_i32_0 = arith.constant 0 : i32
    return %arg0, %c0_i32 : i32, i32
  }
}

module attributes {stable_mosaic.version = 11 : i64} {
  func.func @_ln_linear_kernel(%arg0: i32, %arg1: memref<64x32xbf16, #tpu.memory_space<vmem>>, %arg2: memref<1x32xf32, #tpu.memory_space<vmem>>, %arg3: memref<1x32xf32, #tpu.memory_space<vmem>>, %arg4: memref<32x96xbf16, #tpu.memory_space<vmem>>, %arg5: memref<1x96xf32, #tpu.memory_space<vmem>>, %arg6: memref<64x96xbf16, #tpu.memory_space<vmem>>) attributes {dimension_semantics = [#tpu.dimension_semantics<parallel>], iteration_bounds = array<i64: 2>, scalar_prefetch = 0 : i64, scratch_operands = 0 : i64, tpu.core_type = #tpu.core_type<tc>, window_params = [{transform_indices = @transform_0, window_bounds = array<i64: 64, 32>}, {pipeline_mode = #tpu.pipeline_mode<synchronous>, transform_indices = @transform_1, window_bounds = array<i64: 1, 32>}, {pipeline_mode = #tpu.pipeline_mode<synchronous>, transform_indices = @transform_2, window_bounds = array<i64: 1, 32>}, {pipeline_mode = #tpu.pipeline_mode<synchronous>, transform_indices = @transform_3, window_bounds = array<i64: 32, 96>}, {pipeline_mode = #tpu.pipeline_mode<synchronous>, transform_indices = @transform_4, window_bounds = array<i64: 1, 96>}, {transform_indices = @transform_5, window_bounds = array<i64: 64, 96>}]} {
    %c0 = arith.constant 0 : index
    %c0_0 = arith.constant 0 : index
    %0 = vector.load %arg1[%c0, %c0_0] : memref<64x32xbf16, #tpu.memory_space<vmem>>, vector<64x32xbf16>
    %c0_1 = arith.constant 0 : index
    %c0_2 = arith.constant 0 : index
    %1 = vector.load %arg2[%c0_1, %c0_2] : memref<1x32xf32, #tpu.memory_space<vmem>>, vector<1x32xf32>
    %c0_3 = arith.constant 0 : index
    %c0_4 = arith.constant 0 : index
    %2 = vector.load %arg3[%c0_3, %c0_4] : memref<1x32xf32, #tpu.memory_space<vmem>>, vector<1x32xf32>
    %3 = arith.extf %0 : vector<64x32xbf16> to vector<64x32xf32>
    %cst = arith.constant dense<0.000000e+00> : vector<64xf32>
    %4 = vector.multi_reduction <add>, %3, %cst [1] : vector<64x32xf32> to vector<64xf32>
    %5 = vector.shape_cast %4 : vector<64xf32> to vector<64x1xf32>
    %cst_5 = arith.constant 3.200000e+01 : f32
    %6 = vector.broadcast %cst_5 : f32 to vector<64x1xf32>
    %7 = arith.divf %5, %6 : vector<64x1xf32>
    %8 = vector.broadcast %7 : vector<64x1xf32> to vector<64x32xf32>
    %9 = arith.subf %3, %8 : vector<64x32xf32>
    %10 = arith.mulf %9, %9 : vector<64x32xf32>
    %cst_6 = arith.constant dense<0.000000e+00> : vector<64xf32>
    %11 = vector.multi_reduction <add>, %10, %cst_6 [1] : vector<64x32xf32> to vector<64xf32>
    %12 = vector.shape_cast %11 : vector<64xf32> to vector<64x1xf32>
    %cst_7 = arith.constant 3.200000e+01 : f32
    %13 = vector.broadcast %cst_7 : f32 to vector<64x1xf32>
    %14 = arith.divf %12, %13 : vector<64x1xf32>
    %15 = vector.broadcast %7 : vector<64x1xf32> to vector<64x32xf32>
    %16 = arith.subf %3, %15 : vector<64x32xf32>
    %cst_8 = arith.constant 9.99999974E-6 : f32
    %17 = vector.broadcast %cst_8 : f32 to vector<64x1xf32>
    %18 = arith.addf %14, %17 : vector<64x1xf32>
    %19 = math.rsqrt %18 : vector<64x1xf32>
    %20 = vector.broadcast %19 : vector<64x1xf32> to vector<64x32xf32>
    %21 = arith.mulf %16, %20 : vector<64x32xf32>
    %22 = vector.broadcast %1 : vector<1x32xf32> to vector<64x32xf32>
    %23 = arith.mulf %21, %22 : vector<64x32xf32>
    %24 = vector.broadcast %2 : vector<1x32xf32> to vector<64x32xf32>
    %25 = arith.addf %23, %24 : vector<64x32xf32>
    %c0_9 = arith.constant 0 : index
    %c0_10 = arith.constant 0 : index
    %26 = vector.load %arg4[%c0_9, %c0_10] : memref<32x96xbf16, #tpu.memory_space<vmem>>, vector<32x96xbf16>
    %27 = arith.truncf %25 : vector<64x32xf32> to vector<64x32xbf16>
    %cst_11 = arith.constant dense<0.000000e+00> : vector<64x96xf32>
    %28 = tpu.matmul %27, %26, %cst_11 {dimension_numbers = #tpu.dot_dimension_numbers<[1], [0], [0], [1], [0, 0, 1, 1], [], []>} : vector<64x32xbf16>, vector<32x96xbf16>, vector<64x96xf32> -> vector<64x96xf32>
    %c0_12 = arith.constant 0 : index
    %c0_13 = arith.constant 0 : index
    %29 = vector.load %arg5[%c0_12, %c0_13] : memref<1x96xf32, #tpu.memory_space<vmem>>, vector<1x96xf32>
    %30 = vector.broadcast %29 : vector<1x96xf32> to vector<64x96xf32>
    %31 = arith.addf %28, %30 : vector<64x96xf32>
    %32 = arith.truncf %31 : vector<64x96xf32> to vector<64x96xbf16>
    %c0_14 = arith.constant 0 : index
    %c0_15 = arith.constant 0 : index
    %33 = vector.load %arg6[%c0_14, %c0_15] : memref<64x96xbf16, #tpu.memory_space<vmem>>, vector<64x96xbf16>
    tpu.vector_store %arg6[%c0_14, %c0_15], %32 {strides = array<i32>} : memref<64x96xbf16, #tpu.memory_space<vmem>>, vector<64x96xbf16>,
    return
  }
  func.func @transform_0(%arg0: i32) -> (i32, i32) {
    %c0_i32 = arith.constant 0 : i32
    %c0_i32_0 = arith.constant 0 : i32
    return %arg0, %c0_i32 : i32, i32
  }
  func.func @transform_1(%arg0: i32) -> (i32, i32) {
    %c0_i32 = arith.constant 0 : i32
    %c0_i32_0 = arith.constant 0 : i32
    %c0_i32_1 = arith.constant 0 : i32
    return %c0_i32, %c0_i32_0 : i32, i32
  }
  func.func @transform_2(%arg0: i32) -> (i32, i32) {
    %c0_i32 = arith.constant 0 : i32
    %c0_i32_0 = arith.constant 0 : i32
    %c0_i32_1 = arith.constant 0 : i32
    return %c0_i32, %c0_i32_0 : i32, i32
  }
  func.func @transform_3(%arg0: i32) -> (i32, i32) {
    %c0_i32 = arith.constant 0 : i32
    %c0_i32_0 = arith.constant 0 : i32
    %c0_i32_1 = arith.constant 0 : i32
    return %c0_i32, %c0_i32_0 : i32, i32
  }
  func.func @transform_4(%arg0: i32) -> (i32, i32) {
    %c0_i32 = arith.constant 0 : i32
    %c0_i32_0 = arith.constant 0 : i32
    %c0_i32_1 = arith.constant 0 : i32
    return %c0_i32, %c0_i32_0 : i32, i32
  }
  func.func @transform_5(%arg0: i32) -> (i32, i32) {
    %c0_i32 = arith.constant 0 : i32
    %c0_i32_0 = arith.constant 0 : i32
    return %arg0, %c0_i32 : i32, i32
  }
}

module attributes {stable_mosaic.version = 11 : i64} {
  func.func @_attn_nomask_kernel(%arg0: i32, %arg1: memref<4x16x96xbf16, #tpu.memory_space<vmem>>, %arg2: memref<2x16x16xf32, #tpu.memory_space<vmem>>, %arg3: memref<32x32xbf16, #tpu.memory_space<vmem>>, %arg4: memref<1x32xf32, #tpu.memory_space<vmem>>, %arg5: memref<4x16x32xbf16, #tpu.memory_space<vmem>>) attributes {dimension_semantics = [#tpu.dimension_semantics<parallel>], iteration_bounds = array<i64: 2>, scalar_prefetch = 0 : i64, scratch_operands = 0 : i64, tpu.core_type = #tpu.core_type<tc>, window_params = [{transform_indices = @transform_0, window_bounds = array<i64: 4, 16, 96>}, {pipeline_mode = #tpu.pipeline_mode<synchronous>, transform_indices = @transform_1, window_bounds = array<i64: 2, 16, 16>}, {pipeline_mode = #tpu.pipeline_mode<synchronous>, transform_indices = @transform_2, window_bounds = array<i64: 32, 32>}, {pipeline_mode = #tpu.pipeline_mode<synchronous>, transform_indices = @transform_3, window_bounds = array<i64: 1, 32>}, {transform_indices = @transform_4, window_bounds = array<i64: 4, 16, 32>}]} {
    %c0 = arith.constant 0 : index
    %c0_0 = arith.constant 0 : index
    %c0_1 = arith.constant 0 : index
    %0 = vector.load %arg1[%c0, %c0_0, %c0_1] : memref<4x16x96xbf16, #tpu.memory_space<vmem>>, vector<4x16x96xbf16>
    %1 = arith.extf %0 : vector<4x16x96xbf16> to vector<4x16x96xf32>
    %2 = vector.extract_strided_slice %1 {offsets = [0, 0, 0], sizes = [4, 16, 16], strides = [1, 1, 1]} : vector<4x16x96xf32> to vector<4x16x16xf32>
    %3 = vector.extract_strided_slice %1 {offsets = [0, 0, 16], sizes = [4, 16, 16], strides = [1, 1, 1]} : vector<4x16x96xf32> to vector<4x16x16xf32>
    %4 = vector.shape_cast %2 : vector<4x16x16xf32> to vector<4x1x16x16xf32>
    %5 = vector.shape_cast %3 : vector<4x16x16xf32> to vector<4x1x16x16xf32>
    %6 = tpu.concatenate %4, %5 in 1 : vector<4x1x16x16xf32>, vector<4x1x16x16xf32> -> vector<4x2x16x16xf32>
    %7 = vector.shape_cast %6 : vector<4x2x16x16xf32> to vector<8x16x16xf32>
    %8 = arith.truncf %7 : vector<8x16x16xf32> to vector<8x16x16xbf16>
    %9 = vector.extract_strided_slice %1 {offsets = [0, 0, 32], sizes = [4, 16, 16], strides = [1, 1, 1]} : vector<4x16x96xf32> to vector<4x16x16xf32>
    %10 = vector.extract_strided_slice %1 {offsets = [0, 0, 48], sizes = [4, 16, 16], strides = [1, 1, 1]} : vector<4x16x96xf32> to vector<4x16x16xf32>
    %11 = vector.shape_cast %9 : vector<4x16x16xf32> to vector<4x1x16x16xf32>
    %12 = vector.shape_cast %10 : vector<4x16x16xf32> to vector<4x1x16x16xf32>
    %13 = tpu.concatenate %11, %12 in 1 : vector<4x1x16x16xf32>, vector<4x1x16x16xf32> -> vector<4x2x16x16xf32>
    %14 = vector.shape_cast %13 : vector<4x2x16x16xf32> to vector<8x16x16xf32>
    %15 = arith.truncf %14 : vector<8x16x16xf32> to vector<8x16x16xbf16>
    %16 = vector.extract_strided_slice %1 {offsets = [0, 0, 64], sizes = [4, 16, 16], strides = [1, 1, 1]} : vector<4x16x96xf32> to vector<4x16x16xf32>
    %17 = vector.extract_strided_slice %1 {offsets = [0, 0, 80], sizes = [4, 16, 16], strides = [1, 1, 1]} : vector<4x16x96xf32> to vector<4x16x16xf32>
    %18 = vector.shape_cast %16 : vector<4x16x16xf32> to vector<4x1x16x16xf32>
    %19 = vector.shape_cast %17 : vector<4x16x16xf32> to vector<4x1x16x16xf32>
    %20 = tpu.concatenate %18, %19 in 1 : vector<4x1x16x16xf32>, vector<4x1x16x16xf32> -> vector<4x2x16x16xf32>
    %21 = vector.shape_cast %20 : vector<4x2x16x16xf32> to vector<8x16x16xf32>
    %22 = arith.truncf %21 : vector<8x16x16xf32> to vector<8x16x16xbf16>
    "tpu.trace_start"() <{level = 10 : i32, message = "bnd,bmd->bnm"}> : () -> ()
    %cst = arith.constant dense<0.000000e+00> : vector<8x16x16xf32>
    %23 = tpu.matmul %8, %15, %cst {dimension_numbers = #tpu.dot_dimension_numbers<[2], [2], [1], [1], [0, 0, 0, 1, 1, 1], [0], [0]>} : vector<8x16x16xbf16>, vector<8x16x16xbf16>, vector<8x16x16xf32> -> vector<8x16x16xf32>
    "tpu.trace_stop"() : () -> ()
    %cst_2 = arith.constant 2.500000e-01 : f32
    %24 = vector.broadcast %cst_2 : f32 to vector<8x16x16xf32>
    %25 = arith.mulf %23, %24 : vector<8x16x16xf32>
    %26 = vector.shape_cast %25 : vector<8x16x16xf32> to vector<4x2x16x16xf32>
    %c0_3 = arith.constant 0 : index
    %c0_4 = arith.constant 0 : index
    %c0_5 = arith.constant 0 : index
    %27 = vector.load %arg2[%c0_3, %c0_4, %c0_5] : memref<2x16x16xf32, #tpu.memory_space<vmem>>, vector<2x16x16xf32>
    %28 = vector.shape_cast %27 : vector<2x16x16xf32> to vector<1x2x16x16xf32>
    %29 = vector.broadcast %28 : vector<1x2x16x16xf32> to vector<4x2x16x16xf32>
    %30 = arith.addf %26, %29 : vector<4x2x16x16xf32>
    %cst_6 = arith.constant dense<0xFF800000> : vector<4x2x16xf32>
    %31 = vector.multi_reduction <maximumf>, %30, %cst_6 [3] : vector<4x2x16x16xf32> to vector<4x2x16xf32>
    %32 = vector.shape_cast %31 : vector<4x2x16xf32> to vector<4x2x16x1xf32>
    %33 = vector.broadcast %32 : vector<4x2x16x1xf32> to vector<4x2x16x16xf32>
    %34 = arith.subf %30, %33 : vector<4x2x16x16xf32>
    %35 = math.exp %34 : vector<4x2x16x16xf32>
    %cst_7 = arith.constant dense<0.000000e+00> : vector<4x2x16xf32>
    %36 = vector.multi_reduction <add>, %35, %cst_7 [3] : vector<4x2x16x16xf32> to vector<4x2x16xf32>
    %37 = vector.shape_cast %36 : vector<4x2x16xf32> to vector<4x2x16x1xf32>
    %38 = tpu.reciprocal %37 {approx = true} : vector<4x2x16x1xf32> -> vector<4x2x16x1xf32>
    %39 = vector.broadcast %38 : vector<4x2x16x1xf32> to vector<4x2x16x16xf32>
    %40 = arith.mulf %35, %39 : vector<4x2x16x16xf32>
    %41 = vector.shape_cast %40 : vector<4x2x16x16xf32> to vector<8x16x16xf32>
    %42 = arith.truncf %41 : vector<8x16x16xf32> to vector<8x16x16xbf16>
    "tpu.trace_start"() <{level = 10 : i32, message = "bnm,bmd->bnd"}> : () -> ()
    %cst_8 = arith.constant dense<0.000000e+00> : vector<8x16x16xf32>
    %43 = tpu.matmul %42, %22, %cst_8 {dimension_numbers = #tpu.dot_dimension_numbers<[2], [1], [1], [2], [0, 0, 0, 1, 1, 2], [0], [0]>} : vector<8x16x16xbf16>, vector<8x16x16xbf16>, vector<8x16x16xf32> -> vector<8x16x16xf32>
    "tpu.trace_stop"() : () -> ()
    %44 = vector.shape_cast %43 : vector<8x16x16xf32> to vector<4x2x16x16xf32>
    %45 = vector.extract_strided_slice %44 {offsets = [0, 0, 0, 0], sizes = [4, 1, 16, 16], strides = [1, 1, 1, 1]} : vector<4x2x16x16xf32> to vector<4x1x16x16xf32>
    %46 = vector.shape_cast %45 : vector<4x1x16x16xf32> to vector<4x16x16xf32>
    %47 = vector.extract_strided_slice %44 {offsets = [0, 1, 0, 0], sizes = [4, 1, 16, 16], strides = [1, 1, 1, 1]} : vector<4x2x16x16xf32> to vector<4x1x16x16xf32>
    %48 = vector.shape_cast %47 : vector<4x1x16x16xf32> to vector<4x16x16xf32>
    %49 = tpu.concatenate %46, %48 in 2 : vector<4x16x16xf32>, vector<4x16x16xf32> -> vector<4x16x32xf32>
    %50 = vector.shape_cast %49 : vector<4x16x32xf32> to vector<64x32xf32>
    %c0_9 = arith.constant 0 : index
    %c0_10 = arith.constant 0 : index
    %51 = vector.load %arg3[%c0_9, %c0_10] : memref<32x32xbf16, #tpu.memory_space<vmem>>, vector<32x32xbf16>
    %52 = arith.truncf %50 : vector<64x32xf32> to vector<64x32xbf16>
    %cst_11 = arith.constant dense<0.000000e+00> : vector<64x32xf32>
    %53 = tpu.matmul %52, %51, %cst_11 {dimension_numbers = #tpu.dot_dimension_numbers<[1], [0], [0], [1], [0, 0, 1, 1], [], []>} : vector<64x32xbf16>, vector<32x32xbf16>, vector<64x32xf32> -> vector<64x32xf32>
    %c0_12 = arith.constant 0 : index
    %c0_13 = arith.constant 0 : index
    %54 = vector.load %arg4[%c0_12, %c0_13] : memref<1x32xf32, #tpu.memory_space<vmem>>, vector<1x32xf32>
    %55 = vector.broadcast %54 : vector<1x32xf32> to vector<64x32xf32>
    %56 = arith.addf %53, %55 : vector<64x32xf32>
    %57 = vector.shape_cast %56 : vector<64x32xf32> to vector<4x16x32xf32>
    %58 = arith.truncf %57 : vector<4x16x32xf32> to vector<4x16x32xbf16>
    %c0_14 = arith.constant 0 : index
    %c0_15 = arith.constant 0 : index
    %c0_16 = arith.constant 0 : index
    %59 = vector.load %arg5[%c0_14, %c0_15, %c0_16] : memref<4x16x32xbf16, #tpu.memory_space<vmem>>, vector<4x16x32xbf16>
    tpu.vector_store %arg5[%c0_14, %c0_15, %c0_16], %58 {strides = array<i32>} : memref<4x16x32xbf16, #tpu.memory_space<vmem>>, vector<4x16x32xbf16>,
    return
  }
  func.func @transform_0(%arg0: i32) -> (i32, i32, i32) {
    %c0_i32 = arith.constant 0 : i32
    %c0_i32_0 = arith.constant 0 : i32
    %c0_i32_1 = arith.constant 0 : i32
    return %arg0, %c0_i32, %c0_i32_0 : i32, i32, i32
  }
  func.func @transform_1(%arg0: i32) -> (i32, i32, i32) {
    %c0_i32 = arith.constant 0 : i32
    %c0_i32_0 = arith.constant 0 : i32
    %c0_i32_1 = arith.constant 0 : i32
    %c0_i32_2 = arith.constant 0 : i32
    return %c0_i32, %c0_i32_0, %c0_i32_1 : i32, i32, i32
  }
  func.func @transform_2(%arg0: i32) -> (i32, i32) {
    %c0_i32 = arith.constant 0 : i32
    %c0_i32_0 = arith.constant 0 : i32
    %c0_i32_1 = arith.constant 0 : i32
    return %c0_i32, %c0_i32_0 : i32, i32
  }
  func.func @transform_3(%arg0: i32) -> (i32, i32) {
    %c0_i32 = arith.constant 0 : i32
    %c0_i32_0 = arith.constant 0 : i32
    %c0_i32_1 = arith.constant 0 : i32
    return %c0_i32, %c0_i32_0 : i32, i32
  }
  func.func @transform_4(%arg0: i32) -> (i32, i32, i32) {
    %c0_i32 = arith.constant 0 : i32
    %c0_i32_0 = arith.constant 0 : i32
    %c0_i32_1 = arith.constant 0 : i32
    return %arg0, %c0_i32, %c0_i32_0 : i32, i32, i32
  }
}

module attributes {stable_mosaic.version = 11 : i64} {
  func.func @_mlp_block_kernel(%arg0: i32, %arg1: memref<64x32xbf16, #tpu.memory_space<vmem>>, %arg2: memref<64x32xbf16, #tpu.memory_space<vmem>>, %arg3: memref<1x32xf32, #tpu.memory_space<vmem>>, %arg4: memref<1x32xf32, #tpu.memory_space<vmem>>, %arg5: memref<32x128xbf16, #tpu.memory_space<vmem>>, %arg6: memref<1x128xf32, #tpu.memory_space<vmem>>, %arg7: memref<128x32xbf16, #tpu.memory_space<vmem>>, %arg8: memref<1x32xf32, #tpu.memory_space<vmem>>, %arg9: memref<64x32xbf16, #tpu.memory_space<vmem>>) attributes {dimension_semantics = [#tpu.dimension_semantics<parallel>], iteration_bounds = array<i64: 2>, scalar_prefetch = 0 : i64, scratch_operands = 0 : i64, tpu.core_type = #tpu.core_type<tc>, window_params = [{transform_indices = @transform_0, window_bounds = array<i64: 64, 32>}, {transform_indices = @transform_1, window_bounds = array<i64: 64, 32>}, {pipeline_mode = #tpu.pipeline_mode<synchronous>, transform_indices = @transform_2, window_bounds = array<i64: 1, 32>}, {pipeline_mode = #tpu.pipeline_mode<synchronous>, transform_indices = @transform_3, window_bounds = array<i64: 1, 32>}, {pipeline_mode = #tpu.pipeline_mode<synchronous>, transform_indices = @transform_4, window_bounds = array<i64: 32, 128>}, {pipeline_mode = #tpu.pipeline_mode<synchronous>, transform_indices = @transform_5, window_bounds = array<i64: 1, 128>}, {pipeline_mode = #tpu.pipeline_mode<synchronous>, transform_indices = @transform_6, window_bounds = array<i64: 128, 32>}, {pipeline_mode = #tpu.pipeline_mode<synchronous>, transform_indices = @transform_7, window_bounds = array<i64: 1, 32>}, {transform_indices = @transform_8, window_bounds = array<i64: 64, 32>}]} {
    %c0 = arith.constant 0 : index
    %c0_0 = arith.constant 0 : index
    %0 = vector.load %arg1[%c0, %c0_0] : memref<64x32xbf16, #tpu.memory_space<vmem>>, vector<64x32xbf16>
    %1 = arith.extf %0 : vector<64x32xbf16> to vector<64x32xf32>
    %c0_1 = arith.constant 0 : index
    %c0_2 = arith.constant 0 : index
    %2 = vector.load %arg2[%c0_1, %c0_2] : memref<64x32xbf16, #tpu.memory_space<vmem>>, vector<64x32xbf16>
    %3 = arith.extf %2 : vector<64x32xbf16> to vector<64x32xf32>
    %4 = arith.addf %1, %3 : vector<64x32xf32>
    %c0_3 = arith.constant 0 : index
    %c0_4 = arith.constant 0 : index
    %5 = vector.load %arg3[%c0_3, %c0_4] : memref<1x32xf32, #tpu.memory_space<vmem>>, vector<1x32xf32>
    %c0_5 = arith.constant 0 : index
    %c0_6 = arith.constant 0 : index
    %6 = vector.load %arg4[%c0_5, %c0_6] : memref<1x32xf32, #tpu.memory_space<vmem>>, vector<1x32xf32>
    %cst = arith.constant dense<0.000000e+00> : vector<64xf32>
    %7 = vector.multi_reduction <add>, %4, %cst [1] : vector<64x32xf32> to vector<64xf32>
    %8 = vector.shape_cast %7 : vector<64xf32> to vector<64x1xf32>
    %cst_7 = arith.constant 3.200000e+01 : f32
    %9 = vector.broadcast %cst_7 : f32 to vector<64x1xf32>
    %10 = arith.divf %8, %9 : vector<64x1xf32>
    %11 = vector.broadcast %10 : vector<64x1xf32> to vector<64x32xf32>
    %12 = arith.subf %4, %11 : vector<64x32xf32>
    %13 = arith.mulf %12, %12 : vector<64x32xf32>
    %cst_8 = arith.constant dense<0.000000e+00> : vector<64xf32>
    %14 = vector.multi_reduction <add>, %13, %cst_8 [1] : vector<64x32xf32> to vector<64xf32>
    %15 = vector.shape_cast %14 : vector<64xf32> to vector<64x1xf32>
    %cst_9 = arith.constant 3.200000e+01 : f32
    %16 = vector.broadcast %cst_9 : f32 to vector<64x1xf32>
    %17 = arith.divf %15, %16 : vector<64x1xf32>
    %18 = vector.broadcast %10 : vector<64x1xf32> to vector<64x32xf32>
    %19 = arith.subf %4, %18 : vector<64x32xf32>
    %cst_10 = arith.constant 9.99999974E-6 : f32
    %20 = vector.broadcast %cst_10 : f32 to vector<64x1xf32>
    %21 = arith.addf %17, %20 : vector<64x1xf32>
    %22 = math.rsqrt %21 : vector<64x1xf32>
    %23 = vector.broadcast %22 : vector<64x1xf32> to vector<64x32xf32>
    %24 = arith.mulf %19, %23 : vector<64x32xf32>
    %25 = vector.broadcast %5 : vector<1x32xf32> to vector<64x32xf32>
    %26 = arith.mulf %24, %25 : vector<64x32xf32>
    %27 = vector.broadcast %6 : vector<1x32xf32> to vector<64x32xf32>
    %28 = arith.addf %26, %27 : vector<64x32xf32>
    %c0_11 = arith.constant 0 : index
    %c0_12 = arith.constant 0 : index
    %29 = vector.load %arg5[%c0_11, %c0_12] : memref<32x128xbf16, #tpu.memory_space<vmem>>, vector<32x128xbf16>
    %30 = arith.truncf %28 : vector<64x32xf32> to vector<64x32xbf16>
    %cst_13 = arith.constant dense<0.000000e+00> : vector<64x128xf32>
    %31 = tpu.matmul %30, %29, %cst_13 {dimension_numbers = #tpu.dot_dimension_numbers<[1], [0], [0], [1], [0, 0, 1, 1], [], []>} : vector<64x32xbf16>, vector<32x128xbf16>, vector<64x128xf32> -> vector<64x128xf32>
    %c0_14 = arith.constant 0 : index
    %c0_15 = arith.constant 0 : index
    %32 = vector.load %arg6[%c0_14, %c0_15] : memref<1x128xf32, #tpu.memory_space<vmem>>, vector<1x128xf32>
    %33 = vector.broadcast %32 : vector<1x128xf32> to vector<64x128xf32>
    %34 = arith.addf %31, %33 : vector<64x128xf32>
    %cst_16 = arith.constant 5.000000e-01 : f32
    %35 = vector.broadcast %cst_16 : f32 to vector<64x128xf32>
    %36 = arith.mulf %35, %34 : vector<64x128xf32>
    %cst_17 = arith.constant 0.707106769 : f32
    %37 = vector.broadcast %cst_17 : f32 to vector<64x128xf32>
    %38 = arith.mulf %34, %37 : vector<64x128xf32>
    %39 = math.erf %38 : vector<64x128xf32>
    %cst_18 = arith.constant 1.000000e+00 : f32
    %40 = vector.broadcast %cst_18 : f32 to vector<64x128xf32>
    %41 = arith.addf %40, %39 : vector<64x128xf32>
    %42 = arith.mulf %36, %41 : vector<64x128xf32>
    %c0_19 = arith.constant 0 : index
    %c0_20 = arith.constant 0 : index
    %43 = vector.load %arg7[%c0_19, %c0_20] : memref<128x32xbf16, #tpu.memory_space<vmem>>, vector<128x32xbf16>
    %44 = arith.truncf %42 : vector<64x128xf32> to vector<64x128xbf16>
    %cst_21 = arith.constant dense<0.000000e+00> : vector<64x32xf32>
    %45 = tpu.matmul %44, %43, %cst_21 {dimension_numbers = #tpu.dot_dimension_numbers<[1], [0], [0], [1], [0, 0, 1, 1], [], []>} : vector<64x128xbf16>, vector<128x32xbf16>, vector<64x32xf32> -> vector<64x32xf32>
    %46 = arith.addf %4, %45 : vector<64x32xf32>
    %c0_22 = arith.constant 0 : index
    %c0_23 = arith.constant 0 : index
    %47 = vector.load %arg8[%c0_22, %c0_23] : memref<1x32xf32, #tpu.memory_space<vmem>>, vector<1x32xf32>
    %48 = vector.broadcast %47 : vector<1x32xf32> to vector<64x32xf32>
    %49 = arith.addf %46, %48 : vector<64x32xf32>
    %50 = arith.truncf %49 : vector<64x32xf32> to vector<64x32xbf16>
    %c0_24 = arith.constant 0 : index
    %c0_25 = arith.constant 0 : index
    %51 = vector.load %arg9[%c0_24, %c0_25] : memref<64x32xbf16, #tpu.memory_space<vmem>>, vector<64x32xbf16>
    tpu.vector_store %arg9[%c0_24, %c0_25], %50 {strides = array<i32>} : memref<64x32xbf16, #tpu.memory_space<vmem>>, vector<64x32xbf16>,
    return
  }
  func.func @transform_0(%arg0: i32) -> (i32, i32) {
    %c0_i32 = arith.constant 0 : i32
    %c0_i32_0 = arith.constant 0 : i32
    return %arg0, %c0_i32 : i32, i32
  }
  func.func @transform_1(%arg0: i32) -> (i32, i32) {
    %c0_i32 = arith.constant 0 : i32
    %c0_i32_0 = arith.constant 0 : i32
    return %arg0, %c0_i32 : i32, i32
  }
  func.func @transform_2(%arg0: i32) -> (i32, i32) {
    %c0_i32 = arith.constant 0 : i32
    %c0_i32_0 = arith.constant 0 : i32
    %c0_i32_1 = arith.constant 0 : i32
    return %c0_i32, %c0_i32_0 : i32, i32
  }
  func.func @transform_3(%arg0: i32) -> (i32, i32) {
    %c0_i32 = arith.constant 0 : i32
    %c0_i32_0 = arith.constant 0 : i32
    %c0_i32_1 = arith.constant 0 : i32
    return %c0_i32, %c0_i32_0 : i32, i32
  }
  func.func @transform_4(%arg0: i32) -> (i32, i32) {
    %c0_i32 = arith.constant 0 : i32
    %c0_i32_0 = arith.constant 0 : i32
    %c0_i32_1 = arith.constant 0 : i32
    return %c0_i32, %c0_i32_0 : i32, i32
  }
  func.func @transform_5(%arg0: i32) -> (i32, i32) {
    %c0_i32 = arith.constant 0 : i32
    %c0_i32_0 = arith.constant 0 : i32
    %c0_i32_1 = arith.constant 0 : i32
    return %c0_i32, %c0_i32_0 : i32, i32
  }
  func.func @transform_6(%arg0: i32) -> (i32, i32) {
    %c0_i32 = arith.constant 0 : i32
    %c0_i32_0 = arith.constant 0 : i32
    %c0_i32_1 = arith.constant 0 : i32
    return %c0_i32, %c0_i32_0 : i32, i32
  }
  func.func @transform_7(%arg0: i32) -> (i32, i32) {
    %c0_i32 = arith.constant 0 : i32
    %c0_i32_0 = arith.constant 0 : i32
    %c0_i32_1 = arith.constant 0 : i32
    return %c0_i32, %c0_i32_0 : i32, i32
  }
  func.func @transform_8(%arg0: i32) -> (i32, i32) {
    %c0_i32 = arith.constant 0 : i32
    %c0_i32_0 = arith.constant 0 : i32
    return %arg0, %c0_i32 : i32, i32
  }
}

module attributes {stable_mosaic.version = 11 : i64} {
  func.func @_attn_mask_kernel(%arg0: i32, %arg1: memref<4x16x96xbf16, #tpu.memory_space<vmem>>, %arg2: memref<2x16x16xf32, #tpu.memory_space<vmem>>, %arg3: memref<4x16x16xf32, #tpu.memory_space<vmem>>, %arg4: memref<32x32xbf16, #tpu.memory_space<vmem>>, %arg5: memref<1x32xf32, #tpu.memory_space<vmem>>, %arg6: memref<4x16x32xbf16, #tpu.memory_space<vmem>>) attributes {dimension_semantics = [#tpu.dimension_semantics<parallel>], iteration_bounds = array<i64: 2>, scalar_prefetch = 0 : i64, scratch_operands = 0 : i64, tpu.core_type = #tpu.core_type<tc>, window_params = [{transform_indices = @transform_0, window_bounds = array<i64: 4, 16, 96>}, {pipeline_mode = #tpu.pipeline_mode<synchronous>, transform_indices = @transform_1, window_bounds = array<i64: 2, 16, 16>}, {pipeline_mode = #tpu.pipeline_mode<synchronous>, transform_indices = @transform_2, window_bounds = array<i64: 4, 16, 16>}, {pipeline_mode = #tpu.pipeline_mode<synchronous>, transform_indices = @transform_3, window_bounds = array<i64: 32, 32>}, {pipeline_mode = #tpu.pipeline_mode<synchronous>, transform_indices = @transform_4, window_bounds = array<i64: 1, 32>}, {transform_indices = @transform_5, window_bounds = array<i64: 4, 16, 32>}]} {
    %c0 = arith.constant 0 : index
    %c0_0 = arith.constant 0 : index
    %c0_1 = arith.constant 0 : index
    %0 = vector.load %arg1[%c0, %c0_0, %c0_1] : memref<4x16x96xbf16, #tpu.memory_space<vmem>>, vector<4x16x96xbf16>
    %1 = arith.extf %0 : vector<4x16x96xbf16> to vector<4x16x96xf32>
    %2 = vector.extract_strided_slice %1 {offsets = [0, 0, 0], sizes = [4, 16, 16], strides = [1, 1, 1]} : vector<4x16x96xf32> to vector<4x16x16xf32>
    %3 = vector.extract_strided_slice %1 {offsets = [0, 0, 16], sizes = [4, 16, 16], strides = [1, 1, 1]} : vector<4x16x96xf32> to vector<4x16x16xf32>
    %4 = vector.shape_cast %2 : vector<4x16x16xf32> to vector<4x1x16x16xf32>
    %5 = vector.shape_cast %3 : vector<4x16x16xf32> to vector<4x1x16x16xf32>
    %6 = tpu.concatenate %4, %5 in 1 : vector<4x1x16x16xf32>, vector<4x1x16x16xf32> -> vector<4x2x16x16xf32>
    %7 = vector.shape_cast %6 : vector<4x2x16x16xf32> to vector<8x16x16xf32>
    %8 = arith.truncf %7 : vector<8x16x16xf32> to vector<8x16x16xbf16>
    %9 = vector.extract_strided_slice %1 {offsets = [0, 0, 32], sizes = [4, 16, 16], strides = [1, 1, 1]} : vector<4x16x96xf32> to vector<4x16x16xf32>
    %10 = vector.extract_strided_slice %1 {offsets = [0, 0, 48], sizes = [4, 16, 16], strides = [1, 1, 1]} : vector<4x16x96xf32> to vector<4x16x16xf32>
    %11 = vector.shape_cast %9 : vector<4x16x16xf32> to vector<4x1x16x16xf32>
    %12 = vector.shape_cast %10 : vector<4x16x16xf32> to vector<4x1x16x16xf32>
    %13 = tpu.concatenate %11, %12 in 1 : vector<4x1x16x16xf32>, vector<4x1x16x16xf32> -> vector<4x2x16x16xf32>
    %14 = vector.shape_cast %13 : vector<4x2x16x16xf32> to vector<8x16x16xf32>
    %15 = arith.truncf %14 : vector<8x16x16xf32> to vector<8x16x16xbf16>
    %16 = vector.extract_strided_slice %1 {offsets = [0, 0, 64], sizes = [4, 16, 16], strides = [1, 1, 1]} : vector<4x16x96xf32> to vector<4x16x16xf32>
    %17 = vector.extract_strided_slice %1 {offsets = [0, 0, 80], sizes = [4, 16, 16], strides = [1, 1, 1]} : vector<4x16x96xf32> to vector<4x16x16xf32>
    %18 = vector.shape_cast %16 : vector<4x16x16xf32> to vector<4x1x16x16xf32>
    %19 = vector.shape_cast %17 : vector<4x16x16xf32> to vector<4x1x16x16xf32>
    %20 = tpu.concatenate %18, %19 in 1 : vector<4x1x16x16xf32>, vector<4x1x16x16xf32> -> vector<4x2x16x16xf32>
    %21 = vector.shape_cast %20 : vector<4x2x16x16xf32> to vector<8x16x16xf32>
    %22 = arith.truncf %21 : vector<8x16x16xf32> to vector<8x16x16xbf16>
    "tpu.trace_start"() <{level = 10 : i32, message = "bnd,bmd->bnm"}> : () -> ()
    %cst = arith.constant dense<0.000000e+00> : vector<8x16x16xf32>
    %23 = tpu.matmul %8, %15, %cst {dimension_numbers = #tpu.dot_dimension_numbers<[2], [2], [1], [1], [0, 0, 0, 1, 1, 1], [0], [0]>} : vector<8x16x16xbf16>, vector<8x16x16xbf16>, vector<8x16x16xf32> -> vector<8x16x16xf32>
    "tpu.trace_stop"() : () -> ()
    %cst_2 = arith.constant 2.500000e-01 : f32
    %24 = vector.broadcast %cst_2 : f32 to vector<8x16x16xf32>
    %25 = arith.mulf %23, %24 : vector<8x16x16xf32>
    %26 = vector.shape_cast %25 : vector<8x16x16xf32> to vector<4x2x16x16xf32>
    %c0_3 = arith.constant 0 : index
    %c0_4 = arith.constant 0 : index
    %c0_5 = arith.constant 0 : index
    %27 = vector.load %arg2[%c0_3, %c0_4, %c0_5] : memref<2x16x16xf32, #tpu.memory_space<vmem>>, vector<2x16x16xf32>
    %28 = vector.shape_cast %27 : vector<2x16x16xf32> to vector<1x2x16x16xf32>
    %29 = vector.broadcast %28 : vector<1x2x16x16xf32> to vector<4x2x16x16xf32>
    %30 = arith.addf %26, %29 : vector<4x2x16x16xf32>
    %c0_6 = arith.constant 0 : index
    %c0_7 = arith.constant 0 : index
    %c0_8 = arith.constant 0 : index
    %31 = vector.load %arg3[%c0_6, %c0_7, %c0_8] : memref<4x16x16xf32, #tpu.memory_space<vmem>>, vector<4x16x16xf32>
    %32 = vector.shape_cast %31 : vector<4x16x16xf32> to vector<4x1x16x16xf32>
    %33 = vector.broadcast %32 : vector<4x1x16x16xf32> to vector<4x2x16x16xf32>
    %34 = arith.addf %30, %33 : vector<4x2x16x16xf32>
    %cst_9 = arith.constant dense<0xFF800000> : vector<4x2x16xf32>
    %35 = vector.multi_reduction <maximumf>, %34, %cst_9 [3] : vector<4x2x16x16xf32> to vector<4x2x16xf32>
    %36 = vector.shape_cast %35 : vector<4x2x16xf32> to vector<4x2x16x1xf32>
    %37 = vector.broadcast %36 : vector<4x2x16x1xf32> to vector<4x2x16x16xf32>
    %38 = arith.subf %34, %37 : vector<4x2x16x16xf32>
    %39 = math.exp %38 : vector<4x2x16x16xf32>
    %cst_10 = arith.constant dense<0.000000e+00> : vector<4x2x16xf32>
    %40 = vector.multi_reduction <add>, %39, %cst_10 [3] : vector<4x2x16x16xf32> to vector<4x2x16xf32>
    %41 = vector.shape_cast %40 : vector<4x2x16xf32> to vector<4x2x16x1xf32>
    %42 = tpu.reciprocal %41 {approx = true} : vector<4x2x16x1xf32> -> vector<4x2x16x1xf32>
    %43 = vector.broadcast %42 : vector<4x2x16x1xf32> to vector<4x2x16x16xf32>
    %44 = arith.mulf %39, %43 : vector<4x2x16x16xf32>
    %45 = vector.shape_cast %44 : vector<4x2x16x16xf32> to vector<8x16x16xf32>
    %46 = arith.truncf %45 : vector<8x16x16xf32> to vector<8x16x16xbf16>
    "tpu.trace_start"() <{level = 10 : i32, message = "bnm,bmd->bnd"}> : () -> ()
    %cst_11 = arith.constant dense<0.000000e+00> : vector<8x16x16xf32>
    %47 = tpu.matmul %46, %22, %cst_11 {dimension_numbers = #tpu.dot_dimension_numbers<[2], [1], [1], [2], [0, 0, 0, 1, 1, 2], [0], [0]>} : vector<8x16x16xbf16>, vector<8x16x16xbf16>, vector<8x16x16xf32> -> vector<8x16x16xf32>
    "tpu.trace_stop"() : () -> ()
    %48 = vector.shape_cast %47 : vector<8x16x16xf32> to vector<4x2x16x16xf32>
    %49 = vector.extract_strided_slice %48 {offsets = [0, 0, 0, 0], sizes = [4, 1, 16, 16], strides = [1, 1, 1, 1]} : vector<4x2x16x16xf32> to vector<4x1x16x16xf32>
    %50 = vector.shape_cast %49 : vector<4x1x16x16xf32> to vector<4x16x16xf32>
    %51 = vector.extract_strided_slice %48 {offsets = [0, 1, 0, 0], sizes = [4, 1, 16, 16], strides = [1, 1, 1, 1]} : vector<4x2x16x16xf32> to vector<4x1x16x16xf32>
    %52 = vector.shape_cast %51 : vector<4x1x16x16xf32> to vector<4x16x16xf32>
    %53 = tpu.concatenate %50, %52 in 2 : vector<4x16x16xf32>, vector<4x16x16xf32> -> vector<4x16x32xf32>
    %54 = vector.shape_cast %53 : vector<4x16x32xf32> to vector<64x32xf32>
    %c0_12 = arith.constant 0 : index
    %c0_13 = arith.constant 0 : index
    %55 = vector.load %arg4[%c0_12, %c0_13] : memref<32x32xbf16, #tpu.memory_space<vmem>>, vector<32x32xbf16>
    %56 = arith.truncf %54 : vector<64x32xf32> to vector<64x32xbf16>
    %cst_14 = arith.constant dense<0.000000e+00> : vector<64x32xf32>
    %57 = tpu.matmul %56, %55, %cst_14 {dimension_numbers = #tpu.dot_dimension_numbers<[1], [0], [0], [1], [0, 0, 1, 1], [], []>} : vector<64x32xbf16>, vector<32x32xbf16>, vector<64x32xf32> -> vector<64x32xf32>
    %c0_15 = arith.constant 0 : index
    %c0_16 = arith.constant 0 : index
    %58 = vector.load %arg5[%c0_15, %c0_16] : memref<1x32xf32, #tpu.memory_space<vmem>>, vector<1x32xf32>
    %59 = vector.broadcast %58 : vector<1x32xf32> to vector<64x32xf32>
    %60 = arith.addf %57, %59 : vector<64x32xf32>
    %61 = vector.shape_cast %60 : vector<64x32xf32> to vector<4x16x32xf32>
    %62 = arith.truncf %61 : vector<4x16x32xf32> to vector<4x16x32xbf16>
    %c0_17 = arith.constant 0 : index
    %c0_18 = arith.constant 0 : index
    %c0_19 = arith.constant 0 : index
    %63 = vector.load %arg6[%c0_17, %c0_18, %c0_19] : memref<4x16x32xbf16, #tpu.memory_space<vmem>>, vector<4x16x32xbf16>
    tpu.vector_store %arg6[%c0_17, %c0_18, %c0_19], %62 {strides = array<i32>} : memref<4x16x32xbf16, #tpu.memory_space<vmem>>, vector<4x16x32xbf16>,
    return
  }
  func.func @transform_0(%arg0: i32) -> (i32, i32, i32) {
    %c0_i32 = arith.constant 0 : i32
    %c0_i32_0 = arith.constant 0 : i32
    %c0_i32_1 = arith.constant 0 : i32
    return %arg0, %c0_i32, %c0_i32_0 : i32, i32, i32
  }
  func.func @transform_1(%arg0: i32) -> (i32, i32, i32) {
    %c0_i32 = arith.constant 0 : i32
    %c0_i32_0 = arith.constant 0 : i32
    %c0_i32_1 = arith.constant 0 : i32
    %c0_i32_2 = arith.constant 0 : i32
    return %c0_i32, %c0_i32_0, %c0_i32_1 : i32, i32, i32
  }
  func.func @transform_2(%arg0: i32) -> (i32, i32, i32) {
    %c0_i32 = arith.constant 0 : i32
    %c0_i32_0 = arith.constant 0 : i32
    %c0_i32_1 = arith.constant 0 : i32
    %c0_i32_2 = arith.constant 0 : i32
    return %c0_i32, %c0_i32_0, %c0_i32_1 : i32, i32, i32
  }
  func.func @transform_3(%arg0: i32) -> (i32, i32) {
    %c0_i32 = arith.constant 0 : i32
    %c0_i32_0 = arith.constant 0 : i32
    %c0_i32_1 = arith.constant 0 : i32
    return %c0_i32, %c0_i32_0 : i32, i32
  }
  func.func @transform_4(%arg0: i32) -> (i32, i32) {
    %c0_i32 = arith.constant 0 : i32
    %c0_i32_0 = arith.constant 0 : i32
    %c0_i32_1 = arith.constant 0 : i32
    return %c0_i32, %c0_i32_0 : i32, i32
  }
  func.func @transform_5(%arg0: i32) -> (i32, i32, i32) {
    %c0_i32 = arith.constant 0 : i32
    %c0_i32_0 = arith.constant 0 : i32
    %c0_i32_1 = arith.constant 0 : i32
    return %arg0, %c0_i32, %c0_i32_0 : i32, i32, i32
  }
}

module attributes {stable_mosaic.version = 11 : i64} {
  func.func @_attn_nomask_kernel(%arg0: i32, %arg1: memref<1x16x192xbf16, #tpu.memory_space<vmem>>, %arg2: memref<4x16x16xf32, #tpu.memory_space<vmem>>, %arg3: memref<64x64xbf16, #tpu.memory_space<vmem>>, %arg4: memref<1x64xf32, #tpu.memory_space<vmem>>, %arg5: memref<1x16x64xbf16, #tpu.memory_space<vmem>>) attributes {dimension_semantics = [#tpu.dimension_semantics<parallel>], iteration_bounds = array<i64: 2>, scalar_prefetch = 0 : i64, scratch_operands = 0 : i64, tpu.core_type = #tpu.core_type<tc>, window_params = [{transform_indices = @transform_0, window_bounds = array<i64: 1, 16, 192>}, {pipeline_mode = #tpu.pipeline_mode<synchronous>, transform_indices = @transform_1, window_bounds = array<i64: 4, 16, 16>}, {pipeline_mode = #tpu.pipeline_mode<synchronous>, transform_indices = @transform_2, window_bounds = array<i64: 64, 64>}, {pipeline_mode = #tpu.pipeline_mode<synchronous>, transform_indices = @transform_3, window_bounds = array<i64: 1, 64>}, {transform_indices = @transform_4, window_bounds = array<i64: 1, 16, 64>}]} {
    %c0 = arith.constant 0 : index
    %c0_0 = arith.constant 0 : index
    %c0_1 = arith.constant 0 : index
    %0 = vector.load %arg1[%c0, %c0_0, %c0_1] : memref<1x16x192xbf16, #tpu.memory_space<vmem>>, vector<1x16x192xbf16>
    %1 = arith.extf %0 : vector<1x16x192xbf16> to vector<1x16x192xf32>
    %2 = vector.extract_strided_slice %1 {offsets = [0, 0, 0], sizes = [1, 16, 16], strides = [1, 1, 1]} : vector<1x16x192xf32> to vector<1x16x16xf32>
    %3 = vector.extract_strided_slice %1 {offsets = [0, 0, 16], sizes = [1, 16, 16], strides = [1, 1, 1]} : vector<1x16x192xf32> to vector<1x16x16xf32>
    %4 = vector.extract_strided_slice %1 {offsets = [0, 0, 32], sizes = [1, 16, 16], strides = [1, 1, 1]} : vector<1x16x192xf32> to vector<1x16x16xf32>
    %5 = vector.extract_strided_slice %1 {offsets = [0, 0, 48], sizes = [1, 16, 16], strides = [1, 1, 1]} : vector<1x16x192xf32> to vector<1x16x16xf32>
    %6 = vector.shape_cast %2 : vector<1x16x16xf32> to vector<1x1x16x16xf32>
    %7 = vector.shape_cast %3 : vector<1x16x16xf32> to vector<1x1x16x16xf32>
    %8 = vector.shape_cast %4 : vector<1x16x16xf32> to vector<1x1x16x16xf32>
    %9 = vector.shape_cast %5 : vector<1x16x16xf32> to vector<1x1x16x16xf32>
    %10 = tpu.concatenate %6, %7, %8, %9 in 1 : vector<1x1x16x16xf32>, vector<1x1x16x16xf32>, vector<1x1x16x16xf32>, vector<1x1x16x16xf32> -> vector<1x4x16x16xf32>
    %11 = vector.shape_cast %10 : vector<1x4x16x16xf32> to vector<4x16x16xf32>
    %12 = arith.truncf %11 : vector<4x16x16xf32> to vector<4x16x16xbf16>
    %13 = vector.extract_strided_slice %1 {offsets = [0, 0, 64], sizes = [1, 16, 16], strides = [1, 1, 1]} : vector<1x16x192xf32> to vector<1x16x16xf32>
    %14 = vector.extract_strided_slice %1 {offsets = [0, 0, 80], sizes = [1, 16, 16], strides = [1, 1, 1]} : vector<1x16x192xf32> to vector<1x16x16xf32>
    %15 = vector.extract_strided_slice %1 {offsets = [0, 0, 96], sizes = [1, 16, 16], strides = [1, 1, 1]} : vector<1x16x192xf32> to vector<1x16x16xf32>
    %16 = vector.extract_strided_slice %1 {offsets = [0, 0, 112], sizes = [1, 16, 16], strides = [1, 1, 1]} : vector<1x16x192xf32> to vector<1x16x16xf32>
    %17 = vector.shape_cast %13 : vector<1x16x16xf32> to vector<1x1x16x16xf32>
    %18 = vector.shape_cast %14 : vector<1x16x16xf32> to vector<1x1x16x16xf32>
    %19 = vector.shape_cast %15 : vector<1x16x16xf32> to vector<1x1x16x16xf32>
    %20 = vector.shape_cast %16 : vector<1x16x16xf32> to vector<1x1x16x16xf32>
    %21 = tpu.concatenate %17, %18, %19, %20 in 1 : vector<1x1x16x16xf32>, vector<1x1x16x16xf32>, vector<1x1x16x16xf32>, vector<1x1x16x16xf32> -> vector<1x4x16x16xf32>
    %22 = vector.shape_cast %21 : vector<1x4x16x16xf32> to vector<4x16x16xf32>
    %23 = arith.truncf %22 : vector<4x16x16xf32> to vector<4x16x16xbf16>
    %24 = vector.extract_strided_slice %1 {offsets = [0, 0, 128], sizes = [1, 16, 16], strides = [1, 1, 1]} : vector<1x16x192xf32> to vector<1x16x16xf32>
    %25 = vector.extract_strided_slice %1 {offsets = [0, 0, 144], sizes = [1, 16, 16], strides = [1, 1, 1]} : vector<1x16x192xf32> to vector<1x16x16xf32>
    %26 = vector.extract_strided_slice %1 {offsets = [0, 0, 160], sizes = [1, 16, 16], strides = [1, 1, 1]} : vector<1x16x192xf32> to vector<1x16x16xf32>
    %27 = vector.extract_strided_slice %1 {offsets = [0, 0, 176], sizes = [1, 16, 16], strides = [1, 1, 1]} : vector<1x16x192xf32> to vector<1x16x16xf32>
    %28 = vector.shape_cast %24 : vector<1x16x16xf32> to vector<1x1x16x16xf32>
    %29 = vector.shape_cast %25 : vector<1x16x16xf32> to vector<1x1x16x16xf32>
    %30 = vector.shape_cast %26 : vector<1x16x16xf32> to vector<1x1x16x16xf32>
    %31 = vector.shape_cast %27 : vector<1x16x16xf32> to vector<1x1x16x16xf32>
    %32 = tpu.concatenate %28, %29, %30, %31 in 1 : vector<1x1x16x16xf32>, vector<1x1x16x16xf32>, vector<1x1x16x16xf32>, vector<1x1x16x16xf32> -> vector<1x4x16x16xf32>
    %33 = vector.shape_cast %32 : vector<1x4x16x16xf32> to vector<4x16x16xf32>
    %34 = arith.truncf %33 : vector<4x16x16xf32> to vector<4x16x16xbf16>
    "tpu.trace_start"() <{level = 10 : i32, message = "bnd,bmd->bnm"}> : () -> ()
    %cst = arith.constant dense<0.000000e+00> : vector<4x16x16xf32>
    %35 = tpu.matmul %12, %23, %cst {dimension_numbers = #tpu.dot_dimension_numbers<[2], [2], [1], [1], [0, 0, 0, 1, 1, 1], [0], [0]>} : vector<4x16x16xbf16>, vector<4x16x16xbf16>, vector<4x16x16xf32> -> vector<4x16x16xf32>
    "tpu.trace_stop"() : () -> ()
    %cst_2 = arith.constant 2.500000e-01 : f32
    %36 = vector.broadcast %cst_2 : f32 to vector<4x16x16xf32>
    %37 = arith.mulf %35, %36 : vector<4x16x16xf32>
    %38 = vector.shape_cast %37 : vector<4x16x16xf32> to vector<1x4x16x16xf32>
    %c0_3 = arith.constant 0 : index
    %c0_4 = arith.constant 0 : index
    %c0_5 = arith.constant 0 : index
    %39 = vector.load %arg2[%c0_3, %c0_4, %c0_5] : memref<4x16x16xf32, #tpu.memory_space<vmem>>, vector<4x16x16xf32>
    %40 = vector.shape_cast %39 : vector<4x16x16xf32> to vector<1x4x16x16xf32>
    %41 = arith.addf %38, %40 : vector<1x4x16x16xf32>
    %cst_6 = arith.constant dense<0xFF800000> : vector<1x4x16xf32>
    %42 = vector.multi_reduction <maximumf>, %41, %cst_6 [3] : vector<1x4x16x16xf32> to vector<1x4x16xf32>
    %43 = vector.shape_cast %42 : vector<1x4x16xf32> to vector<1x4x16x1xf32>
    %44 = vector.broadcast %43 : vector<1x4x16x1xf32> to vector<1x4x16x16xf32>
    %45 = arith.subf %41, %44 : vector<1x4x16x16xf32>
    %46 = math.exp %45 : vector<1x4x16x16xf32>
    %cst_7 = arith.constant dense<0.000000e+00> : vector<1x4x16xf32>
    %47 = vector.multi_reduction <add>, %46, %cst_7 [3] : vector<1x4x16x16xf32> to vector<1x4x16xf32>
    %48 = vector.shape_cast %47 : vector<1x4x16xf32> to vector<1x4x16x1xf32>
    %49 = tpu.reciprocal %48 {approx = true} : vector<1x4x16x1xf32> -> vector<1x4x16x1xf32>
    %50 = vector.broadcast %49 : vector<1x4x16x1xf32> to vector<1x4x16x16xf32>
    %51 = arith.mulf %46, %50 : vector<1x4x16x16xf32>
    %52 = vector.shape_cast %51 : vector<1x4x16x16xf32> to vector<4x16x16xf32>
    %53 = arith.truncf %52 : vector<4x16x16xf32> to vector<4x16x16xbf16>
    "tpu.trace_start"() <{level = 10 : i32, message = "bnm,bmd->bnd"}> : () -> ()
    %cst_8 = arith.constant dense<0.000000e+00> : vector<4x16x16xf32>
    %54 = tpu.matmul %53, %34, %cst_8 {dimension_numbers = #tpu.dot_dimension_numbers<[2], [1], [1], [2], [0, 0, 0, 1, 1, 2], [0], [0]>} : vector<4x16x16xbf16>, vector<4x16x16xbf16>, vector<4x16x16xf32> -> vector<4x16x16xf32>
    "tpu.trace_stop"() : () -> ()
    %55 = vector.shape_cast %54 : vector<4x16x16xf32> to vector<1x4x16x16xf32>
    %56 = vector.extract_strided_slice %55 {offsets = [0, 0, 0, 0], sizes = [1, 1, 16, 16], strides = [1, 1, 1, 1]} : vector<1x4x16x16xf32> to vector<1x1x16x16xf32>
    %57 = vector.shape_cast %56 : vector<1x1x16x16xf32> to vector<1x16x16xf32>
    %58 = vector.extract_strided_slice %55 {offsets = [0, 1, 0, 0], sizes = [1, 1, 16, 16], strides = [1, 1, 1, 1]} : vector<1x4x16x16xf32> to vector<1x1x16x16xf32>
    %59 = vector.shape_cast %58 : vector<1x1x16x16xf32> to vector<1x16x16xf32>
    %60 = vector.extract_strided_slice %55 {offsets = [0, 2, 0, 0], sizes = [1, 1, 16, 16], strides = [1, 1, 1, 1]} : vector<1x4x16x16xf32> to vector<1x1x16x16xf32>
    %61 = vector.shape_cast %60 : vector<1x1x16x16xf32> to vector<1x16x16xf32>
    %62 = vector.extract_strided_slice %55 {offsets = [0, 3, 0, 0], sizes = [1, 1, 16, 16], strides = [1, 1, 1, 1]} : vector<1x4x16x16xf32> to vector<1x1x16x16xf32>
    %63 = vector.shape_cast %62 : vector<1x1x16x16xf32> to vector<1x16x16xf32>
    %64 = tpu.concatenate %57, %59, %61, %63 in 2 : vector<1x16x16xf32>, vector<1x16x16xf32>, vector<1x16x16xf32>, vector<1x16x16xf32> -> vector<1x16x64xf32>
    %65 = vector.shape_cast %64 : vector<1x16x64xf32> to vector<16x64xf32>
    %c0_9 = arith.constant 0 : index
    %c0_10 = arith.constant 0 : index
    %66 = vector.load %arg3[%c0_9, %c0_10] : memref<64x64xbf16, #tpu.memory_space<vmem>>, vector<64x64xbf16>
    %67 = arith.truncf %65 : vector<16x64xf32> to vector<16x64xbf16>
    %cst_11 = arith.constant dense<0.000000e+00> : vector<16x64xf32>
    %68 = tpu.matmul %67, %66, %cst_11 {dimension_numbers = #tpu.dot_dimension_numbers<[1], [0], [0], [1], [0, 0, 1, 1], [], []>} : vector<16x64xbf16>, vector<64x64xbf16>, vector<16x64xf32> -> vector<16x64xf32>
    %c0_12 = arith.constant 0 : index
    %c0_13 = arith.constant 0 : index
    %69 = vector.load %arg4[%c0_12, %c0_13] : memref<1x64xf32, #tpu.memory_space<vmem>>, vector<1x64xf32>
    %70 = vector.broadcast %69 : vector<1x64xf32> to vector<16x64xf32>
    %71 = arith.addf %68, %70 : vector<16x64xf32>
    %72 = vector.shape_cast %71 : vector<16x64xf32> to vector<1x16x64xf32>
    %73 = arith.truncf %72 : vector<1x16x64xf32> to vector<1x16x64xbf16>
    %c0_14 = arith.constant 0 : index
    %c0_15 = arith.constant 0 : index
    %c0_16 = arith.constant 0 : index
    %74 = vector.load %arg5[%c0_14, %c0_15, %c0_16] : memref<1x16x64xbf16, #tpu.memory_space<vmem>>, vector<1x16x64xbf16>
    tpu.vector_store %arg5[%c0_14, %c0_15, %c0_16], %73 {strides = array<i32>} : memref<1x16x64xbf16, #tpu.memory_space<vmem>>, vector<1x16x64xbf16>,
    return
  }
  func.func @transform_0(%arg0: i32) -> (i32, i32, i32) {
    %c0_i32 = arith.constant 0 : i32
    %c0_i32_0 = arith.constant 0 : i32
    %c0_i32_1 = arith.constant 0 : i32
    return %arg0, %c0_i32, %c0_i32_0 : i32, i32, i32
  }
  func.func @transform_1(%arg0: i32) -> (i32, i32, i32) {
    %c0_i32 = arith.constant 0 : i32
    %c0_i32_0 = arith.constant 0 : i32
    %c0_i32_1 = arith.constant 0 : i32
    %c0_i32_2 = arith.constant 0 : i32
    return %c0_i32, %c0_i32_0, %c0_i32_1 : i32, i32, i32
  }
  func.func @transform_2(%arg0: i32) -> (i32, i32) {
    %c0_i32 = arith.constant 0 : i32
    %c0_i32_0 = arith.constant 0 : i32
    %c0_i32_1 = arith.constant 0 : i32
    return %c0_i32, %c0_i32_0 : i32, i32
  }
  func.func @transform_3(%arg0: i32) -> (i32, i32) {
    %c0_i32 = arith.constant 0 : i32
    %c0_i32_0 = arith.constant 0 : i32
    %c0_i32_1 = arith.constant 0 : i32
    return %c0_i32, %c0_i32_0 : i32, i32
  }
  func.func @transform_4(%arg0: i32) -> (i32, i32, i32) {
    %c0_i32 = arith.constant 0 : i32
    %c0_i32_0 = arith.constant 0 : i32
    %c0_i32_1 = arith.constant 0 : i32
    return %arg0, %c0_i32, %c0_i32_0 : i32, i32, i32
  }
}

module attributes {stable_mosaic.version = 11 : i64} {
  func.func @_ln_linear_kernel(%arg0: i32, %arg1: memref<16x64xbf16, #tpu.memory_space<vmem>>, %arg2: memref<1x64xf32, #tpu.memory_space<vmem>>, %arg3: memref<1x64xf32, #tpu.memory_space<vmem>>, %arg4: memref<64x192xbf16, #tpu.memory_space<vmem>>, %arg5: memref<1x192xf32, #tpu.memory_space<vmem>>, %arg6: memref<16x192xbf16, #tpu.memory_space<vmem>>) attributes {dimension_semantics = [#tpu.dimension_semantics<parallel>], iteration_bounds = array<i64: 2>, scalar_prefetch = 0 : i64, scratch_operands = 0 : i64, tpu.core_type = #tpu.core_type<tc>, window_params = [{transform_indices = @transform_0, window_bounds = array<i64: 16, 64>}, {pipeline_mode = #tpu.pipeline_mode<synchronous>, transform_indices = @transform_1, window_bounds = array<i64: 1, 64>}, {pipeline_mode = #tpu.pipeline_mode<synchronous>, transform_indices = @transform_2, window_bounds = array<i64: 1, 64>}, {pipeline_mode = #tpu.pipeline_mode<synchronous>, transform_indices = @transform_3, window_bounds = array<i64: 64, 192>}, {pipeline_mode = #tpu.pipeline_mode<synchronous>, transform_indices = @transform_4, window_bounds = array<i64: 1, 192>}, {transform_indices = @transform_5, window_bounds = array<i64: 16, 192>}]} {
    %c0 = arith.constant 0 : index
    %c0_0 = arith.constant 0 : index
    %0 = vector.load %arg1[%c0, %c0_0] : memref<16x64xbf16, #tpu.memory_space<vmem>>, vector<16x64xbf16>
    %c0_1 = arith.constant 0 : index
    %c0_2 = arith.constant 0 : index
    %1 = vector.load %arg2[%c0_1, %c0_2] : memref<1x64xf32, #tpu.memory_space<vmem>>, vector<1x64xf32>
    %c0_3 = arith.constant 0 : index
    %c0_4 = arith.constant 0 : index
    %2 = vector.load %arg3[%c0_3, %c0_4] : memref<1x64xf32, #tpu.memory_space<vmem>>, vector<1x64xf32>
    %3 = arith.extf %0 : vector<16x64xbf16> to vector<16x64xf32>
    %cst = arith.constant dense<0.000000e+00> : vector<16xf32>
    %4 = vector.multi_reduction <add>, %3, %cst [1] : vector<16x64xf32> to vector<16xf32>
    %5 = vector.shape_cast %4 : vector<16xf32> to vector<16x1xf32>
    %cst_5 = arith.constant 6.400000e+01 : f32
    %6 = vector.broadcast %cst_5 : f32 to vector<16x1xf32>
    %7 = arith.divf %5, %6 : vector<16x1xf32>
    %8 = vector.broadcast %7 : vector<16x1xf32> to vector<16x64xf32>
    %9 = arith.subf %3, %8 : vector<16x64xf32>
    %10 = arith.mulf %9, %9 : vector<16x64xf32>
    %cst_6 = arith.constant dense<0.000000e+00> : vector<16xf32>
    %11 = vector.multi_reduction <add>, %10, %cst_6 [1] : vector<16x64xf32> to vector<16xf32>
    %12 = vector.shape_cast %11 : vector<16xf32> to vector<16x1xf32>
    %cst_7 = arith.constant 6.400000e+01 : f32
    %13 = vector.broadcast %cst_7 : f32 to vector<16x1xf32>
    %14 = arith.divf %12, %13 : vector<16x1xf32>
    %15 = vector.broadcast %7 : vector<16x1xf32> to vector<16x64xf32>
    %16 = arith.subf %3, %15 : vector<16x64xf32>
    %cst_8 = arith.constant 9.99999974E-6 : f32
    %17 = vector.broadcast %cst_8 : f32 to vector<16x1xf32>
    %18 = arith.addf %14, %17 : vector<16x1xf32>
    %19 = math.rsqrt %18 : vector<16x1xf32>
    %20 = vector.broadcast %19 : vector<16x1xf32> to vector<16x64xf32>
    %21 = arith.mulf %16, %20 : vector<16x64xf32>
    %22 = vector.broadcast %1 : vector<1x64xf32> to vector<16x64xf32>
    %23 = arith.mulf %21, %22 : vector<16x64xf32>
    %24 = vector.broadcast %2 : vector<1x64xf32> to vector<16x64xf32>
    %25 = arith.addf %23, %24 : vector<16x64xf32>
    %c0_9 = arith.constant 0 : index
    %c0_10 = arith.constant 0 : index
    %26 = vector.load %arg4[%c0_9, %c0_10] : memref<64x192xbf16, #tpu.memory_space<vmem>>, vector<64x192xbf16>
    %27 = arith.truncf %25 : vector<16x64xf32> to vector<16x64xbf16>
    %cst_11 = arith.constant dense<0.000000e+00> : vector<16x192xf32>
    %28 = tpu.matmul %27, %26, %cst_11 {dimension_numbers = #tpu.dot_dimension_numbers<[1], [0], [0], [1], [0, 0, 1, 1], [], []>} : vector<16x64xbf16>, vector<64x192xbf16>, vector<16x192xf32> -> vector<16x192xf32>
    %c0_12 = arith.constant 0 : index
    %c0_13 = arith.constant 0 : index
    %29 = vector.load %arg5[%c0_12, %c0_13] : memref<1x192xf32, #tpu.memory_space<vmem>>, vector<1x192xf32>
    %30 = vector.broadcast %29 : vector<1x192xf32> to vector<16x192xf32>
    %31 = arith.addf %28, %30 : vector<16x192xf32>
    %32 = arith.truncf %31 : vector<16x192xf32> to vector<16x192xbf16>
    %c0_14 = arith.constant 0 : index
    %c0_15 = arith.constant 0 : index
    %33 = vector.load %arg6[%c0_14, %c0_15] : memref<16x192xbf16, #tpu.memory_space<vmem>>, vector<16x192xbf16>
    tpu.vector_store %arg6[%c0_14, %c0_15], %32 {strides = array<i32>} : memref<16x192xbf16, #tpu.memory_space<vmem>>, vector<16x192xbf16>,
    return
  }
  func.func @transform_0(%arg0: i32) -> (i32, i32) {
    %c0_i32 = arith.constant 0 : i32
    %c0_i32_0 = arith.constant 0 : i32
    return %arg0, %c0_i32 : i32, i32
  }
  func.func @transform_1(%arg0: i32) -> (i32, i32) {
    %c0_i32 = arith.constant 0 : i32
    %c0_i32_0 = arith.constant 0 : i32
    %c0_i32_1 = arith.constant 0 : i32
    return %c0_i32, %c0_i32_0 : i32, i32
  }
  func.func @transform_2(%arg0: i32) -> (i32, i32) {
    %c0_i32 = arith.constant 0 : i32
    %c0_i32_0 = arith.constant 0 : i32
    %c0_i32_1 = arith.constant 0 : i32
    return %c0_i32, %c0_i32_0 : i32, i32
  }
  func.func @transform_3(%arg0: i32) -> (i32, i32) {
    %c0_i32 = arith.constant 0 : i32
    %c0_i32_0 = arith.constant 0 : i32
    %c0_i32_1 = arith.constant 0 : i32
    return %c0_i32, %c0_i32_0 : i32, i32
  }
  func.func @transform_4(%arg0: i32) -> (i32, i32) {
    %c0_i32 = arith.constant 0 : i32
    %c0_i32_0 = arith.constant 0 : i32
    %c0_i32_1 = arith.constant 0 : i32
    return %c0_i32, %c0_i32_0 : i32, i32
  }
  func.func @transform_5(%arg0: i32) -> (i32, i32) {
    %c0_i32 = arith.constant 0 : i32
    %c0_i32_0 = arith.constant 0 : i32
    return %arg0, %c0_i32 : i32, i32
  }
}

module attributes {stable_mosaic.version = 11 : i64} {
  func.func @_ln_linear_nobias_kernel(%arg0: i32, %arg1: memref<16x128xbf16, #tpu.memory_space<vmem>>, %arg2: memref<1x128xf32, #tpu.memory_space<vmem>>, %arg3: memref<1x128xf32, #tpu.memory_space<vmem>>, %arg4: memref<128x64xbf16, #tpu.memory_space<vmem>>, %arg5: memref<16x64xbf16, #tpu.memory_space<vmem>>) attributes {dimension_semantics = [#tpu.dimension_semantics<parallel>], iteration_bounds = array<i64: 2>, scalar_prefetch = 0 : i64, scratch_operands = 0 : i64, tpu.core_type = #tpu.core_type<tc>, window_params = [{transform_indices = @transform_0, window_bounds = array<i64: 16, 128>}, {pipeline_mode = #tpu.pipeline_mode<synchronous>, transform_indices = @transform_1, window_bounds = array<i64: 1, 128>}, {pipeline_mode = #tpu.pipeline_mode<synchronous>, transform_indices = @transform_2, window_bounds = array<i64: 1, 128>}, {pipeline_mode = #tpu.pipeline_mode<synchronous>, transform_indices = @transform_3, window_bounds = array<i64: 128, 64>}, {transform_indices = @transform_4, window_bounds = array<i64: 16, 64>}]} {
    %c0 = arith.constant 0 : index
    %c0_0 = arith.constant 0 : index
    %0 = vector.load %arg1[%c0, %c0_0] : memref<16x128xbf16, #tpu.memory_space<vmem>>, vector<16x128xbf16>
    %c0_1 = arith.constant 0 : index
    %c0_2 = arith.constant 0 : index
    %1 = vector.load %arg2[%c0_1, %c0_2] : memref<1x128xf32, #tpu.memory_space<vmem>>, vector<1x128xf32>
    %c0_3 = arith.constant 0 : index
    %c0_4 = arith.constant 0 : index
    %2 = vector.load %arg3[%c0_3, %c0_4] : memref<1x128xf32, #tpu.memory_space<vmem>>, vector<1x128xf32>
    %3 = arith.extf %0 : vector<16x128xbf16> to vector<16x128xf32>
    %cst = arith.constant dense<0.000000e+00> : vector<16xf32>
    %4 = vector.multi_reduction <add>, %3, %cst [1] : vector<16x128xf32> to vector<16xf32>
    %5 = vector.shape_cast %4 : vector<16xf32> to vector<16x1xf32>
    %cst_5 = arith.constant 1.280000e+02 : f32
    %6 = vector.broadcast %cst_5 : f32 to vector<16x1xf32>
    %7 = arith.divf %5, %6 : vector<16x1xf32>
    %8 = vector.broadcast %7 : vector<16x1xf32> to vector<16x128xf32>
    %9 = arith.subf %3, %8 : vector<16x128xf32>
    %10 = arith.mulf %9, %9 : vector<16x128xf32>
    %cst_6 = arith.constant dense<0.000000e+00> : vector<16xf32>
    %11 = vector.multi_reduction <add>, %10, %cst_6 [1] : vector<16x128xf32> to vector<16xf32>
    %12 = vector.shape_cast %11 : vector<16xf32> to vector<16x1xf32>
    %cst_7 = arith.constant 1.280000e+02 : f32
    %13 = vector.broadcast %cst_7 : f32 to vector<16x1xf32>
    %14 = arith.divf %12, %13 : vector<16x1xf32>
    %15 = vector.broadcast %7 : vector<16x1xf32> to vector<16x128xf32>
    %16 = arith.subf %3, %15 : vector<16x128xf32>
    %cst_8 = arith.constant 9.99999974E-6 : f32
    %17 = vector.broadcast %cst_8 : f32 to vector<16x1xf32>
    %18 = arith.addf %14, %17 : vector<16x1xf32>
    %19 = math.rsqrt %18 : vector<16x1xf32>
    %20 = vector.broadcast %19 : vector<16x1xf32> to vector<16x128xf32>
    %21 = arith.mulf %16, %20 : vector<16x128xf32>
    %22 = vector.broadcast %1 : vector<1x128xf32> to vector<16x128xf32>
    %23 = arith.mulf %21, %22 : vector<16x128xf32>
    %24 = vector.broadcast %2 : vector<1x128xf32> to vector<16x128xf32>
    %25 = arith.addf %23, %24 : vector<16x128xf32>
    %c0_9 = arith.constant 0 : index
    %c0_10 = arith.constant 0 : index
    %26 = vector.load %arg4[%c0_9, %c0_10] : memref<128x64xbf16, #tpu.memory_space<vmem>>, vector<128x64xbf16>
    %27 = arith.truncf %25 : vector<16x128xf32> to vector<16x128xbf16>
    %cst_11 = arith.constant dense<0.000000e+00> : vector<16x64xf32>
    %28 = tpu.matmul %27, %26, %cst_11 {dimension_numbers = #tpu.dot_dimension_numbers<[1], [0], [0], [1], [0, 0, 1, 1], [], []>} : vector<16x128xbf16>, vector<128x64xbf16>, vector<16x64xf32> -> vector<16x64xf32>
    %29 = arith.truncf %28 : vector<16x64xf32> to vector<16x64xbf16>
    %c0_12 = arith.constant 0 : index
    %c0_13 = arith.constant 0 : index
    %30 = vector.load %arg5[%c0_12, %c0_13] : memref<16x64xbf16, #tpu.memory_space<vmem>>, vector<16x64xbf16>
    tpu.vector_store %arg5[%c0_12, %c0_13], %29 {strides = array<i32>} : memref<16x64xbf16, #tpu.memory_space<vmem>>, vector<16x64xbf16>,
    return
  }
  func.func @transform_0(%arg0: i32) -> (i32, i32) {
    %c0_i32 = arith.constant 0 : i32
    %c0_i32_0 = arith.constant 0 : i32
    return %arg0, %c0_i32 : i32, i32
  }
  func.func @transform_1(%arg0: i32) -> (i32, i32) {
    %c0_i32 = arith.constant 0 : i32
    %c0_i32_0 = arith.constant 0 : i32
    %c0_i32_1 = arith.constant 0 : i32
    return %c0_i32, %c0_i32_0 : i32, i32
  }
  func.func @transform_2(%arg0: i32) -> (i32, i32) {
    %c0_i32 = arith.constant 0 : i32
    %c0_i32_0 = arith.constant 0 : i32
    %c0_i32_1 = arith.constant 0 : i32
    return %c0_i32, %c0_i32_0 : i32, i32
  }
  func.func @transform_3(%arg0: i32) -> (i32, i32) {
    %c0_i32 = arith.constant 0 : i32
    %c0_i32_0 = arith.constant 0 : i32
    %c0_i32_1 = arith.constant 0 : i32
    return %c0_i32, %c0_i32_0 : i32, i32
  }
  func.func @transform_4(%arg0: i32) -> (i32, i32) {
    %c0_i32 = arith.constant 0 : i32
    %c0_i32_0 = arith.constant 0 : i32
    return %arg0, %c0_i32 : i32, i32
  }
}

module attributes {stable_mosaic.version = 11 : i64} {
  func.func @_mlp_block_kernel(%arg0: i32, %arg1: memref<16x64xbf16, #tpu.memory_space<vmem>>, %arg2: memref<16x64xbf16, #tpu.memory_space<vmem>>, %arg3: memref<1x64xf32, #tpu.memory_space<vmem>>, %arg4: memref<1x64xf32, #tpu.memory_space<vmem>>, %arg5: memref<64x256xbf16, #tpu.memory_space<vmem>>, %arg6: memref<1x256xf32, #tpu.memory_space<vmem>>, %arg7: memref<256x64xbf16, #tpu.memory_space<vmem>>, %arg8: memref<1x64xf32, #tpu.memory_space<vmem>>, %arg9: memref<16x64xbf16, #tpu.memory_space<vmem>>) attributes {dimension_semantics = [#tpu.dimension_semantics<parallel>], iteration_bounds = array<i64: 2>, scalar_prefetch = 0 : i64, scratch_operands = 0 : i64, tpu.core_type = #tpu.core_type<tc>, window_params = [{transform_indices = @transform_0, window_bounds = array<i64: 16, 64>}, {transform_indices = @transform_1, window_bounds = array<i64: 16, 64>}, {pipeline_mode = #tpu.pipeline_mode<synchronous>, transform_indices = @transform_2, window_bounds = array<i64: 1, 64>}, {pipeline_mode = #tpu.pipeline_mode<synchronous>, transform_indices = @transform_3, window_bounds = array<i64: 1, 64>}, {pipeline_mode = #tpu.pipeline_mode<synchronous>, transform_indices = @transform_4, window_bounds = array<i64: 64, 256>}, {pipeline_mode = #tpu.pipeline_mode<synchronous>, transform_indices = @transform_5, window_bounds = array<i64: 1, 256>}, {pipeline_mode = #tpu.pipeline_mode<synchronous>, transform_indices = @transform_6, window_bounds = array<i64: 256, 64>}, {pipeline_mode = #tpu.pipeline_mode<synchronous>, transform_indices = @transform_7, window_bounds = array<i64: 1, 64>}, {transform_indices = @transform_8, window_bounds = array<i64: 16, 64>}]} {
    %c0 = arith.constant 0 : index
    %c0_0 = arith.constant 0 : index
    %0 = vector.load %arg1[%c0, %c0_0] : memref<16x64xbf16, #tpu.memory_space<vmem>>, vector<16x64xbf16>
    %1 = arith.extf %0 : vector<16x64xbf16> to vector<16x64xf32>
    %c0_1 = arith.constant 0 : index
    %c0_2 = arith.constant 0 : index
    %2 = vector.load %arg2[%c0_1, %c0_2] : memref<16x64xbf16, #tpu.memory_space<vmem>>, vector<16x64xbf16>
    %3 = arith.extf %2 : vector<16x64xbf16> to vector<16x64xf32>
    %4 = arith.addf %1, %3 : vector<16x64xf32>
    %c0_3 = arith.constant 0 : index
    %c0_4 = arith.constant 0 : index
    %5 = vector.load %arg3[%c0_3, %c0_4] : memref<1x64xf32, #tpu.memory_space<vmem>>, vector<1x64xf32>
    %c0_5 = arith.constant 0 : index
    %c0_6 = arith.constant 0 : index
    %6 = vector.load %arg4[%c0_5, %c0_6] : memref<1x64xf32, #tpu.memory_space<vmem>>, vector<1x64xf32>
    %cst = arith.constant dense<0.000000e+00> : vector<16xf32>
    %7 = vector.multi_reduction <add>, %4, %cst [1] : vector<16x64xf32> to vector<16xf32>
    %8 = vector.shape_cast %7 : vector<16xf32> to vector<16x1xf32>
    %cst_7 = arith.constant 6.400000e+01 : f32
    %9 = vector.broadcast %cst_7 : f32 to vector<16x1xf32>
    %10 = arith.divf %8, %9 : vector<16x1xf32>
    %11 = vector.broadcast %10 : vector<16x1xf32> to vector<16x64xf32>
    %12 = arith.subf %4, %11 : vector<16x64xf32>
    %13 = arith.mulf %12, %12 : vector<16x64xf32>
    %cst_8 = arith.constant dense<0.000000e+00> : vector<16xf32>
    %14 = vector.multi_reduction <add>, %13, %cst_8 [1] : vector<16x64xf32> to vector<16xf32>
    %15 = vector.shape_cast %14 : vector<16xf32> to vector<16x1xf32>
    %cst_9 = arith.constant 6.400000e+01 : f32
    %16 = vector.broadcast %cst_9 : f32 to vector<16x1xf32>
    %17 = arith.divf %15, %16 : vector<16x1xf32>
    %18 = vector.broadcast %10 : vector<16x1xf32> to vector<16x64xf32>
    %19 = arith.subf %4, %18 : vector<16x64xf32>
    %cst_10 = arith.constant 9.99999974E-6 : f32
    %20 = vector.broadcast %cst_10 : f32 to vector<16x1xf32>
    %21 = arith.addf %17, %20 : vector<16x1xf32>
    %22 = math.rsqrt %21 : vector<16x1xf32>
    %23 = vector.broadcast %22 : vector<16x1xf32> to vector<16x64xf32>
    %24 = arith.mulf %19, %23 : vector<16x64xf32>
    %25 = vector.broadcast %5 : vector<1x64xf32> to vector<16x64xf32>
    %26 = arith.mulf %24, %25 : vector<16x64xf32>
    %27 = vector.broadcast %6 : vector<1x64xf32> to vector<16x64xf32>
    %28 = arith.addf %26, %27 : vector<16x64xf32>
    %c0_11 = arith.constant 0 : index
    %c0_12 = arith.constant 0 : index
    %29 = vector.load %arg5[%c0_11, %c0_12] : memref<64x256xbf16, #tpu.memory_space<vmem>>, vector<64x256xbf16>
    %30 = arith.truncf %28 : vector<16x64xf32> to vector<16x64xbf16>
    %cst_13 = arith.constant dense<0.000000e+00> : vector<16x256xf32>
    %31 = tpu.matmul %30, %29, %cst_13 {dimension_numbers = #tpu.dot_dimension_numbers<[1], [0], [0], [1], [0, 0, 1, 1], [], []>} : vector<16x64xbf16>, vector<64x256xbf16>, vector<16x256xf32> -> vector<16x256xf32>
    %c0_14 = arith.constant 0 : index
    %c0_15 = arith.constant 0 : index
    %32 = vector.load %arg6[%c0_14, %c0_15] : memref<1x256xf32, #tpu.memory_space<vmem>>, vector<1x256xf32>
    %33 = vector.broadcast %32 : vector<1x256xf32> to vector<16x256xf32>
    %34 = arith.addf %31, %33 : vector<16x256xf32>
    %cst_16 = arith.constant 5.000000e-01 : f32
    %35 = vector.broadcast %cst_16 : f32 to vector<16x256xf32>
    %36 = arith.mulf %35, %34 : vector<16x256xf32>
    %cst_17 = arith.constant 0.707106769 : f32
    %37 = vector.broadcast %cst_17 : f32 to vector<16x256xf32>
    %38 = arith.mulf %34, %37 : vector<16x256xf32>
    %39 = math.erf %38 : vector<16x256xf32>
    %cst_18 = arith.constant 1.000000e+00 : f32
    %40 = vector.broadcast %cst_18 : f32 to vector<16x256xf32>
    %41 = arith.addf %40, %39 : vector<16x256xf32>
    %42 = arith.mulf %36, %41 : vector<16x256xf32>
    %c0_19 = arith.constant 0 : index
    %c0_20 = arith.constant 0 : index
    %43 = vector.load %arg7[%c0_19, %c0_20] : memref<256x64xbf16, #tpu.memory_space<vmem>>, vector<256x64xbf16>
    %44 = arith.truncf %42 : vector<16x256xf32> to vector<16x256xbf16>
    %cst_21 = arith.constant dense<0.000000e+00> : vector<16x64xf32>
    %45 = tpu.matmul %44, %43, %cst_21 {dimension_numbers = #tpu.dot_dimension_numbers<[1], [0], [0], [1], [0, 0, 1, 1], [], []>} : vector<16x256xbf16>, vector<256x64xbf16>, vector<16x64xf32> -> vector<16x64xf32>
    %46 = arith.addf %4, %45 : vector<16x64xf32>
    %c0_22 = arith.constant 0 : index
    %c0_23 = arith.constant 0 : index
    %47 = vector.load %arg8[%c0_22, %c0_23] : memref<1x64xf32, #tpu.memory_space<vmem>>, vector<1x64xf32>
    %48 = vector.broadcast %47 : vector<1x64xf32> to vector<16x64xf32>
    %49 = arith.addf %46, %48 : vector<16x64xf32>
    %50 = arith.truncf %49 : vector<16x64xf32> to vector<16x64xbf16>
    %c0_24 = arith.constant 0 : index
    %c0_25 = arith.constant 0 : index
    %51 = vector.load %arg9[%c0_24, %c0_25] : memref<16x64xbf16, #tpu.memory_space<vmem>>, vector<16x64xbf16>
    tpu.vector_store %arg9[%c0_24, %c0_25], %50 {strides = array<i32>} : memref<16x64xbf16, #tpu.memory_space<vmem>>, vector<16x64xbf16>,
    return
  }
  func.func @transform_0(%arg0: i32) -> (i32, i32) {
    %c0_i32 = arith.constant 0 : i32
    %c0_i32_0 = arith.constant 0 : i32
    return %arg0, %c0_i32 : i32, i32
  }
  func.func @transform_1(%arg0: i32) -> (i32, i32) {
    %c0_i32 = arith.constant 0 : i32
    %c0_i32_0 = arith.constant 0 : i32
    return %arg0, %c0_i32 : i32, i32
  }
  func.func @transform_2(%arg0: i32) -> (i32, i32) {
    %c0_i32 = arith.constant 0 : i32
    %c0_i32_0 = arith.constant 0 : i32
    %c0_i32_1 = arith.constant 0 : i32
    return %c0_i32, %c0_i32_0 : i32, i32
  }
  func.func @transform_3(%arg0: i32) -> (i32, i32) {
    %c0_i32 = arith.constant 0 : i32
    %c0_i32_0 = arith.constant 0 : i32
    %c0_i32_1 = arith.constant 0 : i32
    return %c0_i32, %c0_i32_0 : i32, i32
  }
  func.func @transform_4(%arg0: i32) -> (i32, i32) {
    %c0_i32 = arith.constant 0 : i32
    %c0_i32_0 = arith.constant 0 : i32
    %c0_i32_1 = arith.constant 0 : i32
    return %c0_i32, %c0_i32_0 : i32, i32
  }
  func.func @transform_5(%arg0: i32) -> (i32, i32) {
    %c0_i32 = arith.constant 0 : i32
    %c0_i32_0 = arith.constant 0 : i32
    %c0_i32_1 = arith.constant 0 : i32
    return %c0_i32, %c0_i32_0 : i32, i32
  }
  func.func @transform_6(%arg0: i32) -> (i32, i32) {
    %c0_i32 = arith.constant 0 : i32
    %c0_i32_0 = arith.constant 0 : i32
    %c0_i32_1 = arith.constant 0 : i32
    return %c0_i32, %c0_i32_0 : i32, i32
  }
  func.func @transform_7(%arg0: i32) -> (i32, i32) {
    %c0_i32 = arith.constant 0 : i32
    %c0_i32_0 = arith.constant 0 : i32
    %c0_i32_1 = arith.constant 0 : i32
    return %c0_i32, %c0_i32_0 : i32, i32
  }
  func.func @transform_8(%arg0: i32) -> (i32, i32) {
    %c0_i32 = arith.constant 0 : i32
    %c0_i32_0 = arith.constant 0 : i32
    return %arg0, %c0_i32 : i32, i32
  }
}

module attributes {stable_mosaic.version = 11 : i64} {
  func.func @_head_kernel(%arg0: i32, %arg1: memref<2x16x64xbf16, #tpu.memory_space<vmem>>, %arg2: memref<1x64xf32, #tpu.memory_space<vmem>>, %arg3: memref<1x64xf32, #tpu.memory_space<vmem>>, %arg4: memref<64x16xbf16, #tpu.memory_space<vmem>>, %arg5: memref<1x16xf32, #tpu.memory_space<vmem>>, %arg6: memref<2x16xf32, #tpu.memory_space<vmem>>) attributes {dimension_semantics = [#tpu.dimension_semantics<arbitrary>], iteration_bounds = array<i64: 1>, scalar_prefetch = 0 : i64, scratch_operands = 0 : i64, tpu.core_type = #tpu.core_type<tc>, window_params = [{pipeline_mode = #tpu.pipeline_mode<synchronous>, transform_indices = @transform_0, window_bounds = array<i64: 2, 16, 64>}, {pipeline_mode = #tpu.pipeline_mode<synchronous>, transform_indices = @transform_1, window_bounds = array<i64: 1, 64>}, {pipeline_mode = #tpu.pipeline_mode<synchronous>, transform_indices = @transform_2, window_bounds = array<i64: 1, 64>}, {pipeline_mode = #tpu.pipeline_mode<synchronous>, transform_indices = @transform_3, window_bounds = array<i64: 64, 16>}, {pipeline_mode = #tpu.pipeline_mode<synchronous>, transform_indices = @transform_4, window_bounds = array<i64: 1, 16>}, {pipeline_mode = #tpu.pipeline_mode<synchronous>, transform_indices = @transform_5, window_bounds = array<i64: 2, 16>}]} {
    %c0 = arith.constant 0 : index
    %c0_0 = arith.constant 0 : index
    %c0_1 = arith.constant 0 : index
    %0 = vector.load %arg1[%c0, %c0_0, %c0_1] : memref<2x16x64xbf16, #tpu.memory_space<vmem>>, vector<2x16x64xbf16>
    %c0_2 = arith.constant 0 : index
    %c0_3 = arith.constant 0 : index
    %1 = vector.load %arg2[%c0_2, %c0_3] : memref<1x64xf32, #tpu.memory_space<vmem>>, vector<1x64xf32>
    %c0_4 = arith.constant 0 : index
    %c0_5 = arith.constant 0 : index
    %2 = vector.load %arg3[%c0_4, %c0_5] : memref<1x64xf32, #tpu.memory_space<vmem>>, vector<1x64xf32>
    %3 = arith.extf %0 : vector<2x16x64xbf16> to vector<2x16x64xf32>
    %cst = arith.constant dense<0.000000e+00> : vector<2x16xf32>
    %4 = vector.multi_reduction <add>, %3, %cst [2] : vector<2x16x64xf32> to vector<2x16xf32>
    %5 = vector.shape_cast %4 : vector<2x16xf32> to vector<2x16x1xf32>
    %cst_6 = arith.constant 6.400000e+01 : f32
    %6 = vector.broadcast %cst_6 : f32 to vector<2x16x1xf32>
    %7 = arith.divf %5, %6 : vector<2x16x1xf32>
    %8 = vector.broadcast %7 : vector<2x16x1xf32> to vector<2x16x64xf32>
    %9 = arith.subf %3, %8 : vector<2x16x64xf32>
    %10 = arith.mulf %9, %9 : vector<2x16x64xf32>
    %cst_7 = arith.constant dense<0.000000e+00> : vector<2x16xf32>
    %11 = vector.multi_reduction <add>, %10, %cst_7 [2] : vector<2x16x64xf32> to vector<2x16xf32>
    %12 = vector.shape_cast %11 : vector<2x16xf32> to vector<2x16x1xf32>
    %cst_8 = arith.constant 6.400000e+01 : f32
    %13 = vector.broadcast %cst_8 : f32 to vector<2x16x1xf32>
    %14 = arith.divf %12, %13 : vector<2x16x1xf32>
    %15 = vector.broadcast %7 : vector<2x16x1xf32> to vector<2x16x64xf32>
    %16 = arith.subf %3, %15 : vector<2x16x64xf32>
    %cst_9 = arith.constant 9.99999974E-6 : f32
    %17 = vector.broadcast %cst_9 : f32 to vector<2x16x1xf32>
    %18 = arith.addf %14, %17 : vector<2x16x1xf32>
    %19 = math.rsqrt %18 : vector<2x16x1xf32>
    %20 = vector.broadcast %19 : vector<2x16x1xf32> to vector<2x16x64xf32>
    %21 = arith.mulf %16, %20 : vector<2x16x64xf32>
    %22 = vector.shape_cast %1 : vector<1x64xf32> to vector<1x1x64xf32>
    %23 = vector.broadcast %22 : vector<1x1x64xf32> to vector<2x16x64xf32>
    %24 = arith.mulf %21, %23 : vector<2x16x64xf32>
    %25 = vector.shape_cast %2 : vector<1x64xf32> to vector<1x1x64xf32>
    %26 = vector.broadcast %25 : vector<1x1x64xf32> to vector<2x16x64xf32>
    %27 = arith.addf %24, %26 : vector<2x16x64xf32>
    %cst_10 = arith.constant dense<0.000000e+00> : vector<2x64xf32>
    %28 = vector.multi_reduction <add>, %27, %cst_10 [1] : vector<2x16x64xf32> to vector<2x64xf32>
    %cst_11 = arith.constant 1.600000e+01 : f32
    %29 = vector.broadcast %cst_11 : f32 to vector<2x64xf32>
    %30 = arith.divf %28, %29 : vector<2x64xf32>
    %c0_12 = arith.constant 0 : index
    %c0_13 = arith.constant 0 : index
    %31 = vector.load %arg4[%c0_12, %c0_13] : memref<64x16xbf16, #tpu.memory_space<vmem>>, vector<64x16xbf16>
    %32 = arith.truncf %30 : vector<2x64xf32> to vector<2x64xbf16>
    %cst_14 = arith.constant dense<0.000000e+00> : vector<2x16xf32>
    %33 = tpu.matmul %32, %31, %cst_14 {dimension_numbers = #tpu.dot_dimension_numbers<[1], [0], [0], [1], [0, 0, 1, 1], [], []>} : vector<2x64xbf16>, vector<64x16xbf16>, vector<2x16xf32> -> vector<2x16xf32>
    %c0_15 = arith.constant 0 : index
    %c0_16 = arith.constant 0 : index
    %34 = vector.load %arg5[%c0_15, %c0_16] : memref<1x16xf32, #tpu.memory_space<vmem>>, vector<1x16xf32>
    %35 = vector.broadcast %34 : vector<1x16xf32> to vector<2x16xf32>
    %36 = arith.addf %33, %35 : vector<2x16xf32>
    %c0_17 = arith.constant 0 : index
    %c0_18 = arith.constant 0 : index
    %37 = vector.load %arg6[%c0_17, %c0_18] : memref<2x16xf32, #tpu.memory_space<vmem>>, vector<2x16xf32>
    tpu.vector_store %arg6[%c0_17, %c0_18], %36 {strides = array<i32>} : memref<2x16xf32, #tpu.memory_space<vmem>>, vector<2x16xf32>,
    return
  }
  func.func @transform_0(%arg0: i32) -> (i32, i32, i32) {
    %c0_i32 = arith.constant 0 : i32
    %c0_i32_0 = arith.constant 0 : i32
    %c0_i32_1 = arith.constant 0 : i32
    %c0_i32_2 = arith.constant 0 : i32
    return %c0_i32, %c0_i32_0, %c0_i32_1 : i32, i32, i32
  }
  func.func @transform_1(%arg0: i32) -> (i32, i32) {
    %c0_i32 = arith.constant 0 : i32
    %c0_i32_0 = arith.constant 0 : i32
    %c0_i32_1 = arith.constant 0 : i32
    return %c0_i32, %c0_i32_0 : i32, i32
  }
  func.func @transform_2(%arg0: i32) -> (i32, i32) {
    %c0_i32 = arith.constant 0 : i32
    %c0_i32_0 = arith.constant 0 : i32
    %c0_i32_1 = arith.constant 0 : i32
    return %c0_i32, %c0_i32_0 : i32, i32
  }
  func.func @transform_3(%arg0: i32) -> (i32, i32) {
    %c0_i32 = arith.constant 0 : i32
    %c0_i32_0 = arith.constant 0 : i32
    %c0_i32_1 = arith.constant 0 : i32
    return %c0_i32, %c0_i32_0 : i32, i32
  }
  func.func @transform_4(%arg0: i32) -> (i32, i32) {
    %c0_i32 = arith.constant 0 : i32
    %c0_i32_0 = arith.constant 0 : i32
    %c0_i32_1 = arith.constant 0 : i32
    return %c0_i32, %c0_i32_0 : i32, i32
  }
  func.func @transform_5(%arg0: i32) -> (i32, i32) {
    %c0_i32 = arith.constant 0 : i32
    %c0_i32_0 = arith.constant 0 : i32
    %c0_i32_1 = arith.constant 0 : i32
    return %c0_i32, %c0_i32_0 : i32, i32
  }
}

</mosaic_0001>

<bundles_post_ra>
// kernel: swin_forward.16
= control target key start
LH: loop header
LB: loop body
LE: loop exit
PB: predicated region body
PF: predicated region fallthrough
CT: control target
= control target key end

     0   :  { %s723_s18 = smov 0   ;;  %s830_s0 = inlined_call_operand.vmem [shape: bf16[128,32], index: 0, kind: input, shape index: {}]   ;;  %s831_s1 = inlined_call_operand.vmem [shape: f32[1,32], index: 1, kind: input, shape index: {}]   ;;  %s832_s2 = inlined_call_operand.vmem [shape: f32[1,32], index: 2, kind: input, shape index: {}]   ;;  %s833_s3 = inlined_call_operand.vmem [shape: bf16[32,96], index: 3, kind: input, shape index: {}]   ;;  %s834_s4 = inlined_call_operand.vmem [shape: f32[1,96], index: 4, kind: input, shape index: {}]   ;;  %s835_s5 = inlined_call_operand.vmem [shape: bf16[128,96], index: 5, kind: output, shape index: {}]  }
   0x1 LB: > { %s582_s19 = sadd.s32 4294967295, %s691_s18   ;;  %p586_p0 = scmp.ge.s32.totalorder %s691_s18, 1  ;;  %s691_s18 = sphi %s723_s18, %s15_s18  }
   0x2   : > { %p188_p1 = scmp.lt.s32.totalorder %s691_s18, 3 }
   0x4   : > { %p189_p2 = pnand %p586_p0, %p188_p1 }
   0x5   : > { %s587_s20 = sshll.u32 (!%p189_p2), %s582_s19, 3  ;;  %vm247_vm0 = vcmask (!%p189_p2), 261120   ;;  %v667_v60 = vld [vmem:[%s833_s3] sm:$0xff] (!%p189_p2)   ;;  %v668_v61 = vld [vmem:[%s833_s3 + $0x8] sm:$0xff] (!%p189_p2)   ;;  %vm517_vm1 = vcmask (!%p189_p2), 781312  }
   0x6   : > { %192 = sbr.rel (%p189_p2) target bundleno = 570 (0x23a), region = 40  ;;  %p217_p3 = scmp.lt.s32.totalorder (!%p189_p2), %s587_s20, 15  ;;  %643 = vmatprep.subr.bf16.mxu0 (!%p189_p2), %v667_v60  ;;  %655 = vmatprep.subr.bf16.mxu1 (!%p189_p2), %v667_v60 }
   0x7   : > { %644 = vmatpush3.bf16.msra.mxu0 (!%p189_p2), %v667_v60  ;;  %657 = vmatpush3.bf16.msra.mxu1 (!%p189_p2), %v667_v60 }
   0x8   : > { %645 = vmatprep.subr.bf16.mxu0 (!%p189_p2), %v668_v61  ;;  %656 = vmatprep.subr.bf16.mxu1 (!%p189_p2), %v668_v61 }
   0xb   : > { %646 = vmatpush3.bf16.msra.mxu0 (!%p189_p2), %v668_v61  ;;  %658 = vmatpush3.bf16.msra.mxu1 (!%p189_p2), %v668_v61 }
   0xd   : > { %s837_s20 = smov (!%p217_p3, %s587_s20), 15 }
   0xe   : > { %s588_s21 = sshll.u32 %s837_s20, 2 }
   0xf   : > { %s220_s24 = scalar_lea.vmem %s830_s0, %s588_s21  ;;  %s226_s12 = scalar_lea.vmem %s835_s5, %s588_s21 }
  0x10   : > { %v619_v0 = vld [vmem:[%s220_s24] sm:$0xff]   ;;  %v635_v1 = vld [vmem:[%s220_s24 + $0x10] sm:$0xff]   ;;  %v634_v6 = vld [vmem:[%s220_s24 + $0x8] sm:$0xff]  }
  0x11   : > { %v620_v2 = vunpack.c.l.bf16 %v619_v0  ;;  %v628_v3 = vunpack.c.l.bf16 %v635_v1  ;;  %v621_v4 = vunpack.c.h.bf16 %v619_v0  ;;  %v629_v5 = vunpack.c.h.bf16 %v635_v1  ;;  %v636_v13 = vld [vmem:[%s220_s24 + $0x18] sm:$0xff]  }
  0x12   : > { %v624_v11 = vunpack.c.l.bf16 %v634_v6  ;;  %v625_v12 = vunpack.c.h.bf16 %v634_v6  ;;  %v632_v16 = vunpack.c.l.bf16 %v636_v13  ;;  %v633_v17 = vunpack.c.h.bf16 %v636_v13 }
  0x13   : > { %v248_v7 = vsel %vm247_vm0, %v620_v2, 0.0  ;;  %v260_v8 = vsel %vm247_vm0, %v628_v3, 0.0  ;;  %v251_v9 = vsel %vm247_vm0, %v621_v4, 0.0  ;;  %v263_v10 = vsel %vm247_vm0, %v629_v5, 0.0 }
  0x14   : > { %249 = vadd.xlane.f32.xlu0 %v248_v7  ;;  %261 = vadd.xlane.f32.xlu1 %v260_v8  ;;  %v254_v14 = vsel %vm247_vm0, %v624_v11, 0.0  ;;  %v257_v15 = vsel %vm247_vm0, %v625_v12, 0.0  ;;  %v266_v18 = vsel %vm247_vm0, %v632_v16, 0.0  ;;  %v269_v19 = vsel %vm247_vm0, %v633_v17, 0.0 }
  0x18   : > { %252 = vadd.xlane.f32.xlu0 %v251_v9  ;;  %264 = vadd.xlane.f32.xlu1 %v263_v10 }
  0x1c   : > { %255 = vadd.xlane.f32.xlu0 %v254_v14  ;;  %258 = vadd.xlane.f32.xlu1 %v257_v15 }
  0x20   : > { %267 = vadd.xlane.f32.xlu0 %v266_v18  ;;  %270 = vadd.xlane.f32.xlu1 %v269_v19 }
  0xa1   : > { %v250_v20 = vpop.xlane.xlu0 %249  ;;  %v262_v21 = vpop.xlane.xlu1 %261 }
  0xa2   : > { %v273_v22 = vmul.f32 0.03125, %v250_v20  ;;  %v277_v23 = vmul.f32 0.03125, %v262_v21 }
  0xa4   : > { %v747_v24 = vsub.f32 %v620_v2, %v273_v22  ;;  %v749_v25 = vsub.f32 %v628_v3, %v277_v23  ;;  %v591_v23 = vld [vmem:[%s831_s1] ss:$0 sm:$0xff] }
  0xa5   : > { %v253_v26 = vpop.xlane.xlu0 %252  ;;  %v265_v27 = vpop.xlane.xlu1 %264 }
  0xa6   : > { %v274_v28 = vmul.f32 0.03125, %v253_v26  ;;  %v278_v29 = vmul.f32 0.03125, %v265_v27  ;;  %v289_v30 = vmul.f32 %v747_v24, %v747_v24  ;;  %v293_v31 = vmul.f32 %v749_v25, %v749_v25 }
  0xa8   : > { %v755_v32 = vsub.f32 %v621_v4, %v274_v28  ;;  %v757_v33 = vsub.f32 %v629_v5, %v278_v29  ;;  %v297_v34 = vsel %vm247_vm0, %v289_v30, 0.0  ;;  %v309_v37 = vsel %vm247_vm0, %v293_v31, 0.0  ;;  %v592_v31 = vld [vmem:[%s832_s2] ss:$0 sm:$0xff] }
  0xa9   : > { %298 = vadd.xlane.f32.xlu0 %v297_v34  ;;  %v256_v35 = vpop.xlane.xlu0 %255  ;;  %v259_v36 = vpop.xlane.xlu1 %258 }
  0xaa   : > { %v275_v38 = vmul.f32 0.03125, %v256_v35  ;;  %v276_v39 = vmul.f32 0.03125, %v259_v36  ;;  %v290_v40 = vmul.f32 %v755_v32, %v755_v32  ;;  %v294_v41 = vmul.f32 %v757_v33, %v757_v33 }
  0xac   : > { %v765_v42 = vsub.f32 %v624_v11, %v275_v38  ;;  %v767_v43 = vsub.f32 %v625_v12, %v276_v39  ;;  %v300_v44 = vsel %vm247_vm0, %v290_v40, 0.0  ;;  %v312_v47 = vsel %vm247_vm0, %v294_v41, 0.0 }
  0xad   : > { %310 = vadd.xlane.f32.xlu0 %v309_v37  ;;  %301 = vadd.xlane.f32.xlu1 %v300_v44  ;;  %v268_v45 = vpop.xlane.xlu0 %267  ;;  %v271_v46 = vpop.xlane.xlu1 %270 }
  0xae   : > { %v279_v48 = vmul.f32 0.03125, %v268_v45  ;;  %v280_v49 = vmul.f32 0.03125, %v271_v46  ;;  %v291_v50 = vmul.f32 %v765_v42, %v765_v42  ;;  %v292_v51 = vmul.f32 %v767_v43, %v767_v43 }
  0xb0   : > { %v775_v52 = vsub.f32 %v632_v16, %v279_v48  ;;  %v777_v53 = vsub.f32 %v633_v17, %v280_v49  ;;  %v303_v54 = vsel %vm247_vm0, %v291_v50, 0.0  ;;  %v306_v55 = vsel %vm247_vm0, %v292_v51, 0.0 }
  0xb1   : > { %313 = vadd.xlane.f32.xlu1 %v312_v47  ;;  %304 = vadd.xlane.f32.xlu0 %v303_v54 }
  0xb2   : > { %v295_v56 = vmul.f32 %v775_v52, %v775_v52  ;;  %v296_v57 = vmul.f32 %v777_v53, %v777_v53 }
  0xb4   : > { %v315_v58 = vsel %vm247_vm0, %v295_v56, 0.0  ;;  %v318_v59 = vsel %vm247_vm0, %v296_v57, 0.0 }
  0xb5   : > { %307 = vadd.xlane.f32.xlu1 %v306_v55  ;;  %316 = vadd.xlane.f32.xlu0 %v315_v58 }
  0xb9   : > { %319 = vadd.xlane.f32.xlu1 %v318_v59 }
 0x136   : > { %v299_v62 = vpop.xlane.xlu0 %298 }
 0x137   : > { %v321_v63 = vmul.f32 0.03125, %v299_v62 }
 0x139   : > { %v329_v0 = vadd.f32 1e-05, %v321_v63 }
 0x13a   : > { %v302_v1 = vpop.xlane.xlu1 %301  ;;  %v311_v2 = vpop.xlane.xlu0 %310 }
 0x13b   : > { %669 = vrsqrt.f32 %v329_v0  ;;  %v322_v3 = vmul.f32 0.03125, %v302_v1  ;;  %v325_v4 = vmul.f32 0.03125, %v311_v2 }
 0x13d   : > { %v330_v5 = vadd.f32 1e-05, %v322_v3  ;;  %v333_v6 = vadd.f32 1e-05, %v325_v4 }
 0x13e   : > { %v314_v7 = vpop.xlane.xlu1 %313  ;;  %v305_v8 = vpop.xlane.xlu0 %304 }
 0x13f   : > { %671 = vrsqrt.f32 %v330_v5  ;;  %v326_v9 = vmul.f32 0.03125, %v314_v7  ;;  %v323_v10 = vmul.f32 0.03125, %v305_v8 }
 0x140   : > { %673 = vrsqrt.f32 %v333_v6 }
 0x141   : > { %v334_v11 = vadd.f32 1e-05, %v326_v9  ;;  %v331_v12 = vadd.f32 1e-05, %v323_v10 }
 0x142   : > { %v308_v13 = vpop.xlane.xlu1 %307  ;;  %v317_v14 = vpop.xlane.xlu0 %316 }
 0x143   : > { %675 = vrsqrt.f32 %v334_v11  ;;  %v324_v15 = vmul.f32 0.03125, %v308_v13  ;;  %v327_v16 = vmul.f32 0.03125, %v317_v14 }
 0x144   : > { %677 = vrsqrt.f32 %v331_v12 }
 0x145   : > { %v670_v17 = vpop.eup %669  ;;  %v332_v18 = vadd.f32 1e-05, %v324_v15  ;;  %v335_v19 = vadd.f32 1e-05, %v327_v16 }
 0x146   : > { %v320_v20 = vpop.xlane.xlu1 %319  ;;  %v345_v21 = vmul.f32 %v670_v17, %v747_v24 }
 0x147   : > { %679 = vrsqrt.f32 %v332_v18  ;;  %v328_v22 = vmul.f32 0.03125, %v320_v20 }
 0x148   : > { %681 = vrsqrt.f32 %v335_v19  ;;  %v359_v30 = vmul.f32 %v591_v23, %v345_v21 }
 0x149   : > { %v672_v26 = vpop.eup %671  ;;  %v336_v27 = vadd.f32 1e-05, %v328_v22 }
 0x14a   : > { %v674_v28 = vpop.eup %673  ;;  %v346_v29 = vmul.f32 %v672_v26, %v755_v32  ;;  %v373_v37 = vadd.f32 %v592_v31, %v359_v30 }
 0x14b   : > { %683 = vrsqrt.f32 %v336_v27  ;;  %v349_v24 = vmul.f32 %v674_v28, %v749_v25 }
 0x14c   : > { %v360_v34 = vmul.f32 %v591_v23, %v346_v29 }
 0x14d   : > { %v676_v35 = vpop.eup %675  ;;  %v363_v40 = vmul.f32 %v591_v23, %v349_v24 }
 0x14e   : > { %v678_v36 = vpop.eup %677  ;;  %v374_v38 = vadd.f32 %v592_v31, %v360_v34  ;;  %v350_v39 = vmul.f32 %v676_v35, %v757_v33 }
 0x14f   : > { %v347_v41 = vmul.f32 %v678_v36, %v765_v42  ;;  %v377_v48 = vadd.f32 %v592_v31, %v363_v40 }
 0x150   : > { %v385_v44 = vpack.c.bf16 %v374_v38, %v373_v37  ;;  %v364_v32 = vmul.f32 %v591_v23, %v350_v39 }
 0x151   : > { %v680_v45 = vpop.eup %679  ;;  %v361_v49 = vmul.f32 %v591_v23, %v347_v41 }
 0x152   : > { %v682_v46 = vpop.eup %681  ;;  %v348_v47 = vmul.f32 %v680_v45, %v767_v43  ;;  %647 = vmatprep.mubr.msk.bf16.mxu0 %vm247_vm0, %v385_v44  ;;  %v378_v25 = vadd.f32 %v592_v31, %v364_v32 }
 0x153   : > { %v351_v50 = vmul.f32 %v682_v46, %v775_v52  ;;  %v375_v42 = vadd.f32 %v592_v31, %v361_v49  ;;  %v593_v52 = vld [vmem:[%s834_s4] ss:$0 sm:$0xff] }
 0x154   : > { %v387_v51 = vpack.c.bf16 %v378_v25, %v377_v48  ;;  %v362_v54 = vmul.f32 %v591_v23, %v348_v47 }
 0x155   : > { %v684_v55 = vpop.eup %683  ;;  %v365_v57 = vmul.f32 %v591_v23, %v351_v50 }
 0x156   : > { %v352_v33 = vmul.f32 %v684_v55, %v777_v53  ;;  %651 = vmatprep.mubr.msk.bf16.mxu1 %vm247_vm0, %v387_v51  ;;  %v376_v56 = vadd.f32 %v592_v31, %v362_v54 }
 0x157   : > { %v379_v59 = vadd.f32 %v592_v31, %v365_v57 }
 0x158   : > { %v386_v58 = vpack.c.bf16 %v376_v56, %v375_v42  ;;  %v366_v43 = vmul.f32 %v591_v23, %v352_v33 }
 0x15a   : > { %648 = vmatmul.mubr.msk.bf16.vlgmr.msra.gmra.mrb[0].mxu0 %vm247_vm0, %v386_v58  ;;  %v380_v60 = vadd.f32 %v592_v31, %v366_v43 }
 0x15c   : > { %v388_v61 = vpack.c.bf16 %v380_v60, %v379_v59 }
 0x15e   : > { %652 = vmatmul.mubr.msk.bf16.vlgmr.msra.gmra.mrb[0].mxu1 %vm247_vm0, %v388_v61 }
 0x22d   : > { %v649_v53 = vpop.f32.mrb[0].mxu0 }
 0x22e   : > { %v463_v62 = vadd.f32 %v649_v53, %v593_v52  ;;  %v454_v63 = vpop.f32.mrb[1].mxu0 }
 0x22f   : > { %v455_v0 = vadd.f32 %v593_v52, %v454_v63  ;;  %v650_v1 = vpop.f32.mrb[2].mxu0 }
 0x230   : > { %v612_v2 = vpack.c.bf16 %v463_v62, %v463_v62  ;;  %v466_v3 = vadd.f32 %v650_v1, %v593_v52  ;;  %v457_v4 = vpop.f32.mrb[3].mxu0 }
 0x231   : > { %v610_v5 = vpack.c.bf16 %v455_v0, %v455_v0  ;;  %v458_v6 = vadd.f32 %v593_v52, %v457_v4  ;;  %v653_v7 = vpop.f32.mrb[0].mxu1 }
 0x232   : > { %520 = vst.msk [vmem:[%s226_s12 + $0x8] sm:$0xf] %vm517_vm1, %v612_v2  ;;  %v613_v8 = vpack.c.bf16 %v466_v3, %v466_v3  ;;  %v479_v9 = vadd.f32 %v653_v7, %v593_v52  ;;  %v470_v10 = vpop.f32.mrb[1].mxu1 }
 0x233   : > { %518 = vst.msk [vmem:[%s226_s12] sm:$0xf] %vm517_vm1, %v610_v5  ;;  %v611_v11 = vpack.c.bf16 %v458_v6, %v458_v6  ;;  %v471_v12 = vadd.f32 %v593_v52, %v470_v10  ;;  %v654_v13 = vpop.f32.mrb[2].mxu1 }
 0x234   : > { %521 = vst.msk [vmem:[%s226_s12 + $0xc] sm:$0xf] %vm517_vm1, %v613_v8  ;;  %v616_v14 = vpack.c.bf16 %v479_v9, %v479_v9  ;;  %v482_v15 = vadd.f32 %v654_v13, %v593_v52  ;;  %v473_v16 = vpop.f32.mrb[3].mxu1 }
 0x235   : > { %519 = vst.msk [vmem:[%s226_s12 + $0x4] sm:$0xf] %vm517_vm1, %v611_v11  ;;  %v614_v17 = vpack.c.bf16 %v471_v12, %v471_v12  ;;  %v474_v18 = vadd.f32 %v593_v52, %v473_v16 }
 0x236   : > { %524 = vst.msk [vmem:[%s226_s12 + $0x18] sm:$0xf] %vm517_vm1, %v616_v14  ;;  %v617_v19 = vpack.c.bf16 %v482_v15, %v482_v15 }
 0x237   : > { %522 = vst.msk [vmem:[%s226_s12 + $0x10] sm:$0xf] %vm517_vm1, %v614_v17  ;;  %v615_v20 = vpack.c.bf16 %v474_v18, %v474_v18 }
 0x238   : > { %525 = vst.msk [vmem:[%s226_s12 + $0x1c] sm:$0xf] %vm517_vm1, %v617_v19 }
 0x239   : > { %523 = vst.msk [vmem:[%s226_s12 + $0x14] sm:$0xf] %vm517_vm1, %v615_v20 }
 0x23a PF: > { %s15_s18 = sadd.s32 1, %s691_s18  }
 0x23b   : > { %p12_p4 = scmp.ge.s32.totalorder %s15_s18, 4  }
 0x23d   :  { %14 = sbr.rel (!%p12_p4) target bundleno = 1 (0x1), region = 70 }

// kernel: swin_forward.15
= control target key start
LH: loop header
LB: loop body
LE: loop exit
PB: predicated region body
PF: predicated region fallthrough
CT: control target
= control target key end

     0   :  { %s712_s18 = smov 0   ;;  %s829_s0 = inlined_call_operand.vmem [shape: f32[128,48], index: 0, kind: input, shape index: {}]   ;;  %s830_s1 = inlined_call_operand.vmem [shape: bf16[48,32], index: 1, kind: input, shape index: {}]   ;;  %s831_s2 = inlined_call_operand.vmem [shape: f32[1,32], index: 2, kind: input, shape index: {}]   ;;  %s832_s3 = inlined_call_operand.vmem [shape: f32[1,32], index: 3, kind: input, shape index: {}]   ;;  %s833_s4 = inlined_call_operand.vmem [shape: f32[1,32], index: 4, kind: input, shape index: {}]   ;;  %s834_s5 = inlined_call_operand.vmem [shape: bf16[128,32], index: 5, kind: output, shape index: {}]  }
   0x1 LB: > { %s583_s19 = sadd.s32 4294967295, %s680_s18   ;;  %p587_p0 = scmp.ge.s32.totalorder %s680_s18, 1  ;;  %s680_s18 = sphi %s712_s18, %s15_s18  }
   0x2   : > { %p188_p1 = scmp.lt.s32.totalorder %s680_s18, 3 }
   0x4   : > { %p189_p2 = pnand %p587_p0, %p188_p1 }
   0x5   : > { %v655_v0 = vld [vmem:[%s830_s1] sm:$0xff] (!%p189_p2)   ;;  %s588_s22 = sshll.u32 (!%p189_p2), %s583_s19, 3  ;;  %v656_v1 = vld [vmem:[%s830_s1 + $0x8] sm:$0xff] (!%p189_p2)   ;;  %v657_v2 = vld [vmem:[%s830_s1 + $0x10] sm:$0xff] (!%p189_p2)   ;;  %vm272_vm0 = vcmask (!%p189_p2), 392192   ;;  %vm352_vm1 = vcmask (!%p189_p2), 261120  }
   0x6   : > { %192 = sbr.rel (%p189_p2) target bundleno = 567 (0x237), region = 40  ;;  %p217_p3 = scmp.lt.s32.totalorder (!%p189_p2), %s588_s22, 15  ;;  %627 = vmatprep.subr.bf16.mxu0 (!%p189_p2), %v655_v0  ;;  %641 = vmatprep.subr.bf16.mxu1 (!%p189_p2), %v655_v0  ;;  %v592_v15 = vld [vmem:[%s831_s2] ss:$0 sm:$0xff] (!%p189_p2)  ;;  %vm518_vm2 = vcmask (!%p189_p2), 257024  }
   0x7   : > { %628 = vmatpush3.bf16.msra.mxu0 (!%p189_p2), %v655_v0  ;;  %644 = vmatpush3.bf16.msra.mxu1 (!%p189_p2), %v655_v0 }
   0x8   : > { %629 = vmatprep.subr.bf16.mxu0 (!%p189_p2), %v656_v1  ;;  %642 = vmatprep.subr.bf16.mxu1 (!%p189_p2), %v656_v1 }
   0xb   : > { %630 = vmatpush3.bf16.msra.mxu0 (!%p189_p2), %v656_v1  ;;  %645 = vmatpush3.bf16.msra.mxu1 (!%p189_p2), %v656_v1 }
   0xc   : > { %631 = vmatprep.subr.bf16.mxu0 (!%p189_p2), %v657_v2  ;;  %643 = vmatprep.subr.bf16.mxu1 (!%p189_p2), %v657_v2 }
   0xd   : > { %s836_s22 = smov (!%p217_p3, %s588_s22), 15 }
   0xe   : > { %s589_s27 = sshll.u32 %s836_s22, 3  ;;  %s591_s12 = sshll.u32 %s836_s22, 2 }
   0xf   : > { %s220_s30 = scalar_lea.vmem %s829_s0, %s589_s27  ;;  %632 = vmatpush3.bf16.msra.mxu0 %v657_v2  ;;  %646 = vmatpush3.bf16.msra.mxu1 %v657_v2  ;;  %s802_s15 = scalar_lea.vmem %s834_s5, %s591_s12 }
  0x10   : > { %v229_v3 = vld [vmem:[%s220_s30] sm:$0xff]  ;;  %v230_v4 = vld [vmem:[%s220_s30 + $0x8] sm:$0xff]  ;;  %v231_v5 = vld [vmem:[%s220_s30 + $0x10] sm:$0xff] }
  0x11   : > { %v243_v6 = vpack.c.bf16 %v230_v4, %v229_v3  ;;  %v232_v7 = vld [vmem:[%s220_s30 + $0x18] sm:$0xff]  ;;  %v233_v8 = vld [vmem:[%s220_s30 + $0x20] sm:$0xff]  ;;  %v234_v9 = vld [vmem:[%s220_s30 + $0x28] sm:$0xff] }
  0x12   : > { %v245_v10 = vpack.c.bf16 %v234_v9, %v233_v8  ;;  %v235_v11 = vld [vmem:[%s220_s30 + $0x30] sm:$0xff]  ;;  %v236_v12 = vld [vmem:[%s220_s30 + $0x38] sm:$0xff]  ;;  %v244_v13 = vpack.c.bf16 %v232_v7, %v231_v5 }
  0x13   : > { %633 = vmatprep.mubr.msk.bf16.mxu0 %vm272_vm0, %v243_v6  ;;  %v246_v14 = vpack.c.bf16 %v236_v12, %v235_v11 }
  0x14   : > { %637 = vmatprep.mubr.msk.bf16.mxu1 %vm272_vm0, %v245_v10  ;;  %634 = vmatmul.mubr.msk.bf16.vlgmr.msra.gmra.mrb[0].mxu0 %vm272_vm0, %v244_v13 }
  0x15   : > { %638 = vmatmul.mubr.msk.bf16.vlgmr.msra.gmra.mrb[0].mxu1 %vm272_vm0, %v246_v14 }
  0xe7   : > { %v635_v16 = vpop.f32.mrb[0].mxu0 }
  0xe8   : > { %v639_v17 = vpop.f32.mrb[0].mxu1  ;;  %v328_v18 = vadd.f32 %v635_v16, %v592_v15  ;;  %v319_v19 = vpop.f32.mrb[1].mxu0 }
  0xe9   : > { %v335_v20 = vpop.f32.mrb[1].mxu1  ;;  %v320_v21 = vadd.f32 %v592_v15, %v319_v19  ;;  %v636_v22 = vpop.f32.mrb[2].mxu0  ;;  %v344_v36 = vadd.f32 %v639_v17, %v592_v15 }
  0xea   : > { %v336_v23 = vadd.f32 %v592_v15, %v335_v20  ;;  %v640_v24 = vpop.f32.mrb[2].mxu1  ;;  %v331_v25 = vadd.f32 %v636_v22, %v592_v15  ;;  %v322_v26 = vpop.f32.mrb[3].mxu0  ;;  %v359_v28 = vsel %vm352_vm1, %v328_v18, 0.0 }
  0xeb   : > { %v338_v27 = vpop.f32.mrb[3].mxu1  ;;  %360 = vadd.xlane.f32.xlu1 %v359_v28  ;;  %v353_v29 = vsel %vm352_vm1, %v320_v21, 0.0  ;;  %v323_v33 = vadd.f32 %v592_v15, %v322_v26  ;;  %v347_v34 = vadd.f32 %v640_v24, %v592_v15  ;;  %v371_v39 = vsel %vm352_vm1, %v344_v36, 0.0 }
  0xec   : > { %354 = vadd.xlane.f32.xlu0 %v353_v29  ;;  %v365_v30 = vsel %vm352_vm1, %v336_v23, 0.0  ;;  %v339_v31 = vadd.f32 %v592_v15, %v338_v27  ;;  %v362_v32 = vsel %vm352_vm1, %v331_v25, 0.0 }
  0xed   : > { %v356_v37 = vsel %vm352_vm1, %v323_v33, 0.0  ;;  %v374_v38 = vsel %vm352_vm1, %v347_v34, 0.0 }
  0xee   : > { %v368_v35 = vsel %vm352_vm1, %v339_v31, 0.0 }
  0xef   : > { %363 = vadd.xlane.f32.xlu1 %v362_v32 }
  0xf0   : > { %366 = vadd.xlane.f32.xlu0 %v365_v30 }
  0xf3   : > { %369 = vadd.xlane.f32.xlu1 %v368_v35 }
  0xf4   : > { %357 = vadd.xlane.f32.xlu0 %v356_v37 }
  0xf7   : > { %375 = vadd.xlane.f32.xlu1 %v374_v38 }
  0xf8   : > { %372 = vadd.xlane.f32.xlu0 %v371_v39 }
 0x178   : > { %v361_v40 = vpop.xlane.xlu1 %360 }
 0x179   : > { %v380_v41 = vmul.f32 0.03125, %v361_v40  ;;  %v355_v42 = vpop.xlane.xlu0 %354  ;;  %v601_v40 = vld [vmem:[%s833_s4] ss:$0 sm:$0xff] }
 0x17a   : > { %v378_v43 = vmul.f32 0.03125, %v355_v42 }
 0x17b   : > { %v750_v44 = vsub.f32 %v328_v18, %v380_v41 }
 0x17c   : > { %v752_v45 = vsub.f32 %v320_v21, %v378_v43  ;;  %v364_v46 = vpop.xlane.xlu1 %363 }
 0x17d   : > { %v381_v47 = vmul.f32 0.03125, %v364_v46  ;;  %v367_v48 = vpop.xlane.xlu0 %366  ;;  %v396_v49 = vmul.f32 %v750_v44, %v750_v44 }
 0x17e   : > { %v382_v50 = vmul.f32 0.03125, %v367_v48  ;;  %v394_v53 = vmul.f32 %v752_v45, %v752_v45 }
 0x17f   : > { %v756_v51 = vsub.f32 %v331_v25, %v381_v47  ;;  %v408_v52 = vsel %vm352_vm1, %v396_v49, 0.0 }
 0x180   : > { %v761_v54 = vsub.f32 %v336_v23, %v382_v50  ;;  %v370_v55 = vpop.xlane.xlu1 %369  ;;  %409 = vadd.xlane.f32.xlu0 %v408_v52  ;;  %v402_v61 = vsel %vm352_vm1, %v394_v53, 0.0 }
 0x181   : > { %v383_v56 = vmul.f32 0.03125, %v370_v55  ;;  %v358_v57 = vpop.xlane.xlu0 %357  ;;  %v397_v58 = vmul.f32 %v756_v51, %v756_v51 }
 0x182   : > { %v379_v59 = vmul.f32 0.03125, %v358_v57  ;;  %v398_v62 = vmul.f32 %v761_v54, %v761_v54 }
 0x183   : > { %v411_v60 = vsel %vm352_vm1, %v397_v58, 0.0  ;;  %v769_v63 = vsub.f32 %v339_v31, %v383_v56 }
 0x184   : > { %v771_v0 = vsub.f32 %v323_v33, %v379_v59  ;;  %412 = vadd.xlane.f32.xlu1 %v411_v60  ;;  %v376_v1 = vpop.xlane.xlu1 %375  ;;  %403 = vadd.xlane.f32.xlu0 %v402_v61  ;;  %v414_v6 = vsel %vm352_vm1, %v398_v62, 0.0 }
 0x185   : > { %v385_v2 = vmul.f32 0.03125, %v376_v1  ;;  %v373_v3 = vpop.xlane.xlu0 %372  ;;  %v399_v10 = vmul.f32 %v769_v63, %v769_v63 }
 0x186   : > { %v384_v4 = vmul.f32 0.03125, %v373_v3  ;;  %v395_v5 = vmul.f32 %v771_v0, %v771_v0 }
 0x187   : > { %v776_v7 = vsub.f32 %v347_v34, %v385_v2  ;;  %v417_v12 = vsel %vm352_vm1, %v399_v10, 0.0 }
 0x188   : > { %v778_v8 = vsub.f32 %v344_v36, %v384_v4  ;;  %415 = vadd.xlane.f32.xlu0 %v414_v6  ;;  %v405_v9 = vsel %vm352_vm1, %v395_v5, 0.0  ;;  %v600_v36 = vld [vmem:[%s832_s3] ss:$0 sm:$0xff] }
 0x189   : > { %406 = vadd.xlane.f32.xlu1 %v405_v9  ;;  %v401_v14 = vmul.f32 %v776_v7, %v776_v7 }
 0x18a   : > { %v400_v11 = vmul.f32 %v778_v8, %v778_v8 }
 0x18b   : > { %v423_v15 = vsel %vm352_vm1, %v401_v14, 0.0 }
 0x18c   : > { %v420_v13 = vsel %vm352_vm1, %v400_v11, 0.0 }
 0x18d   : > { %418 = vadd.xlane.f32.xlu1 %v417_v12  ;;  %421 = vadd.xlane.f32.xlu0 %v420_v13 }
 0x191   : > { %424 = vadd.xlane.f32.xlu1 %v423_v15 }
 0x20d   : > { %v410_v16 = vpop.xlane.xlu0 %409 }
 0x20e   : > { %v428_v17 = vmul.f32 0.03125, %v410_v16 }
 0x210   : > { %v436_v18 = vadd.f32 1e-05, %v428_v17 }
 0x211   : > { %v413_v19 = vpop.xlane.xlu1 %412  ;;  %v404_v20 = vpop.xlane.xlu0 %403 }
 0x212   : > { %658 = vrsqrt.f32 %v436_v18  ;;  %v429_v21 = vmul.f32 0.03125, %v413_v19  ;;  %v426_v22 = vmul.f32 0.03125, %v404_v20 }
 0x214   : > { %v437_v23 = vadd.f32 1e-05, %v429_v21  ;;  %v434_v24 = vadd.f32 1e-05, %v426_v22 }
 0x215   : > { %v416_v25 = vpop.xlane.xlu0 %415 }
 0x216   : > { %660 = vrsqrt.f32 %v437_v23  ;;  %v430_v26 = vmul.f32 0.03125, %v416_v25  ;;  %v407_v27 = vpop.xlane.xlu1 %406 }
 0x217   : > { %662 = vrsqrt.f32 %v434_v24  ;;  %v427_v28 = vmul.f32 0.03125, %v407_v27 }
 0x218   : > { %v438_v29 = vadd.f32 1e-05, %v430_v26 }
 0x219   : > { %v435_v30 = vadd.f32 1e-05, %v427_v28 }
 0x21a   : > { %664 = vrsqrt.f32 %v438_v29  ;;  %v419_v31 = vpop.xlane.xlu1 %418  ;;  %v422_v32 = vpop.xlane.xlu0 %421 }
 0x21b   : > { %666 = vrsqrt.f32 %v435_v30  ;;  %v431_v33 = vmul.f32 0.03125, %v419_v31  ;;  %v432_v34 = vmul.f32 0.03125, %v422_v32 }
 0x21c   : > { %v659_v35 = vpop.eup %658 }
 0x21d   : > { %v452_v37 = vmul.f32 %v659_v35, %v750_v44  ;;  %v439_v38 = vadd.f32 1e-05, %v431_v33  ;;  %v440_v39 = vadd.f32 1e-05, %v432_v34 }
 0x21e   : > { %v425_v41 = vpop.xlane.xlu1 %424 }
 0x21f   : > { %v466_v42 = vmul.f32 %v600_v36, %v452_v37  ;;  %668 = vrsqrt.f32 %v439_v38  ;;  %v433_v43 = vmul.f32 0.03125, %v425_v41 }
 0x220   : > { %v661_v46 = vpop.eup %660  ;;  %670 = vrsqrt.f32 %v440_v39 }
 0x221   : > { %v663_v47 = vpop.eup %662  ;;  %v480_v48 = vadd.f32 %v601_v40, %v466_v42  ;;  %v453_v49 = vmul.f32 %v661_v46, %v756_v51  ;;  %v441_v50 = vadd.f32 1e-05, %v433_v43 }
 0x222   : > { %v450_v44 = vmul.f32 %v663_v47, %v752_v45 }
 0x223   : > { %v614_v52 = vpack.c.bf16 %v480_v48, %v480_v48  ;;  %v467_v53 = vmul.f32 %v600_v36, %v453_v49  ;;  %672 = vrsqrt.f32 %v441_v50 }
 0x224   : > { %v665_v55 = vpop.eup %664  ;;  %v464_v56 = vmul.f32 %v600_v36, %v450_v44 }
 0x225   : > { %v667_v57 = vpop.eup %666  ;;  %521 = vst.msk [vmem:[%s802_s15 + $0x8] sm:$0xf] %vm518_vm2, %v614_v52  ;;  %v481_v51 = vadd.f32 %v601_v40, %v467_v53  ;;  %v454_v58 = vmul.f32 %v665_v55, %v761_v54 }
 0x226   : > { %v478_v59 = vadd.f32 %v601_v40, %v464_v56  ;;  %v451_v60 = vmul.f32 %v667_v57, %v771_v0 }
 0x227   : > { %v615_v61 = vpack.c.bf16 %v481_v51, %v481_v51  ;;  %v468_v62 = vmul.f32 %v600_v36, %v454_v58 }
 0x228   : > { %v612_v45 = vpack.c.bf16 %v478_v59, %v478_v59  ;;  %v465_v1 = vmul.f32 %v600_v36, %v451_v60 }
 0x229   : > { %v669_v2 = vpop.eup %668  ;;  %522 = vst.msk [vmem:[%s802_s15 + $0xc] sm:$0xf] %vm518_vm2, %v615_v61  ;;  %v482_v3 = vadd.f32 %v601_v40, %v468_v62 }
 0x22a   : > { %v671_v4 = vpop.eup %670  ;;  %519 = vst.msk [vmem:[%s802_s15] sm:$0xf] %vm518_vm2, %v612_v45  ;;  %v479_v5 = vadd.f32 %v601_v40, %v465_v1  ;;  %v455_v54 = vmul.f32 %v669_v2, %v769_v63 }
 0x22b   : > { %v616_v6 = vpack.c.bf16 %v482_v3, %v482_v3  ;;  %v456_v0 = vmul.f32 %v671_v4, %v778_v8 }
 0x22c   : > { %v613_v9 = vpack.c.bf16 %v479_v5, %v479_v5  ;;  %v469_v10 = vmul.f32 %v600_v36, %v455_v54 }
 0x22d   : > { %v673_v11 = vpop.eup %672  ;;  %523 = vst.msk [vmem:[%s802_s15 + $0x10] sm:$0xf] %vm518_vm2, %v616_v6  ;;  %v470_v12 = vmul.f32 %v600_v36, %v456_v0 }
 0x22e   : > { %520 = vst.msk [vmem:[%s802_s15 + $0x4] sm:$0xf] %vm518_vm2, %v613_v9  ;;  %v483_v13 = vadd.f32 %v601_v40, %v469_v10  ;;  %v457_v14 = vmul.f32 %v673_v11, %v776_v7 }
 0x22f   : > { %v484_v15 = vadd.f32 %v601_v40, %v470_v12 }
 0x230   : > { %v617_v16 = vpack.c.bf16 %v483_v13, %v483_v13  ;;  %v471_v17 = vmul.f32 %v600_v36, %v457_v14 }
 0x231   : > { %v618_v63 = vpack.c.bf16 %v484_v15, %v484_v15 }
 0x232   : > { %524 = vst.msk [vmem:[%s802_s15 + $0x14] sm:$0xf] %vm518_vm2, %v617_v16  ;;  %v485_v18 = vadd.f32 %v601_v40, %v471_v17 }
 0x233   : > { %525 = vst.msk [vmem:[%s802_s15 + $0x18] sm:$0xf] %vm518_vm2, %v618_v63 }
 0x234   : > { %v619_v8 = vpack.c.bf16 %v485_v18, %v485_v18 }
 0x236   : > { %526 = vst.msk [vmem:[%s802_s15 + $0x1c] sm:$0xf] %vm518_vm2, %v619_v8 }
 0x237 PF: > { %s15_s18 = sadd.s32 1, %s680_s18  }
 0x238   : > { %p12_p4 = scmp.ge.s32.totalorder %s15_s18, 4  }
 0x23a   :  { %14 = sbr.rel (!%p12_p4) target bundleno = 1 (0x1), region = 70 }

// kernel: swin_forward.18
= control target key start
LH: loop header
LB: loop body
LE: loop exit
PB: predicated region body
PF: predicated region fallthrough
CT: control target
= control target key end

     0   :  { %s1159_s27 = smov 0   ;;  %s1344_s0 = inlined_call_operand.vmem [shape: bf16[128,32], index: 0, kind: input, shape index: {}]   ;;  %s1345_s1 = inlined_call_operand.vmem [shape: bf16[128,32], index: 1, kind: input, shape index: {}]   ;;  %s1346_s2 = inlined_call_operand.vmem [shape: f32[1,32], index: 2, kind: input, shape index: {}]   ;;  %s1347_s3 = inlined_call_operand.vmem [shape: f32[1,32], index: 3, kind: input, shape index: {}]   ;;  %s1348_s4 = inlined_call_operand.vmem [shape: bf16[32,128], index: 4, kind: input, shape index: {}]   ;;  %s1349_s5 = inlined_call_operand.vmem [shape: f32[1,128], index: 5, kind: input, shape index: {}]   ;;  %s1350_s6 = inlined_call_operand.vmem [shape: bf16[128,32], index: 6, kind: input, shape index: {}]   ;;  %s1351_s7 = inlined_call_operand.vmem [shape: f32[1,32], index: 7, kind: input, shape index: {}]   ;;  %s1352_s8 = inlined_call_operand.vmem [shape: bf16[128,32], index: 8, kind: output, shape index: {}]  }
   0x1 LB: > { %s917_s28 = sadd.s32 4294967295, %s1112_s27   ;;  %p921_p0 = scmp.ge.s32.totalorder %s1112_s27, 1  ;;  %s1112_s27 = sphi %s1159_s27, %s18_s27  }
   0x2   : > { %p274_p1 = scmp.lt.s32.totalorder %s1112_s27, 3 }
   0x4   : > { %p275_p2 = pnand %p921_p0, %p274_p1 }
   0x5   : > { %s922_s29 = sshll.u32 (!%p275_p2), %s917_s28, 3  ;;  %vm374_vm0 = vcmask (!%p275_p2), 261120   ;;  %vm840_vm1 = vcmask (!%p275_p2), 257024  }
   0x6   : > { %278 = sbr.rel (%p275_p2) target bundleno = 812 (0x32c), region = 52  ;;  %p314_p3 = scmp.lt.s32.totalorder (!%p275_p2), %s922_s29, 15 }
   0xd   : > { %s1354_s29 = smov (!%p314_p3, %s922_s29), 15 }
   0xe   : > { %s1167_s30 = sshll.u32 %s1354_s29, 2 }
   0xf   : > { %s317_s11 = scalar_lea.vmem %s1344_s0, %s1167_s30  ;;  %s323_s14 = scalar_lea.vmem %s1345_s1, %s1167_s30 }
  0x10   : > { %v965_v0 = vld [vmem:[%s317_s11] sm:$0xff]   ;;  %v996_v2 = vld [vmem:[%s317_s11 + $0x8] sm:$0xff]   ;;  %v997_v8 = vld [vmem:[%s317_s11 + $0x10] sm:$0xff]   ;;  %s1318_s25 = scalar_lea.vmem %s1352_s8, %s1167_s30 }
  0x11   : > { %v981_v1 = vld [vmem:[%s323_s14] sm:$0xff]   ;;  %v966_v3 = vunpack.c.l.bf16 %v965_v0  ;;  %v970_v5 = vunpack.c.l.bf16 %v996_v2  ;;  %v999_v6 = vld [vmem:[%s323_s14 + $0x8] sm:$0xff]   ;;  %v967_v7 = vunpack.c.h.bf16 %v965_v0  ;;  %v1000_v9 = vld [vmem:[%s323_s14 + $0x10] sm:$0xff]   ;;  %v971_v12 = vunpack.c.h.bf16 %v996_v2 }
  0x12   : > { %v982_v4 = vunpack.c.l.bf16 %v981_v1  ;;  %v986_v10 = vunpack.c.l.bf16 %v999_v6  ;;  %v983_v11 = vunpack.c.h.bf16 %v981_v1  ;;  %v987_v13 = vunpack.c.h.bf16 %v999_v6  ;;  %v998_v22 = vld [vmem:[%s317_s11 + $0x18] sm:$0xff]  }
  0x13   : > { %v974_v15 = vunpack.c.l.bf16 %v997_v8  ;;  %v990_v16 = vunpack.c.l.bf16 %v1000_v9  ;;  %v975_v17 = vunpack.c.h.bf16 %v997_v8  ;;  %v991_v21 = vunpack.c.h.bf16 %v1000_v9  ;;  %v1001_v23 = vld [vmem:[%s323_s14 + $0x18] sm:$0xff]  }
  0x14   : > { %v1177_v14 = vadd.f32 %v982_v4, %v966_v3  ;;  %v1179_v18 = vadd.f32 %v986_v10, %v970_v5  ;;  %v1181_v19 = vadd.f32 %v983_v11, %v967_v7  ;;  %v1183_v20 = vadd.f32 %v987_v13, %v971_v12 }
  0x15   : > { %v1191_v27 = vadd.f32 %v990_v16, %v974_v15  ;;  %v978_v28 = vunpack.c.l.bf16 %v998_v22  ;;  %v994_v29 = vunpack.c.l.bf16 %v1001_v23  ;;  %v1195_v31 = vadd.f32 %v991_v21, %v975_v17  ;;  %v1064_v17 = vld [vmem:[%s1348_s4] sm:$0xff]   ;;  %v1065_v21 = vld [vmem:[%s1348_s4 + $0x8] sm:$0xff]  }
  0x16   : > { %v375_v24 = vsel %vm374_vm0, %v1177_v14, 0.0  ;;  %v381_v25 = vsel %vm374_vm0, %v1179_v18, 0.0  ;;  %v378_v26 = vsel %vm374_vm0, %v1181_v19, 0.0  ;;  %v384_v30 = vsel %vm374_vm0, %v1183_v20, 0.0  ;;  %1020 = vmatprep.subr.bf16.mxu0 %v1064_v17 }
  0x17   : > { %376 = vadd.xlane.f32.xlu0 %v375_v24  ;;  %382 = vadd.xlane.f32.xlu1 %v381_v25  ;;  %v979_v32 = vunpack.c.h.bf16 %v998_v22  ;;  %v995_v33 = vunpack.c.h.bf16 %v1001_v23  ;;  %v387_v34 = vsel %vm374_vm0, %v1191_v27, 0.0  ;;  %v1199_v35 = vadd.f32 %v994_v29, %v978_v28  ;;  %v1066_v22 = vld [vmem:[%s1350_s6] sm:$0xff]   ;;  %v1067_v23 = vld [vmem:[%s1350_s6 + $0x8] sm:$0xff]  }
  0x18   : > { %v390_v36 = vsel %vm374_vm0, %v1195_v31, 0.0  ;;  %1021 = vmatpush3.bf16.msra.mxu0 %v1064_v17  ;;  %1032 = vmatprep.subr.bf16.mxu1 %v1066_v22 }
  0x19   : > { %v1203_v37 = vadd.f32 %v995_v33, %v979_v32  ;;  %v393_v38 = vsel %vm374_vm0, %v1199_v35, 0.0  ;;  %1022 = vmatprep.subr.bf16.mxu0 %v1065_v21  ;;  %1033 = vmatpush3.bf16.msra.mxu1 %v1066_v22 }
  0x1a   : > { %1034 = vmatprep.subr.bf16.mxu1 %v1067_v23 }
  0x1b   : > { %379 = vadd.xlane.f32.xlu0 %v378_v26  ;;  %385 = vadd.xlane.f32.xlu1 %v384_v30  ;;  %v396_v39 = vsel %vm374_vm0, %v1203_v37, 0.0 }
  0x1c   : > { %1023 = vmatpush3.bf16.msra.mxu0 %v1065_v21 }
  0x1d   : > { %1035 = vmatpush3.bf16.msra.mxu1 %v1067_v23 }
  0x1f   : > { %388 = vadd.xlane.f32.xlu0 %v387_v34  ;;  %391 = vadd.xlane.f32.xlu1 %v390_v36 }
  0x23   : > { %394 = vadd.xlane.f32.xlu0 %v393_v38  ;;  %397 = vadd.xlane.f32.xlu1 %v396_v39 }
  0xa4   : > { %v377_v40 = vpop.xlane.xlu0 %376  ;;  %v383_v42 = vpop.xlane.xlu1 %382 }
  0xa5   : > { %v400_v41 = vmul.f32 0.03125, %v377_v40  ;;  %v402_v43 = vmul.f32 0.03125, %v383_v42 }
  0xa7   : > { %v1210_v44 = vsub.f32 %v1177_v14, %v400_v41  ;;  %v1213_v45 = vsub.f32 %v1179_v18, %v402_v43 }
  0xa8   : > { %v380_v46 = vpop.xlane.xlu0 %379  ;;  %v386_v48 = vpop.xlane.xlu1 %385 }
  0xa9   : > { %v401_v47 = vmul.f32 0.03125, %v380_v46  ;;  %v416_v49 = vmul.f32 %v1210_v44, %v1210_v44  ;;  %v403_v50 = vmul.f32 0.03125, %v386_v48  ;;  %v418_v51 = vmul.f32 %v1213_v45, %v1213_v45 }
  0xab   : > { %v1220_v52 = vsub.f32 %v1181_v19, %v401_v47  ;;  %v424_v53 = vsel %vm374_vm0, %v416_v49, 0.0  ;;  %v1224_v54 = vsub.f32 %v1183_v20, %v403_v50  ;;  %v430_v58 = vsel %vm374_vm0, %v418_v51, 0.0 }
  0xac   : > { %425 = vadd.xlane.f32.xlu0 %v424_v53  ;;  %v389_v55 = vpop.xlane.xlu0 %388  ;;  %v392_v57 = vpop.xlane.xlu1 %391 }
  0xad   : > { %v404_v56 = vmul.f32 0.03125, %v389_v55  ;;  %v417_v59 = vmul.f32 %v1220_v52, %v1220_v52  ;;  %v405_v60 = vmul.f32 0.03125, %v392_v57  ;;  %v419_v61 = vmul.f32 %v1224_v54, %v1224_v54  ;;  %v928_v57 = vld [vmem:[%s1346_s2] ss:$0 sm:$0xff] }
  0xaf   : > { %v1232_v62 = vsub.f32 %v1191_v27, %v404_v56  ;;  %v427_v63 = vsel %vm374_vm0, %v417_v59, 0.0  ;;  %v1236_v0 = vsub.f32 %v1195_v31, %v405_v60  ;;  %v433_v4 = vsel %vm374_vm0, %v419_v61, 0.0 }
  0xb0   : > { %431 = vadd.xlane.f32.xlu0 %v430_v58  ;;  %428 = vadd.xlane.f32.xlu1 %v427_v63  ;;  %v395_v1 = vpop.xlane.xlu0 %394  ;;  %v398_v3 = vpop.xlane.xlu1 %397 }
  0xb1   : > { %v406_v2 = vmul.f32 0.03125, %v395_v1  ;;  %v420_v5 = vmul.f32 %v1232_v62, %v1232_v62  ;;  %v407_v6 = vmul.f32 0.03125, %v398_v3  ;;  %v421_v7 = vmul.f32 %v1236_v0, %v1236_v0 }
  0xb3   : > { %v1244_v8 = vsub.f32 %v1199_v35, %v406_v2  ;;  %v436_v9 = vsel %vm374_vm0, %v420_v5, 0.0  ;;  %v1248_v10 = vsub.f32 %v1203_v37, %v407_v6  ;;  %v439_v11 = vsel %vm374_vm0, %v421_v7, 0.0 }
  0xb4   : > { %434 = vadd.xlane.f32.xlu1 %v433_v4  ;;  %437 = vadd.xlane.f32.xlu0 %v436_v9 }
  0xb5   : > { %v422_v12 = vmul.f32 %v1244_v8, %v1244_v8  ;;  %v423_v13 = vmul.f32 %v1248_v10, %v1248_v10 }
  0xb7   : > { %v442_v15 = vsel %vm374_vm0, %v422_v12, 0.0  ;;  %v445_v16 = vsel %vm374_vm0, %v423_v13, 0.0 }
  0xb8   : > { %440 = vadd.xlane.f32.xlu1 %v439_v11  ;;  %443 = vadd.xlane.f32.xlu0 %v442_v15 }
  0xbc   : > { %446 = vadd.xlane.f32.xlu1 %v445_v16 }
 0x139   : > { %v426_v24 = vpop.xlane.xlu0 %425 }
 0x13a   : > { %v448_v25 = vmul.f32 0.03125, %v426_v24 }
 0x13c   : > { %v456_v26 = vadd.f32 1e-05, %v448_v25 }
 0x13d   : > { %v429_v28 = vpop.xlane.xlu1 %428  ;;  %v432_v29 = vpop.xlane.xlu0 %431 }
 0x13e   : > { %1074 = vrsqrt.f32 %v456_v26  ;;  %v449_v30 = vmul.f32 0.03125, %v429_v28  ;;  %v450_v32 = vmul.f32 0.03125, %v432_v29 }
 0x140   : > { %v457_v33 = vadd.f32 1e-05, %v449_v30  ;;  %v458_v34 = vadd.f32 1e-05, %v450_v32 }
 0x141   : > { %v435_v36 = vpop.xlane.xlu1 %434  ;;  %v438_v38 = vpop.xlane.xlu0 %437 }
 0x142   : > { %1076 = vrsqrt.f32 %v457_v33  ;;  %v451_v39 = vmul.f32 0.03125, %v435_v36  ;;  %v452_v40 = vmul.f32 0.03125, %v438_v38  ;;  %v1071_v36 = vld [vmem:[%s1350_s6 + $0x28] sm:$0xff]   ;;  %v1072_v38 = vld [vmem:[%s1350_s6 + $0x30] sm:$0xff]  }
 0x143   : > { %1078 = vrsqrt.f32 %v458_v34  ;;  %v1070_v34 = vld [vmem:[%s1350_s6 + $0x20] sm:$0xff]  }
 0x144   : > { %v459_v41 = vadd.f32 1e-05, %v451_v39  ;;  %v460_v42 = vadd.f32 1e-05, %v452_v40  ;;  %v1073_v39 = vld [vmem:[%s1350_s6 + $0x38] sm:$0xff]  }
 0x145   : > { %v441_v43 = vpop.xlane.xlu1 %440  ;;  %v444_v46 = vpop.xlane.xlu0 %443  ;;  %v930_v40 = vld [vmem:[%s1349_s5] ss:$0 sm:$0xff] }
 0x146   : > { %1080 = vrsqrt.f32 %v459_v41  ;;  %v453_v47 = vmul.f32 0.03125, %v441_v43  ;;  %v454_v48 = vmul.f32 0.03125, %v444_v46 }
 0x147   : > { %1082 = vrsqrt.f32 %v460_v42 }
 0x148   : > { %v1075_v49 = vpop.eup %1074  ;;  %v461_v50 = vadd.f32 1e-05, %v453_v47  ;;  %v462_v51 = vadd.f32 1e-05, %v454_v48 }
 0x149   : > { %v447_v53 = vpop.xlane.xlu1 %446  ;;  %v472_v55 = vmul.f32 %v1075_v49, %v1210_v44  ;;  %v929_v44 = vld [vmem:[%s1347_s3] ss:$0 sm:$0xff] }
 0x14a   : > { %1084 = vrsqrt.f32 %v461_v50  ;;  %v455_v56 = vmul.f32 0.03125, %v447_v53 }
 0x14b   : > { %1086 = vrsqrt.f32 %v462_v51  ;;  %v486_v63 = vmul.f32 %v928_v57, %v472_v55 }
 0x14c   : > { %v1077_v58 = vpop.eup %1076  ;;  %v463_v59 = vadd.f32 1e-05, %v455_v56 }
 0x14d   : > { %v1079_v60 = vpop.eup %1078  ;;  %v473_v61 = vmul.f32 %v1077_v58, %v1220_v52  ;;  %v500_v6 = vadd.f32 %v929_v44, %v486_v63 }
 0x14e   : > { %v474_v1 = vmul.f32 %v1079_v60, %v1213_v45  ;;  %1088 = vrsqrt.f32 %v463_v59 }
 0x14f   : > { %v487_v2 = vmul.f32 %v928_v57, %v473_v61 }
 0x150   : > { %v1081_v3 = vpop.eup %1080  ;;  %v488_v9 = vmul.f32 %v928_v57, %v474_v1 }
 0x151   : > { %v1083_v4 = vpop.eup %1082  ;;  %v475_v5 = vmul.f32 %v1081_v3, %v1224_v54  ;;  %v501_v7 = vadd.f32 %v929_v44, %v487_v2 }
 0x152   : > { %v476_v11 = vmul.f32 %v1083_v4, %v1232_v62  ;;  %v502_v16 = vadd.f32 %v929_v44, %v488_v9 }
 0x153   : > { %v512_v12 = vpack.c.bf16 %v501_v7, %v500_v6  ;;  %v489_v52 = vmul.f32 %v928_v57, %v475_v5 }
 0x154   : > { %v1085_v13 = vpop.eup %1084  ;;  %v490_v21 = vmul.f32 %v928_v57, %v476_v11 }
 0x155   : > { %v1087_v15 = vpop.eup %1086  ;;  %v477_v45 = vmul.f32 %v1085_v13, %v1236_v0  ;;  %1024 = vmatprep.mubr.msk.bf16.mxu0 %vm374_vm0, %v512_v12  ;;  %v503_v17 = vadd.f32 %v929_v44, %v489_v52 }
 0x156   : > { %v478_v22 = vmul.f32 %v1087_v15, %v1244_v8  ;;  %v504_v62 = vadd.f32 %v929_v44, %v490_v21  ;;  %v1068_v8 = vld [vmem:[%s1350_s6 + $0x10] sm:$0xff]  }
 0x157   : > { %v513_v23 = vpack.c.bf16 %v503_v17, %v502_v16  ;;  %v491_v54 = vmul.f32 %v928_v57, %v477_v45  ;;  %1036 = vmatprep.subr.bf16.mxu1 %v1068_v8 }
 0x158   : > { %v1089_v24 = vpop.eup %1088  ;;  %v492_v28 = vmul.f32 %v928_v57, %v478_v22  ;;  %1037 = vmatpush3.bf16.msra.mxu1 %v1068_v8 }
 0x159   : > { %v479_v25 = vmul.f32 %v1089_v24, %v1248_v10  ;;  %1025 = vmatmul.mubr.msk.bf16.vlgmr.msra.gmra.mrb[0].mxu0 %vm374_vm0, %v513_v23  ;;  %v505_v26 = vadd.f32 %v929_v44, %v491_v54  ;;  %v1069_v10 = vld [vmem:[%s1350_s6 + $0x18] sm:$0xff]  }
 0x15a   : > { %v506_v0 = vadd.f32 %v929_v44, %v492_v28  ;;  %1038 = vmatprep.subr.bf16.mxu1 %v1069_v10 }
 0x15b   : > { %v514_v29 = vpack.c.bf16 %v505_v26, %v504_v62  ;;  %v493_v30 = vmul.f32 %v928_v57, %v479_v25 }
 0x15c   : > { %1039 = vmatpush3.bf16.msra.mxu1 %v1069_v10 }
 0x15d   : > { %1028 = vmatprep.mubr.msk.bf16.mxu0 %vm374_vm0, %v514_v29  ;;  %v507_v32 = vadd.f32 %v929_v44, %v493_v30  ;;  %1040 = vmatprep.subr.bf16.mxu1 %v1070_v34 }
 0x15f   : > { %v515_v33 = vpack.c.bf16 %v507_v32, %v506_v0 }
 0x160   : > { %1041 = vmatpush3.bf16.msra.mxu1 %v1070_v34 }
 0x161   : > { %1029 = vmatmul.mubr.msk.bf16.gmra.mrb[4].mxu0 %vm374_vm0, %v515_v33  ;;  %1042 = vmatprep.subr.bf16.mxu1 %v1071_v36 }
 0x164   : > { %1043 = vmatpush3.bf16.msra.mxu1 %v1071_v36 }
 0x165   : > { %1044 = vmatprep.subr.bf16.mxu1 %v1072_v38 }
 0x168   : > { %1045 = vmatpush3.bf16.msra.mxu1 %v1072_v38 }
 0x169   : > { %1046 = vmatprep.subr.bf16.mxu1 %v1073_v39 }
 0x16c   : > { %1047 = vmatpush3.bf16.msra.mxu1 %v1073_v39 }
 0x22c   : > { %v1026_v41 = vpop.f32.mrb[0].mxu0 }
 0x22d   : > { %v590_v42 = vadd.f32 %v1026_v41, %v930_v40  ;;  %v581_v43 = vpop.f32.mrb[1].mxu0 }
 0x22e   : > { %v582_v46 = vadd.f32 %v930_v40, %v581_v43  ;;  %v1027_v47 = vpop.f32.mrb[2].mxu0 }
 0x22f   : > { %v622_v48 = vmul.f32 0.70710677, %v590_v42  ;;  %v593_v49 = vadd.f32 %v1027_v47, %v930_v40  ;;  %v584_v50 = vpop.f32.mrb[3].mxu0  ;;  %v614_v13 = vmul.f32 0.5, %v590_v42 }
 0x230   : > { %v620_v51 = vmul.f32 0.70710677, %v582_v46  ;;  %v585_v53 = vadd.f32 %v930_v40, %v584_v50  ;;  %v612_v16 = vmul.f32 0.5, %v582_v46 }
 0x231   : > { %1090 = verf.f32 %v622_v48  ;;  %v623_v55 = vmul.f32 0.70710677, %v593_v49  ;;  %v615_v15 = vmul.f32 0.5, %v593_v49  ;;  %v945_v48 = vld [vmem:[%s1351_s7] ss:$0 sm:$0xff] }
 0x232   : > { %1092 = verf.f32 %v620_v51  ;;  %v621_v56 = vmul.f32 0.70710677, %v585_v53  ;;  %v613_v17 = vmul.f32 0.5, %v585_v53 }
 0x233   : > { %1094 = verf.f32 %v623_v55 }
 0x234   : > { %1096 = verf.f32 %v621_v56  ;;  %v1030_v57 = vpop.f32.mrb[4].mxu0 }
 0x235   : > { %v606_v58 = vadd.f32 %v1030_v57, %v930_v40  ;;  %v597_v59 = vpop.f32.mrb[5].mxu0 }
 0x236   : > { %v598_v60 = vadd.f32 %v930_v40, %v597_v59  ;;  %v1031_v61 = vpop.f32.mrb[6].mxu0 }
 0x237   : > { %v626_v63 = vmul.f32 0.70710677, %v606_v58  ;;  %v609_v1 = vadd.f32 %v1031_v61, %v930_v40  ;;  %v600_v44 = vpop.f32.mrb[7].mxu0  ;;  %v618_v33 = vmul.f32 0.5, %v606_v58 }
 0x238   : > { %v624_v2 = vmul.f32 0.70710677, %v598_v60  ;;  %v601_v3 = vadd.f32 %v930_v40, %v600_v44  ;;  %v616_v34 = vmul.f32 0.5, %v598_v60 }
 0x239   : > { %1098 = verf.f32 %v626_v63  ;;  %v627_v4 = vmul.f32 0.70710677, %v609_v1  ;;  %v619_v8 = vmul.f32 0.5, %v609_v1 }
 0x23a   : > { %1100 = verf.f32 %v624_v2  ;;  %v625_v5 = vmul.f32 0.70710677, %v601_v3  ;;  %v617_v36 = vmul.f32 0.5, %v601_v3 }
 0x23b   : > { %v1091_v6 = vpop.eup %1090  ;;  %1102 = verf.f32 %v627_v4 }
 0x23c   : > { %v1093_v7 = vpop.eup %1092  ;;  %v638_v9 = vadd.f32 1.0, %v1091_v6  ;;  %1104 = verf.f32 %v625_v5 }
 0x23d   : > { %v1095_v11 = vpop.eup %1094  ;;  %v636_v12 = vadd.f32 1.0, %v1093_v7 }
 0x23e   : > { %v1097_v52 = vpop.eup %1096  ;;  %v639_v45 = vadd.f32 1.0, %v1095_v11  ;;  %v646_v22 = vmul.f32 %v638_v9, %v614_v13 }
 0x23f   : > { %v637_v21 = vadd.f32 1.0, %v1097_v52  ;;  %v644_v54 = vmul.f32 %v636_v12, %v612_v16 }
 0x240   : > { %v647_v23 = vmul.f32 %v639_v45, %v615_v15 }
 0x241   : > { %v645_v24 = vmul.f32 %v637_v21, %v613_v17 }
 0x242   : > { %v669_v25 = vpack.c.bf16 %v647_v23, %v646_v22 }
 0x243   : > { %v1099_v62 = vpop.eup %1098  ;;  %v668_v26 = vpack.c.bf16 %v645_v24, %v644_v54 }
 0x244   : > { %v1101_v28 = vpop.eup %1100  ;;  %v642_v29 = vadd.f32 1.0, %v1099_v62 }
 0x245   : > { %v1103_v30 = vpop.eup %1102  ;;  %v640_v0 = vadd.f32 1.0, %v1101_v28  ;;  %1048 = vmatprep.mubr.bf16.mxu1 %v668_v26 }
 0x246   : > { %v1105_v32 = vpop.eup %1104  ;;  %v643_v10 = vadd.f32 1.0, %v1103_v30  ;;  %1049 = vmatmul.mubr.bf16.vlgmr.msra.gmra.mrb[0].mxu1 %v669_v25  ;;  %v650_v39 = vmul.f32 %v642_v29, %v618_v33 }
 0x247   : > { %v641_v38 = vadd.f32 1.0, %v1105_v32  ;;  %v648_v41 = vmul.f32 %v640_v0, %v616_v34 }
 0x248   : > { %v651_v40 = vmul.f32 %v643_v10, %v619_v8 }
 0x249   : > { %v649_v42 = vmul.f32 %v641_v38, %v617_v36 }
 0x24a   : > { %v671_v43 = vpack.c.bf16 %v651_v40, %v650_v39 }
 0x24b   : > { %v670_v46 = vpack.c.bf16 %v649_v42, %v648_v41 }
 0x24d   : > { %1052 = vmatprep.mubr.bf16.mxu1 %v670_v46 }
 0x24e   : > { %1053 = vmatmul.mubr.bf16.gmra.mrb[4].mxu1 %v671_v43 }
 0x319   : > { %v1050_v47 = vpop.f32.mrb[0].mxu1 }
 0x31a   : > { %v787_v49 = vadd.f32 %v1050_v47, %v1179_v18  ;;  %v754_v50 = vpop.f32.mrb[1].mxu1 }
 0x31b   : > { %v785_v51 = vadd.f32 %v754_v50, %v1177_v14  ;;  %v1051_v53 = vpop.f32.mrb[2].mxu1 }
 0x31c   : > { %v802_v55 = vadd.f32 %v945_v48, %v787_v49  ;;  %v788_v56 = vadd.f32 %v1051_v53, %v1183_v20  ;;  %v757_v57 = vpop.f32.mrb[3].mxu1 }
 0x31d   : > { %v800_v58 = vadd.f32 %v945_v48, %v785_v51  ;;  %v786_v18 = vadd.f32 %v757_v57, %v1181_v19 }
 0x31e   : > { %v958_v59 = vpack.c.bf16 %v802_v55, %v802_v55  ;;  %v803_v14 = vadd.f32 %v945_v48, %v788_v56 }
 0x31f   : > { %v956_v60 = vpack.c.bf16 %v800_v58, %v800_v58  ;;  %v801_v61 = vadd.f32 %v945_v48, %v786_v18 }
 0x320   : > { %843 = vst.msk [vmem:[%s1318_s25 + $0x8] sm:$0xf] %vm840_vm1, %v958_v59  ;;  %v959_v20 = vpack.c.bf16 %v803_v14, %v803_v14 }
 0x321   : > { %841 = vst.msk [vmem:[%s1318_s25] sm:$0xf] %vm840_vm1, %v956_v60  ;;  %v957_v63 = vpack.c.bf16 %v801_v61, %v801_v61  ;;  %v1054_v1 = vpop.f32.mrb[4].mxu1 }
 0x322   : > { %844 = vst.msk [vmem:[%s1318_s25 + $0xc] sm:$0xf] %vm840_vm1, %v959_v20  ;;  %v791_v44 = vadd.f32 %v1054_v1, %v1199_v35  ;;  %v770_v2 = vpop.f32.mrb[5].mxu1 }
 0x323   : > { %842 = vst.msk [vmem:[%s1318_s25 + $0x4] sm:$0xf] %vm840_vm1, %v957_v63  ;;  %v789_v19 = vadd.f32 %v770_v2, %v1191_v27  ;;  %v1055_v3 = vpop.f32.mrb[6].mxu1 }
 0x324   : > { %v806_v4 = vadd.f32 %v945_v48, %v791_v44  ;;  %v792_v5 = vadd.f32 %v1055_v3, %v1203_v37  ;;  %v773_v6 = vpop.f32.mrb[7].mxu1 }
 0x325   : > { %v804_v7 = vadd.f32 %v945_v48, %v789_v19  ;;  %v790_v9 = vadd.f32 %v773_v6, %v1195_v31 }
 0x326   : > { %v962_v11 = vpack.c.bf16 %v806_v4, %v806_v4  ;;  %v807_v12 = vadd.f32 %v945_v48, %v792_v5 }
 0x327   : > { %v960_v52 = vpack.c.bf16 %v804_v7, %v804_v7  ;;  %v805_v35 = vadd.f32 %v945_v48, %v790_v9 }
 0x328   : > { %847 = vst.msk [vmem:[%s1318_s25 + $0x18] sm:$0xf] %vm840_vm1, %v962_v11  ;;  %v963_v13 = vpack.c.bf16 %v807_v12, %v807_v12 }
 0x329   : > { %845 = vst.msk [vmem:[%s1318_s25 + $0x10] sm:$0xf] %vm840_vm1, %v960_v52  ;;  %v961_v15 = vpack.c.bf16 %v805_v35, %v805_v35 }
 0x32a   : > { %848 = vst.msk [vmem:[%s1318_s25 + $0x1c] sm:$0xf] %vm840_vm1, %v963_v13 }
 0x32b   : > { %846 = vst.msk [vmem:[%s1318_s25 + $0x14] sm:$0xf] %vm840_vm1, %v961_v15 }
 0x32c PF: > { %s18_s27 = sadd.s32 1, %s1112_s27  }
 0x32d   : > { %p15_p4 = scmp.ge.s32.totalorder %s18_s27, 4  }
 0x32f   :  { %17 = sbr.rel (!%p15_p4) target bundleno = 1 (0x1), region = 85 }

// kernel: swin_forward.17
= control target key start
LH: loop header
LB: loop body
LE: loop exit
PB: predicated region body
PF: predicated region fallthrough
CT: control target
= control target key end

     0   :  { %s1875_s15 = smov 0   ;;  %s2228_s0 = inlined_call_operand.vmem [shape: bf16[8,16,96], index: 0, kind: input, shape index: {}]   ;;  %s2229_s1 = inlined_call_operand.vmem [shape: f32[2,16,16], index: 1, kind: input, shape index: {}]   ;;  %s2230_s2 = inlined_call_operand.vmem [shape: bf16[32,32], index: 2, kind: input, shape index: {}]   ;;  %s2231_s3 = inlined_call_operand.vmem [shape: f32[1,32], index: 3, kind: input, shape index: {}]   ;;  %s2232_s4 = inlined_call_operand.vmem [shape: bf16[8,16,32], index: 4, kind: output, shape index: {}]  }
   0x1 LB: > { %s1504_s16 = sadd.s32 4294967295, %s1842_s15   ;;  %p1508_p0 = scmp.ge.s32.totalorder %s1842_s15, 1  ;;  %s1842_s15 = sphi %s1875_s15, %s14_s15  }
   0x2   : > { %p164_p1 = scmp.lt.s32.totalorder %s1842_s15, 3 }
   0x4   : > { %p165_p2 = pnand %p1508_p0, %p164_p1 }
   0x5   : > { %s1509_s17 = sshll.u32 (!%p165_p2), %s1504_s16, 2  ;;  %s1844_s22 = smov (!%p165_p2), 112   ;;  %v1845_v16 = vmov (!%p165_p2), 0.0   ;;  %vm1846_vm0 = vmmov (!%p165_p2), 0   ;;  %vm266_vm1 = vcmask (!%p165_p2), 130048   ;;  %v682_v54 = vld [vmem:[%s2229_s1 + $0x10] sm:$0xff] (!%p165_p2) }
   0x6   : > { %168 = sbr.rel (%p165_p2) target bundleno = 1385 (0x569), region = 36  ;;  %p193_p3 = scmp.lt.s32.totalorder (!%p165_p2), %s1509_s17, 7  ;;  %1600 = vmatprep.subr.bf16.mxu1 (!%p165_p2), %v1845_v16  ;;  %1602 = vmatprep.mubr.msk.bf16.mxu1 (!%p165_p2), %vm1846_vm0, %v1845_v16  ;;  %v683_v58 = vld [vmem:[%s2229_s1 + $0x18] sm:$0xff] (!%p165_p2)  ;;  %vm1327_vm2 = vcmask (!%p165_p2), 261120   ;;  %vm1437_vm3 = vcmask (!%p165_p2), 257024  }
   0x7   : > { %1612 = vmatprep.subr.bf16.mxu0 (!%p165_p2), %v1845_v16  ;;  %1614 = vmatprep.mubr.msk.bf16.mxu0 (!%p165_p2), %vm1846_vm0, %v1845_v16  ;;  %s1847_s23 = smov (!%p165_p2), 96   ;;  %s1848_s6 = smov (!%p165_p2), 64  }
   0x8   : > { %s1849_s9 = smov (!%p165_p2), 16  }
   0xd   : > { %s2234_s17 = smov (!%p193_p3, %s1509_s17), 7 }
   0xe   : > { %s1552_s18 = sshll.u32 %s2234_s17, 3 }
   0xf   : > { %s197_s21 = scalar_lea.vmem %s2228_s0, %s1552_s18  ;;  %s204_s19 = scalar_lea.vmem %s2232_s4, %s1552_s18 }
  0x10   : > { %v1891_v0 = vld [vmem:[%s197_s21] sm:$0xff]   ;;  %v1893_v1 = vld [vmem:[%s197_s21 + $0x8] sm:$0xff]   ;;  %v1895_v2 = vld [vmem:[%s197_s21 + $0x10] sm:$0xff]  }
  0x11   : > { %v215_v3 = vunpack.c.l.bf16 %v1891_v0  ;;  %v216_v4 = vunpack.c.h.bf16 %v1891_v0  ;;  %v217_v5 = vunpack.c.l.bf16 %v1893_v1  ;;  %v218_v6 = vunpack.c.h.bf16 %v1893_v1  ;;  %v1901_v7 = vld [vmem:[%s197_s21 + $0x18] sm:$0xff]  }
  0x12   : > { %v219_v8 = vunpack.c.l.bf16 %v1895_v2  ;;  %v220_v9 = vunpack.c.h.bf16 %v1895_v2  ;;  %v221_v10 = vunpack.c.l.bf16 %v1901_v7  ;;  %v222_v11 = vunpack.c.h.bf16 %v1901_v7 }
  0x13   : > { %v1722_v12 = vpack.i.bf16 %v216_v4, %v215_v3  ;;  %v1727_v14 = vpack.i.bf16 %v218_v6, %v217_v5 }
  0x14   : > { %v1732_v13 = vpack.i.bf16 %v220_v9, %v219_v8  ;;  %v1737_v15 = vpack.i.bf16 %v222_v11, %v221_v10 }
  0x15   : > { %1723 = vrot.lane.b32.xlu0 %v1722_v12, %s1844_s22 }
  0x16   : > { %1733 = vrot.lane.b32.xlu1 %v1732_v13, %s1844_s22 }
  0x19   : > { %1728 = vrot.lane.b32.xlu0 %v1727_v14, %s1844_s22 }
  0x1a   : > { %1738 = vrot.lane.b32.xlu1 %v1737_v15, %s1844_s22 }
  0x1d   : > { %264 = vrot.lane.b32.xlu0 %v1891_v0, %s1847_s23 }
  0x87   : > { %v1724_v17 = vpop.permute.xlu0 %1723 }
  0x88   : > { %v1726_v18 = vunpack.i.h.bf16 %v1724_v17  ;;  %v1725_v19 = vunpack.i.l.bf16 %v1724_v17  ;;  %v1734_v20 = vpop.permute.xlu1 %1733 }
  0x89   : > { %v1736_v21 = vunpack.i.h.bf16 %v1734_v20  ;;  %v1735_v22 = vunpack.i.l.bf16 %v1734_v20 }
  0x8a   : > { %v1914_v23 = vpack.c.bf16 %v1726_v18, %v1725_v19 }
  0x8b   : > { %v1729_v24 = vpop.permute.xlu0 %1728  ;;  %v1917_v27 = vpack.c.bf16 %v1736_v21, %v1735_v22 }
  0x8c   : > { %315 = vrot.lane.b32.xlu1 %v1914_v23, %s1847_s23  ;;  %v1731_v25 = vunpack.i.h.bf16 %v1729_v24  ;;  %v1730_v26 = vunpack.i.l.bf16 %v1729_v24  ;;  %v1739_v28 = vpop.permute.xlu1 %1738 }
  0x8d   : > { %v1741_v29 = vunpack.i.h.bf16 %v1739_v28  ;;  %v1740_v30 = vunpack.i.l.bf16 %v1739_v28 }
  0x8e   : > { %v1919_v31 = vpack.c.bf16 %v1731_v25, %v1730_v26 }
  0x8f   : > { %v265_v32 = vpop.permute.xlu0 %264  ;;  %v1923_v33 = vpack.c.bf16 %v1741_v29, %v1740_v30 }
  0x90   : > { %415 = vrot.lane.b32.xlu0 %v1919_v31, %s1847_s23  ;;  %515 = vrot.lane.b32.xlu1 %v1917_v27, %s1847_s23  ;;  %v271_v34 = vsel %vm266_vm1, %v265_v32, 0 }
  0x91   : > { %1601 = vmatpush3.bf16.xpose.msra.mxu1 %v271_v34 }
  0x92   : > { %1606 = vmatprep.subr.bf16.mxu1 %v1845_v16 }
  0x94   : > { %615 = vrot.lane.b32.xlu0 %v1923_v33, %s1847_s23  ;;  %365 = vrot.lane.b32.xlu1 %v1893_v1, %s1847_s23 }
  0x98   : > { %465 = vrot.lane.b32.xlu0 %v1895_v2, %s1847_s23  ;;  %565 = vrot.lane.b32.xlu1 %v1901_v7, %s1847_s23 }
  0x99   : > { %1603 = vmatmul.mubr.msk.bf16.vlgmr.msra.gmra.mrb[0].mxu1 %vm266_vm1, %v1891_v0 }
  0x9a   : > { %1608 = vmatprep.mubr.msk.bf16.mxu1 %vm1846_vm0, %v1845_v16 }
  0xfe   : > { %v316_v35 = vpop.permute.xlu1 %315 }
  0xff   : > { %v321_v36 = vsel %vm266_vm1, %v316_v35, 0 }
 0x100   : > { %1607 = vmatpush3.bf16.xpose.msra.mxu1 %v321_v36 }
 0x101   : > { %1618 = vmatprep.subr.bf16.mxu1 %v1845_v16 }
 0x102   : > { %v416_v37 = vpop.permute.xlu0 %415  ;;  %v516_v38 = vpop.permute.xlu1 %515 }
 0x103   : > { %v421_v39 = vsel %vm266_vm1, %v416_v37, 0  ;;  %v521_v44 = vsel %vm266_vm1, %v516_v38, 0 }
 0x106   : > { %v366_v40 = vpop.permute.xlu1 %365  ;;  %v616_v42 = vpop.permute.xlu0 %615 }
 0x107   : > { %1609 = vmatmul.mubr.msk.bf16.vlgmr.msra.gmra.mrb[4].mxu1 %vm266_vm1, %v1914_v23  ;;  %v371_v41 = vsel %vm266_vm1, %v366_v40, 0  ;;  %v621_v47 = vsel %vm266_vm1, %v616_v42, 0 }
 0x108   : > { %1619 = vmatpush3.bf16.xpose.msra.mxu1 %v421_v39  ;;  %1620 = vmatprep.mubr.msk.bf16.mxu1 %vm1846_vm0, %v1845_v16 }
 0x109   : > { %1630 = vmatprep.subr.bf16.mxu1 %v1845_v16  ;;  %1613 = vmatpush3.bf16.xpose.msra.mxu0 %v371_v41 }
 0x10a   : > { %1624 = vmatprep.subr.bf16.mxu0 %v1845_v16  ;;  %v466_v43 = vpop.permute.xlu0 %465  ;;  %v566_v46 = vpop.permute.xlu1 %565 }
 0x10b   : > { %v471_v45 = vsel %vm266_vm1, %v466_v43, 0  ;;  %v571_v48 = vsel %vm266_vm1, %v566_v46, 0  ;;  %v680_v43 = vld [vmem:[%s2229_s1] sm:$0xff] }
 0x10f   : > { %1621 = vmatmul.mubr.msk.bf16.vlgmr.msra.gmra.mrb[8].mxu1 %vm266_vm1, %v1919_v31 }
 0x110   : > { %1631 = vmatpush3.bf16.xpose.msra.mxu1 %v521_v44  ;;  %1632 = vmatprep.mubr.msk.bf16.mxu1 %vm1846_vm0, %v1845_v16 }
 0x111   : > { %1642 = vmatprep.subr.bf16.mxu1 %v1845_v16  ;;  %1615 = vmatmul.mubr.msk.bf16.vlgmr.msra.gmra.mrb[0].mxu0 %vm266_vm1, %v1893_v1 }
 0x112   : > { %1625 = vmatpush3.bf16.xpose.msra.mxu0 %v471_v45  ;;  %1626 = vmatprep.mubr.msk.bf16.mxu0 %vm1846_vm0, %v1845_v16 }
 0x113   : > { %1636 = vmatprep.subr.bf16.mxu0 %v1845_v16 }
 0x117   : > { %1633 = vmatmul.mubr.msk.bf16.vlgmr.msra.gmra.mrb[12].mxu1 %vm266_vm1, %v1917_v27 }
 0x118   : > { %1643 = vmatpush3.bf16.xpose.msra.mxu1 %v621_v47  ;;  %1644 = vmatprep.mubr.msk.bf16.mxu1 %vm1846_vm0, %v1845_v16 }
 0x119   : > { %1627 = vmatmul.mubr.msk.bf16.vlgmr.msra.gmra.mrb[4].mxu0 %vm266_vm1, %v1895_v2  ;;  %1654 = vmatprep.subr.bf16.mxu1 %v1845_v16 }
 0x11a   : > { %1637 = vmatpush3.bf16.xpose.msra.mxu0 %v571_v48  ;;  %1638 = vmatprep.mubr.msk.bf16.mxu0 %vm1846_vm0, %v1845_v16 }
 0x11b   : > { %1648 = vmatprep.subr.bf16.mxu0 %v1845_v16 }
 0x11f   : > { %1645 = vmatmul.mubr.msk.bf16.vlgmr.msra.gmra.mrb[16].mxu1 %vm266_vm1, %v1923_v33 }
 0x120   : > { %1656 = vmatprep.mubr.msk.bf16.mxu1 %vm1846_vm0, %v1845_v16 }
 0x121   : > { %1639 = vmatmul.mubr.msk.bf16.vlgmr.msra.gmra.mrb[8].mxu0 %vm266_vm1, %v1901_v7 }
 0x122   : > { %1650 = vmatprep.mubr.msk.bf16.mxu0 %vm1846_vm0, %v1845_v16 }
 0x16c   : > { %v307_v49 = vpop.f32.mrb[0].mxu1 }
 0x16d   : > { %v1604_v50 = vpop.f32.mrb[1].mxu1  ;;  %v664_v39 = vmul.f32 0.25, %v307_v49 }
 0x16e   : > { %v310_v51 = vpop.f32.mrb[2].mxu1 }
 0x16f   : > { %v1605_v52 = vpop.f32.mrb[3].mxu1  ;;  %v665_v45 = vmul.f32 0.25, %v310_v51 }
 0x1da   : > { %v357_v53 = vpop.f32.mrb[4].mxu1 }
 0x1db   : > { %v666_v55 = vmul.f32 0.25, %v357_v53  ;;  %v1610_v56 = vpop.f32.mrb[5].mxu1  ;;  %v681_v53 = vld [vmem:[%s2229_s1 + $0x8] sm:$0xff] }
 0x1dc   : > { %v360_v57 = vpop.f32.mrb[6].mxu1 }
 0x1dd   : > { %v667_v59 = vmul.f32 0.25, %v360_v57  ;;  %v1611_v60 = vpop.f32.mrb[7].mxu1  ;;  %v1983_v61 = vadd.f32 %v682_v54, %v666_v55  ;;  %v2019_v57 = vadd.f32 %v680_v43, %v664_v39 }
 0x1de   : > { %v2023_v60 = vadd.f32 %v681_v53, %v665_v45 }
 0x1df   : > { %v706_v62 = vsel %vm266_vm1, %v1983_v61, -inf  ;;  %v1987_v63 = vadd.f32 %v683_v58, %v667_v59 }
 0x1e0   : > { %707 = vmax.xlane.f32.xlu0 %v706_v62 }
 0x1e1   : > { %v709_v3 = vsel %vm266_vm1, %v1987_v63, -inf }
 0x1e2   : > { %710 = vmax.xlane.f32.xlu1 %v709_v3  ;;  %v457_v4 = vpop.f32.mrb[8].mxu1 }
 0x1e3   : > { %v670_v5 = vmul.f32 0.25, %v457_v4  ;;  %v1622_v6 = vpop.f32.mrb[9].mxu1  ;;  %v700_v4 = vsel %vm266_vm1, %v2019_v57, -inf }
 0x1e4   : > { %v460_v8 = vpop.f32.mrb[10].mxu1  ;;  %v407_v9 = vpop.f32.mrb[0].mxu0  ;;  %v703_v6 = vsel %vm266_vm1, %v2023_v60, -inf }
 0x1e5   : > { %v671_v10 = vmul.f32 0.25, %v460_v8  ;;  %v1623_v11 = vpop.f32.mrb[11].mxu1  ;;  %v1991_v12 = vadd.f32 %v682_v54, %v670_v5  ;;  %v1616_v13 = vpop.f32.mrb[1].mxu0  ;;  %v668_v50 = vmul.f32 0.25, %v407_v9 }
 0x1e6   : > { %v410_v14 = vpop.f32.mrb[2].mxu0 }
 0x1e7   : > { %v718_v15 = vsel %vm266_vm1, %v1991_v12, -inf  ;;  %v1995_v17 = vadd.f32 %v683_v58, %v671_v10  ;;  %v1617_v18 = vpop.f32.mrb[3].mxu0  ;;  %v669_v59 = vmul.f32 0.25, %v410_v14  ;;  %v2025_v3 = vadd.f32 %v680_v43, %v668_v50 }
 0x1e8   : > { %719 = vmax.xlane.f32.xlu0 %v718_v15 }
 0x1e9   : > { %v721_v22 = vsel %vm266_vm1, %v1995_v17, -inf  ;;  %v712_v8 = vsel %vm266_vm1, %v2025_v3, -inf }
 0x1ea   : > { %v557_v19 = vpop.f32.mrb[12].mxu1 }
 0x1eb   : > { %v674_v20 = vmul.f32 0.25, %v557_v19  ;;  %v1634_v21 = vpop.f32.mrb[13].mxu1 }
 0x1ec   : > { %722 = vmax.xlane.f32.xlu0 %v721_v22  ;;  %v560_v24 = vpop.f32.mrb[14].mxu1  ;;  %v507_v25 = vpop.f32.mrb[4].mxu0 }
 0x1ed   : > { %v675_v26 = vmul.f32 0.25, %v560_v24  ;;  %v1635_v28 = vpop.f32.mrb[15].mxu1  ;;  %v1999_v29 = vadd.f32 %v682_v54, %v674_v20  ;;  %v1628_v30 = vpop.f32.mrb[5].mxu0  ;;  %v672_v62 = vmul.f32 0.25, %v507_v25 }
 0x1ee   : > { %v510_v32 = vpop.f32.mrb[6].mxu0 }
 0x1ef   : > { %v730_v34 = vsel %vm266_vm1, %v1999_v29, -inf  ;;  %v2003_v35 = vadd.f32 %v683_v58, %v675_v26  ;;  %v1629_v36 = vpop.f32.mrb[7].mxu0  ;;  %v673_v5 = vmul.f32 0.25, %v510_v32  ;;  %v2035_v10 = vadd.f32 %v680_v43, %v672_v62 }
 0x1f0   : > { %731 = vmax.xlane.f32.xlu1 %v730_v34 }
 0x1f1   : > { %v733_v37 = vsel %vm266_vm1, %v2003_v35, -inf  ;;  %v2039_v14 = vadd.f32 %v681_v53, %v673_v5  ;;  %v724_v15 = vsel %vm266_vm1, %v2035_v10, -inf }
 0x1f2   : > { %734 = vmax.xlane.f32.xlu0 %v733_v37  ;;  %v657_v38 = vpop.f32.mrb[16].mxu1 }
 0x1f3   : > { %v678_v40 = vmul.f32 0.25, %v657_v38  ;;  %v1646_v41 = vpop.f32.mrb[17].mxu1  ;;  %v727_v19 = vsel %vm266_vm1, %v2039_v14, -inf }
 0x1f4   : > { %v660_v42 = vpop.f32.mrb[18].mxu1  ;;  %v607_v44 = vpop.f32.mrb[8].mxu0 }
 0x1f5   : > { %v679_v46 = vmul.f32 0.25, %v660_v42  ;;  %v1647_v47 = vpop.f32.mrb[19].mxu1  ;;  %v2010_v48 = vadd.f32 %v682_v54, %v678_v40  ;;  %v1640_v52 = vpop.f32.mrb[9].mxu0  ;;  %v676_v9 = vmul.f32 0.25, %v607_v44 }
 0x1f6   : > { %v610_v49 = vpop.f32.mrb[10].mxu0 }
 0x1f7   : > { %v742_v55 = vsel %vm266_vm1, %v2010_v48, -inf  ;;  %v2017_v56 = vadd.f32 %v683_v58, %v679_v46  ;;  %v1641_v51 = vpop.f32.mrb[11].mxu0  ;;  %v2029_v58 = vadd.f32 %v681_v53, %v669_v59  ;;  %v677_v13 = vmul.f32 0.25, %v610_v49 }
 0x1f8   : > { %743 = vmax.xlane.f32.xlu1 %v742_v55  ;;  %v2043_v18 = vadd.f32 %v680_v43, %v676_v9 }
 0x1f9   : > { %v745_v54 = vsel %vm266_vm1, %v2017_v56, -inf  ;;  %v715_v11 = vsel %vm266_vm1, %v2029_v58, -inf  ;;  %v2047_v20 = vadd.f32 %v681_v53, %v677_v13 }
 0x1fa   : > { %746 = vmax.xlane.f32.xlu0 %v745_v54  ;;  %v736_v21 = vsel %vm266_vm1, %v2043_v18, -inf }
 0x1fb   : > { %v739_v22 = vsel %vm266_vm1, %v2047_v20, -inf }
 0x1fc   : > { %701 = vmax.xlane.f32.xlu1 %v700_v4 }
 0x1fe   : > { %704 = vmax.xlane.f32.xlu0 %v703_v6 }
 0x200   : > { %713 = vmax.xlane.f32.xlu1 %v712_v8 }
 0x202   : > { %716 = vmax.xlane.f32.xlu0 %v715_v11 }
 0x204   : > { %725 = vmax.xlane.f32.xlu1 %v724_v15 }
 0x206   : > { %728 = vmax.xlane.f32.xlu0 %v727_v19 }
 0x208   : > { %737 = vmax.xlane.f32.xlu1 %v736_v21 }
 0x20a   : > { %740 = vmax.xlane.f32.xlu0 %v739_v22 }
 0x219   : > { %931 = vrot.lane.b32.xlu1 %v1914_v23, %s1848_s6 }
 0x26d   : > { %v708_v24 = vpop.xlane.xlu0 %707 }
 0x26e   : > { %v750_v25 = vsub.f32 %v1983_v61, %v708_v24 }
 0x26f   : > { %v711_v26 = vpop.xlane.xlu1 %710 }
 0x270   : > { %v768_v28 = vmul.f32 1.442695, %v750_v25  ;;  %v751_v30 = vsub.f32 %v1987_v63, %v711_v26 }
 0x272   : > { %1772 = vpow2.f32 %v768_v28  ;;  %v770_v32 = vmul.f32 1.442695, %v751_v30 }
 0x274   : > { %1774 = vpow2.f32 %v770_v32 }
 0x275   : > { %v720_v34 = vpop.xlane.xlu0 %719 }
 0x276   : > { %v754_v36 = vsub.f32 %v1991_v12, %v720_v34 }
 0x278   : > { %v776_v37 = vmul.f32 1.442695, %v754_v36 }
 0x279   : > { %v723_v38 = vpop.xlane.xlu0 %722 }
 0x27a   : > { %1776 = vpow2.f32 %v776_v37  ;;  %v755_v39 = vsub.f32 %v1995_v17, %v723_v38 }
 0x27c   : > { %v2059_v40 = vpop.eup %1772  ;;  %v778_v23 = vmul.f32 1.442695, %v755_v39 }
 0x27d   : > { %v732_v41 = vpop.xlane.xlu1 %731  ;;  %v802_v61 = vsel %vm266_vm1, %v2059_v40, 0.0 }
 0x27e   : > { %v2063_v42 = vpop.eup %1774  ;;  %1778 = vpow2.f32 %v778_v23  ;;  %v758_v63 = vsub.f32 %v1999_v29, %v732_v41  ;;  %803 = vadd.xlane.f32.xlu1 %v802_v61 }
 0x27f   : > { %v735_v43 = vpop.xlane.xlu0 %734  ;;  %v805_v12 = vsel %vm266_vm1, %v2063_v42, 0.0 }
 0x280   : > { %v784_v44 = vmul.f32 1.442695, %v758_v63  ;;  %v759_v17 = vsub.f32 %v2003_v35, %v735_v43  ;;  %806 = vadd.xlane.f32.xlu0 %v805_v12 }
 0x282   : > { %1780 = vpow2.f32 %v784_v44  ;;  %v786_v45 = vmul.f32 1.442695, %v759_v17 }
 0x284   : > { %v2069_v46 = vpop.eup %1776  ;;  %1782 = vpow2.f32 %v786_v45 }
 0x285   : > { %v744_v47 = vpop.xlane.xlu1 %743  ;;  %v814_v50 = vsel %vm266_vm1, %v2069_v46, 0.0 }
 0x286   : > { %v762_v29 = vsub.f32 %v2010_v48, %v744_v47  ;;  %815 = vadd.xlane.f32.xlu1 %v814_v50 }
 0x287   : > { %v747_v52 = vpop.xlane.xlu0 %746 }
 0x288   : > { %v2074_v53 = vpop.eup %1778  ;;  %v792_v49 = vmul.f32 1.442695, %v762_v29  ;;  %v763_v55 = vsub.f32 %v2017_v56, %v747_v52 }
 0x289   : > { %v702_v35 = vpop.xlane.xlu1 %701  ;;  %v817_v59 = vsel %vm266_vm1, %v2074_v53, 0.0 }
 0x28a   : > { %1784 = vpow2.f32 %v792_v49  ;;  %v794_v51 = vmul.f32 1.442695, %v763_v55  ;;  %818 = vadd.xlane.f32.xlu0 %v817_v59  ;;  %v748_v21 = vsub.f32 %v2019_v57, %v702_v35 }
 0x28b   : > { %v705_v19 = vpop.xlane.xlu0 %704 }
 0x28c   : > { %v2079_v54 = vpop.eup %1780  ;;  %1786 = vpow2.f32 %v794_v51  ;;  %v749_v24 = vsub.f32 %v2023_v60, %v705_v19  ;;  %v764_v25 = vmul.f32 1.442695, %v748_v21 }
 0x28d   : > { %v714_v62 = vpop.xlane.xlu1 %713  ;;  %v826_v48 = vsel %vm266_vm1, %v2079_v54, 0.0 }
 0x28e   : > { %v2083_v4 = vpop.eup %1782  ;;  %827 = vadd.xlane.f32.xlu1 %v826_v48  ;;  %v752_v26 = vsub.f32 %v2025_v3, %v714_v62  ;;  %v766_v28 = vmul.f32 1.442695, %v749_v24  ;;  %1788 = vpow2.f32 %v764_v25 }
 0x28f   : > { %v829_v56 = vsel %vm266_vm1, %v2083_v4, 0.0  ;;  %v717_v22 = vpop.xlane.xlu0 %716 }
 0x290   : > { %830 = vadd.xlane.f32.xlu0 %v829_v56  ;;  %1790 = vpow2.f32 %v766_v28 }
 0x291   : > { %v726_v5 = vpop.xlane.xlu1 %725 }
 0x292   : > { %v756_v30 = vsub.f32 %v2035_v10, %v726_v5 }
 0x293   : > { %v729_v32 = vpop.xlane.xlu0 %728 }
 0x294   : > { %v2087_v6 = vpop.eup %1784  ;;  %v780_v34 = vmul.f32 1.442695, %v756_v30  ;;  %v757_v36 = vsub.f32 %v2039_v14, %v729_v32 }
 0x295   : > { %v738_v8 = vpop.xlane.xlu1 %737  ;;  %v838_v9 = vsel %vm266_vm1, %v2087_v6, 0.0 }
 0x296   : > { %v2091_v11 = vpop.eup %1786  ;;  %839 = vadd.xlane.f32.xlu1 %v838_v9  ;;  %v782_v3 = vmul.f32 1.442695, %v757_v36 }
 0x297   : > { %v841_v13 = vsel %vm266_vm1, %v2091_v11, 0.0  ;;  %v741_v60 = vpop.xlane.xlu0 %740 }
 0x298   : > { %842 = vadd.xlane.f32.xlu0 %v841_v13  ;;  %v761_v10 = vsub.f32 %v2047_v20, %v741_v60  ;;  %v2110_v38 = vpop.eup %1788 }
 0x299   : > { %v932_v15 = vpop.permute.xlu1 %931 }
 0x29a   : > { %1655 = vmatpush3.bf16.msra.mxu1 %v932_v15  ;;  %v2112_v39 = vpop.eup %1790 }
 0x29b   : > { %1666 = vmatprep.subr.bf16.mxu1 %v1845_v16  ;;  %v799_v14 = vsel %vm266_vm1, %v2112_v39, 0.0 }
 0x2a7   : > { %1119 = vrot.lane.b32.xlu1 %v1917_v27, %s1848_s6  ;;  %v772_v27 = vmul.f32 1.442695, %v752_v26 }
 0x2a9   : > { %1792 = vpow2.f32 %v772_v27 }
 0x2aa   : > { %1794 = vpow2.f32 %v780_v34 }
 0x2ab   : > { %1213 = vrot.lane.b32.xlu1 %v1923_v33, %s1848_s6  ;;  %v753_v33 = vsub.f32 %v2029_v58, %v717_v22  ;;  %v790_v58 = vmul.f32 1.442695, %v761_v10 }
 0x2ad   : > { %v774_v57 = vmul.f32 1.442695, %v753_v33 }
 0x2ae   : > { %1025 = vrot.lane.b32.xlu0 %v1919_v31, %s1848_s6  ;;  %v760_v31 = vsub.f32 %v2043_v18, %v738_v8  ;;  %v796_v18 = vsel %vm266_vm1, %v2110_v38, 0.0 }
 0x2af   : > { %1796 = vpow2.f32 %v774_v57 }
 0x2b0   : > { %v788_v37 = vmul.f32 1.442695, %v760_v31 }
 0x2b2   : > { %1798 = vpow2.f32 %v788_v37 }
 0x2b3   : > { %1800 = vpow2.f32 %v782_v3  ;;  %v2116_v23 = vpop.eup %1792 }
 0x2b4   : > { %v2120_v41 = vpop.eup %1794  ;;  %1802 = vpow2.f32 %v790_v58  ;;  %v808_v20 = vsel %vm266_vm1, %v2116_v23, 0.0 }
 0x2b5   : > { %v820_v63 = vsel %vm266_vm1, %v2120_v41, 0.0 }
 0x2b9   : > { %v2124_v61 = vpop.eup %1796 }
 0x2ba   : > { %v811_v12 = vsel %vm266_vm1, %v2124_v61, 0.0 }
 0x2bc   : > { %v2128_v43 = vpop.eup %1798 }
 0x2bd   : > { %v2132_v44 = vpop.eup %1800  ;;  %v832_v17 = vsel %vm266_vm1, %v2128_v43, 0.0 }
 0x2be   : > { %v823_v45 = vsel %vm266_vm1, %v2132_v44, 0.0  ;;  %v2138_v47 = vpop.eup %1802 }
 0x2bf   : > { %v835_v50 = vsel %vm266_vm1, %v2138_v47, 0.0 }
 0x2cd   : > { %797 = vadd.xlane.f32.xlu0 %v796_v18 }
 0x2cf   : > { %800 = vadd.xlane.f32.xlu1 %v799_v14 }
 0x2d1   : > { %809 = vadd.xlane.f32.xlu0 %v808_v20 }
 0x2d3   : > { %821 = vadd.xlane.f32.xlu1 %v820_v63 }
 0x2d5   : > { %812 = vadd.xlane.f32.xlu0 %v811_v12 }
 0x2d7   : > { %833 = vadd.xlane.f32.xlu1 %v832_v17 }
 0x2d9   : > { %824 = vadd.xlane.f32.xlu0 %v823_v45 }
 0x2dd   : > { %836 = vadd.xlane.f32.xlu0 %v835_v50 }
 0x2e8   : > { %884 = vrot.lane.b32.xlu1 %v1891_v0, %s1848_s6 }
 0x2ec   : > { %1072 = vrot.lane.b32.xlu1 %v1895_v2, %s1848_s6 }
 0x2f0   : > { %1166 = vrot.lane.b32.xlu1 %v1901_v7, %s1848_s6 }
 0x2f3   : > { %978 = vrot.lane.b32.xlu0 %v1893_v1, %s1848_s6 }
 0x30b   : > { %v804_v29 = vpop.xlane.xlu1 %803 }
 0x30c   : > { %1804 = vrcp.f32 %v804_v29 }
 0x30d   : > { %v807_v52 = vpop.xlane.xlu0 %806 }
 0x30e   : > { %1806 = vrcp.f32 %v807_v52 }
 0x313   : > { %v816_v51 = vpop.xlane.xlu1 %815 }
 0x316   : > { %v1805_v49 = vpop.eup %1804 }
 0x317   : > { %v819_v55 = vpop.xlane.xlu0 %818  ;;  %v862_v59 = vmul.f32 %v1805_v49, %v2059_v40 }
 0x318   : > { %v1807_v35 = vpop.eup %1806  ;;  %1808 = vrcp.f32 %v819_v55 }
 0x319   : > { %v863_v0 = vmul.f32 %v1807_v35, %v2063_v42  ;;  %1810 = vrcp.f32 %v816_v51 }
 0x31b   : > { %v877_v2 = vpack.c.bf16 %v863_v0, %v862_v59  ;;  %v828_v7 = vpop.xlane.xlu1 %827 }
 0x31d   : > { %1657 = vmatmul.mubr.msk.bf16.vlgmr.msra.gmra.mrb[20].mxu1 %vm266_vm1, %v877_v2  ;;  %v831_v1 = vpop.xlane.xlu0 %830 }
 0x31e   : > { %1668 = vmatprep.mubr.msk.bf16.mxu1 %vm1846_vm0, %v1845_v16  ;;  %1812 = vrcp.f32 %v831_v1 }
 0x31f   : > { %1814 = vrcp.f32 %v828_v7 }
 0x322   : > { %v1809_v62 = vpop.eup %1808 }
 0x323   : > { %v1811_v56 = vpop.eup %1810  ;;  %v867_v40 = vmul.f32 %v1809_v62, %v2074_v53  ;;  %v840_v5 = vpop.xlane.xlu1 %839 }
 0x324   : > { %v866_v42 = vmul.f32 %v1811_v56, %v2069_v46 }
 0x325   : > { %v843_v48 = vpop.xlane.xlu0 %842 }
 0x326   : > { %1816 = vrcp.f32 %v843_v48  ;;  %v879_v9 = vpack.c.bf16 %v867_v40, %v866_v42 }
 0x327   : > { %1818 = vrcp.f32 %v840_v5  ;;  %v1120_v15 = vpop.permute.xlu1 %1119 }
 0x328   : > { %v1813_v13 = vpop.eup %1812 }
 0x329   : > { %v1026_v8 = vpop.permute.xlu0 %1025  ;;  %v1815_v19 = vpop.eup %1814  ;;  %v871_v53 = vmul.f32 %v1813_v13, %v2083_v4 }
 0x32a   : > { %1667 = vmatpush3.bf16.msra.mxu1 %v1026_v8  ;;  %v870_v46 = vmul.f32 %v1815_v19, %v2079_v54 }
 0x32b   : > { %1678 = vmatprep.subr.bf16.mxu1 %v1845_v16  ;;  %v1214_v24 = vpop.permute.xlu1 %1213 }
 0x32c   : > { %v881_v21 = vpack.c.bf16 %v871_v53, %v870_v46 }
 0x32d   : > { %1669 = vmatmul.mubr.msk.bf16.vlgmr.msra.gmra.mrb[24].mxu1 %vm266_vm1, %v879_v9 }
 0x32e   : > { %1679 = vmatpush3.bf16.msra.mxu1 %v1120_v15  ;;  %1680 = vmatprep.mubr.msk.bf16.mxu1 %vm1846_vm0, %v1845_v16 }
 0x32f   : > { %1690 = vmatprep.subr.bf16.mxu1 %v1845_v16 }
 0x330   : > { %v1817_v22 = vpop.eup %1816 }
 0x331   : > { %v1819_v25 = vpop.eup %1818  ;;  %v875_v26 = vmul.f32 %v1817_v22, %v2091_v11 }
 0x332   : > { %v874_v28 = vmul.f32 %v1819_v25, %v2087_v6 }
 0x334   : > { %v883_v30 = vpack.c.bf16 %v875_v26, %v874_v28 }
 0x335   : > { %1681 = vmatmul.mubr.msk.bf16.vlgmr.msra.gmra.mrb[28].mxu1 %vm266_vm1, %v881_v21 }
 0x336   : > { %1691 = vmatpush3.bf16.msra.mxu1 %v1214_v24  ;;  %1692 = vmatprep.mubr.msk.bf16.mxu1 %vm1846_vm0, %v1845_v16 }
 0x33d   : > { %1693 = vmatmul.mubr.msk.bf16.vlgmr.msra.gmra.mrb[32].mxu1 %vm266_vm1, %v883_v30 }
 0x35a   : > { %v798_v4 = vpop.xlane.xlu0 %797 }
 0x35b   : > { %1820 = vrcp.f32 %v798_v4 }
 0x35c   : > { %v801_v54 = vpop.xlane.xlu1 %800 }
 0x35d   : > { %1822 = vrcp.f32 %v801_v54 }
 0x35e   : > { %v810_v32 = vpop.xlane.xlu0 %809 }
 0x35f   : > { %1824 = vrcp.f32 %v810_v32 }
 0x360   : > { %v822_v27 = vpop.xlane.xlu1 %821 }
 0x362   : > { %v813_v33 = vpop.xlane.xlu0 %812 }
 0x363   : > { %1826 = vrcp.f32 %v813_v33 }
 0x364   : > { %v834_v34 = vpop.xlane.xlu1 %833 }
 0x365   : > { %v1821_v31 = vpop.eup %1820 }
 0x366   : > { %v825_v57 = vpop.xlane.xlu0 %824  ;;  %v860_v11 = vmul.f32 %v1821_v31, %v2110_v38 }
 0x367   : > { %v1823_v36 = vpop.eup %1822  ;;  %1828 = vrcp.f32 %v825_v57 }
 0x368   : > { %v861_v6 = vmul.f32 %v1823_v36, %v2112_v39  ;;  %v885_v60 = vpop.permute.xlu1 %884  ;;  %1830 = vrcp.f32 %v822_v27 }
 0x369   : > { %1649 = vmatpush3.bf16.msra.mxu0 %v885_v60  ;;  %v1825_v10 = vpop.eup %1824 }
 0x36a   : > { %v837_v37 = vpop.xlane.xlu0 %836  ;;  %v876_v3 = vpack.c.bf16 %v861_v6, %v860_v11  ;;  %1660 = vmatprep.subr.bf16.mxu0 %v1845_v16  ;;  %v864_v39 = vmul.f32 %v1825_v10, %v2116_v23 }
 0x36b   : > { %1832 = vrcp.f32 %v837_v37 }
 0x36c   : > { %1651 = vmatmul.mubr.msk.bf16.vlgmr.msra.gmra.mrb[12].mxu0 %vm266_vm1, %v876_v3  ;;  %v1073_v20 = vpop.permute.xlu1 %1072  ;;  %1834 = vrcp.f32 %v834_v34 }
 0x36d   : > { %v1827_v58 = vpop.eup %1826  ;;  %1662 = vmatprep.mubr.msk.bf16.mxu0 %vm1846_vm0, %v1845_v16 }
 0x36e   : > { %v865_v18 = vmul.f32 %v1827_v58, %v2124_v61  ;;  %v979_v38 = vpop.permute.xlu0 %978 }
 0x36f   : > { %1661 = vmatpush3.bf16.msra.mxu0 %v979_v38 }
 0x370   : > { %1672 = vmatprep.subr.bf16.mxu0 %v1845_v16  ;;  %v878_v14 = vpack.c.bf16 %v865_v18, %v864_v39  ;;  %v1167_v45 = vpop.permute.xlu1 %1166 }
 0x371   : > { %v1829_v63 = vpop.eup %1828 }
 0x372   : > { %v1831_v12 = vpop.eup %1830  ;;  %v869_v61 = vmul.f32 %v1829_v63, %v2132_v44 }
 0x373   : > { %v868_v23 = vmul.f32 %v1831_v12, %v2120_v41  ;;  %v1766_v41 = vld [vmem:[%s2230_s2] sm:$0xff]  }
 0x374   : > { %1663 = vmatmul.mubr.msk.bf16.vlgmr.msra.gmra.mrb[16].mxu0 %vm266_vm1, %v878_v14 }
 0x375   : > { %1673 = vmatpush3.bf16.msra.mxu0 %v1073_v20  ;;  %1674 = vmatprep.mubr.msk.bf16.mxu0 %vm1846_vm0, %v1845_v16  ;;  %v880_v17 = vpack.c.bf16 %v869_v61, %v868_v23  ;;  %v1833_v50 = vpop.eup %1832 }
 0x376   : > { %1684 = vmatprep.subr.bf16.mxu0 %v1845_v16  ;;  %v1835_v29 = vpop.eup %1834  ;;  %v873_v52 = vmul.f32 %v1833_v50, %v2138_v47 }
 0x377   : > { %v872_v49 = vmul.f32 %v1835_v29, %v2128_v43 }
 0x379   : > { %v882_v55 = vpack.c.bf16 %v873_v52, %v872_v49  ;;  %v1535_v49 = vld [vmem:[%s2231_s3] ss:$0 sm:$0xff] }
 0x37c   : > { %1675 = vmatmul.mubr.msk.bf16.vlgmr.msra.gmra.mrb[20].mxu0 %vm266_vm1, %v880_v17 }
 0x37d   : > { %1685 = vmatpush3.bf16.msra.mxu0 %v1167_v45  ;;  %1686 = vmatprep.mubr.msk.bf16.mxu0 %vm1846_vm0, %v1845_v16  ;;  %v1767_v16 = vld [vmem:[%s2230_s2 + $0x8] sm:$0xff]  }
 0x37e   : > { %1696 = vmatprep.subr.bf16.mxu0 %v1766_v41 }
 0x384   : > { %1687 = vmatmul.mubr.msk.bf16.vlgmr.msra.gmra.mrb[24].mxu0 %vm266_vm1, %v882_v55 }
 0x385   : > { %1697 = vmatpush3.bf16.msra.mxu0 %v1766_v41 }
 0x386   : > { %1698 = vmatprep.subr.bf16.mxu0 %v1767_v16 }
 0x389   : > { %1699 = vmatpush3.bf16.msra.mxu0 %v1767_v16 }
 0x3f0   : > { %v971_v44 = vpop.f32.mrb[20].mxu1 }
 0x3f1   : > { %v1658_v35 = vpop.f32.mrb[21].mxu1 }
 0x3f2   : > { %v974_v59 = vpop.f32.mrb[22].mxu1 }
 0x3f3   : > { %v1742_v0 = vpack.i.bf16 %v974_v59, %v971_v44  ;;  %v1659_v51 = vpop.f32.mrb[23].mxu1 }
 0x3f5   : > { %1743 = vrot.lane.b32.xlu0 %v1742_v0, %s1849_s9 }
 0x400   : > { %v1065_v43 = vpop.f32.mrb[24].mxu1 }
 0x401   : > { %v1670_v47 = vpop.f32.mrb[25].mxu1 }
 0x402   : > { %v1068_v2 = vpop.f32.mrb[26].mxu1 }
 0x403   : > { %v1747_v1 = vpack.i.bf16 %v1068_v2, %v1065_v43  ;;  %v1671_v7 = vpop.f32.mrb[27].mxu1 }
 0x405   : > { %1748 = vrot.lane.b32.xlu1 %v1747_v1, %s1849_s9 }
 0x408   : > { %v1159_v62 = vpop.f32.mrb[28].mxu1 }
 0x409   : > { %v1682_v48 = vpop.f32.mrb[29].mxu1 }
 0x40a   : > { %v1162_v56 = vpop.f32.mrb[30].mxu1 }
 0x40b   : > { %v1752_v40 = vpack.i.bf16 %v1162_v56, %v1159_v62  ;;  %v1683_v5 = vpop.f32.mrb[31].mxu1 }
 0x40d   : > { %1753 = vrot.lane.b32.xlu0 %v1752_v40, %s1849_s9 }
 0x410   : > { %v1253_v42 = vpop.f32.mrb[32].mxu1 }
 0x411   : > { %v1694_v8 = vpop.f32.mrb[33].mxu1 }
 0x412   : > { %v1256_v9 = vpop.f32.mrb[34].mxu1 }
 0x413   : > { %v1757_v13 = vpack.i.bf16 %v1256_v9, %v1253_v42  ;;  %v1695_v15 = vpop.f32.mrb[35].mxu1 }
 0x415   : > { %1758 = vrot.lane.b32.xlu1 %v1757_v13, %s1849_s9 }
 0x43f   : > { %v924_v19 = vpop.f32.mrb[12].mxu0 }
 0x440   : > { %v1652_v53 = vpop.f32.mrb[13].mxu0 }
 0x441   : > { %v927_v46 = vpop.f32.mrb[14].mxu0 }
 0x442   : > { %v1653_v21 = vpop.f32.mrb[15].mxu0 }
 0x447   : > { %v1018_v22 = vpop.f32.mrb[16].mxu0 }
 0x448   : > { %v1664_v24 = vpop.f32.mrb[17].mxu0 }
 0x449   : > { %v1021_v25 = vpop.f32.mrb[18].mxu0 }
 0x44a   : > { %v1665_v26 = vpop.f32.mrb[19].mxu0 }
 0x44f   : > { %v1112_v28 = vpop.f32.mrb[20].mxu0 }
 0x450   : > { %v1676_v30 = vpop.f32.mrb[21].mxu0 }
 0x451   : > { %v1115_v4 = vpop.f32.mrb[22].mxu0 }
 0x452   : > { %v1677_v54 = vpop.f32.mrb[23].mxu0 }
 0x457   : > { %v1206_v32 = vpop.f32.mrb[24].mxu0 }
 0x458   : > { %v1688_v27 = vpop.f32.mrb[25].mxu0 }
 0x459   : > { %v1209_v33 = vpop.f32.mrb[26].mxu0 }
 0x45a   : > { %v1689_v34 = vpop.f32.mrb[27].mxu0 }
 0x467   : > { %v1744_v31 = vpop.permute.xlu0 %1743 }
 0x468   : > { %v1746_v57 = vunpack.i.h.bf16 %v1744_v31  ;;  %v1745_v36 = vunpack.i.l.bf16 %v1744_v31 }
 0x46a   : > { %v1292_v11 = vsel %vm266_vm1, %v924_v19, %v1745_v36  ;;  %v1293_v6 = vsel %vm266_vm1, %v927_v46, %v1746_v57 }
 0x46b   : > { %v1304_v60 = vpack.c.bf16 %v1293_v6, %v1292_v11 }
 0x46d   : > { %1700 = vmatprep.mubr.msk.bf16.mxu0 %vm1327_vm2, %v1304_v60 }
 0x477   : > { %v1749_v37 = vpop.permute.xlu1 %1748 }
 0x478   : > { %v1751_v3 = vunpack.i.h.bf16 %v1749_v37  ;;  %v1750_v10 = vunpack.i.l.bf16 %v1749_v37 }
 0x47a   : > { %v1295_v58 = vsel %vm266_vm1, %v1021_v25, %v1751_v3  ;;  %v1294_v18 = vsel %vm266_vm1, %v1018_v22, %v1750_v10 }
 0x47b   : > { %v1305_v38 = vpack.c.bf16 %v1295_v58, %v1294_v18 }
 0x47d   : > { %1701 = vmatmul.mubr.msk.bf16.vlgmr.msra.gmra.mrb[28].mxu0 %vm1327_vm2, %v1305_v38 }
 0x47f   : > { %v1754_v39 = vpop.permute.xlu0 %1753 }
 0x480   : > { %v1756_v14 = vunpack.i.h.bf16 %v1754_v39  ;;  %v1755_v20 = vunpack.i.l.bf16 %v1754_v39 }
 0x482   : > { %v1296_v63 = vsel %vm266_vm1, %v1112_v28, %v1755_v20  ;;  %v1297_v12 = vsel %vm266_vm1, %v1115_v4, %v1756_v14 }
 0x483   : > { %v1306_v61 = vpack.c.bf16 %v1297_v12, %v1296_v63 }
 0x485   : > { %1704 = vmatprep.mubr.msk.bf16.mxu0 %vm1327_vm2, %v1306_v61 }
 0x487   : > { %v1759_v23 = vpop.permute.xlu1 %1758 }
 0x488   : > { %v1761_v17 = vunpack.i.h.bf16 %v1759_v23  ;;  %v1760_v45 = vunpack.i.l.bf16 %v1759_v23 }
 0x48a   : > { %v1299_v50 = vsel %vm266_vm1, %v1209_v33, %v1761_v17  ;;  %v1298_v29 = vsel %vm266_vm1, %v1206_v32, %v1760_v45 }
 0x48b   : > { %v1307_v52 = vpack.c.bf16 %v1299_v50, %v1298_v29 }
 0x48d   : > { %1705 = vmatmul.mubr.msk.bf16.gmra.mrb[32].mxu0 %vm1327_vm2, %v1307_v52 }
 0x550   : > { %v1702_v55 = vpop.f32.mrb[28].mxu0 }
 0x551   : > { %v1383_v41 = vadd.f32 %v1702_v55, %v1535_v49  ;;  %v1374_v44 = vpop.f32.mrb[29].mxu0 }
 0x552   : > { %v1375_v35 = vadd.f32 %v1535_v49, %v1374_v44  ;;  %v1703_v59 = vpop.f32.mrb[30].mxu0 }
 0x553   : > { %v1386_v0 = vadd.f32 %v1703_v59, %v1535_v49  ;;  %v1377_v51 = vpop.f32.mrb[31].mxu0  ;;  %v1556_v47 = vpack.c.bf16 %v1383_v41, %v1383_v41 }
 0x554   : > { %v1554_v16 = vpack.c.bf16 %v1375_v35, %v1375_v35  ;;  %v1378_v43 = vadd.f32 %v1535_v49, %v1377_v51 }
 0x555   : > { %1440 = vst.msk [vmem:[%s204_s19 + $0x8] sm:$0xf] %vm1437_vm3, %v1556_v47  ;;  %v1557_v1 = vpack.c.bf16 %v1386_v0, %v1386_v0 }
 0x556   : > { %1438 = vst.msk [vmem:[%s204_s19] sm:$0xf] %vm1437_vm3, %v1554_v16  ;;  %v1555_v2 = vpack.c.bf16 %v1378_v43, %v1378_v43 }
 0x557   : > { %1441 = vst.msk [vmem:[%s204_s19 + $0xc] sm:$0xf] %vm1437_vm3, %v1557_v1 }
 0x558   : > { %1439 = vst.msk [vmem:[%s204_s19 + $0x4] sm:$0xf] %vm1437_vm3, %v1555_v2 }
 0x560   : > { %v1706_v7 = vpop.f32.mrb[32].mxu0 }
 0x561   : > { %v1399_v62 = vadd.f32 %v1706_v7, %v1535_v49  ;;  %v1390_v48 = vpop.f32.mrb[33].mxu0 }
 0x562   : > { %v1391_v56 = vadd.f32 %v1535_v49, %v1390_v48  ;;  %v1707_v40 = vpop.f32.mrb[34].mxu0 }
 0x563   : > { %v1402_v5 = vadd.f32 %v1707_v40, %v1535_v49  ;;  %v1393_v42 = vpop.f32.mrb[35].mxu0  ;;  %v1560_v13 = vpack.c.bf16 %v1399_v62, %v1399_v62 }
 0x564   : > { %v1558_v8 = vpack.c.bf16 %v1391_v56, %v1391_v56  ;;  %v1394_v9 = vadd.f32 %v1535_v49, %v1393_v42 }
 0x565   : > { %1444 = vst.msk [vmem:[%s204_s19 + $0x18] sm:$0xf] %vm1437_vm3, %v1560_v13  ;;  %v1561_v19 = vpack.c.bf16 %v1402_v5, %v1402_v5 }
 0x566   : > { %1442 = vst.msk [vmem:[%s204_s19 + $0x10] sm:$0xf] %vm1437_vm3, %v1558_v8  ;;  %v1559_v15 = vpack.c.bf16 %v1394_v9, %v1394_v9 }
 0x567   : > { %1445 = vst.msk [vmem:[%s204_s19 + $0x1c] sm:$0xf] %vm1437_vm3, %v1561_v19 }
 0x568   : > { %1443 = vst.msk [vmem:[%s204_s19 + $0x14] sm:$0xf] %vm1437_vm3, %v1559_v15 }
 0x569 PF: > { %s14_s15 = sadd.s32 1, %s1842_s15  }
 0x56a   : > { %p11_p4 = scmp.ge.s32.totalorder %s14_s15, 4  }
 0x56c   :  { %13 = sbr.rel (!%p11_p4) target bundleno = 1 (0x1), region = 66 }

// kernel: swin_forward.23
= control target key start
LH: loop header
LB: loop body
LE: loop exit
PB: predicated region body
PF: predicated region fallthrough
CT: control target
= control target key end

     0   :  { %s559_s18 = smov 0   ;;  %s618_s0 = inlined_call_operand.vmem [shape: bf16[32,64], index: 0, kind: input, shape index: {}]   ;;  %s619_s1 = inlined_call_operand.vmem [shape: f32[1,64], index: 1, kind: input, shape index: {}]   ;;  %s620_s2 = inlined_call_operand.vmem [shape: f32[1,64], index: 2, kind: input, shape index: {}]   ;;  %s621_s3 = inlined_call_operand.vmem [shape: bf16[64,192], index: 3, kind: input, shape index: {}]   ;;  %s622_s4 = inlined_call_operand.vmem [shape: f32[1,192], index: 4, kind: input, shape index: {}]   ;;  %s623_s5 = inlined_call_operand.vmem [shape: bf16[32,192], index: 5, kind: output, shape index: {}]  }
   0x1 LB: > { %s463_s19 = sadd.s32 4294967295, %s526_s18   ;;  %p467_p0 = scmp.ge.s32.totalorder %s526_s18, 1  ;;  %s526_s18 = sphi %s559_s18, %s15_s18  }
   0x2   : > { %p188_p1 = scmp.lt.s32.totalorder %s526_s18, 3 }
   0x4   : > { %p189_p2 = pnand %p467_p0, %p188_p1 }
   0x5   : > { %s468_s20 = sshll.u32 (!%p189_p2), %s463_s19, 1  ;;  %vm237_vm0 = vcmask (!%p189_p2), 523264   ;;  %v504_v15 = vld [vmem:[%s621_s3 + $0x4] ss:$8 sps:$4 sm:$0xff] (!%p189_p2)   ;;  %v506_v16 = vld [vmem:[%s621_s3] ss:$8 sps:$4 sm:$0xff] (!%p189_p2)   ;;  %v292_v41 = vlaneseq (!%p189_p2) }
   0x6   : > { %192 = sbr.rel (%p189_p2) target bundleno = 558 (0x22e), region = 40  ;;  %p218_p3 = scmp.lt.s32.totalorder (!%p189_p2), %s468_s20, 3  ;;  %345 = vmatprep.subr.bf16.mxu0 (!%p189_p2), %v504_v15  ;;  %v507_v17 = vld [vmem:[%s621_s3 + $0x14] ss:$8 sps:$4 sm:$0xff] (!%p189_p2)   ;;  %v509_v18 = vld [vmem:[%s621_s3 + $0x10] ss:$8 sps:$4 sm:$0xff] (!%p189_p2)  }
   0x7   : > { %346 = vmatpush1.bf16.msra.mxu0 (!%p189_p2), %v506_v16  ;;  %v510_v19 = vld [vmem:[%s621_s3 + $0x24] ss:$8 sps:$4 sm:$0xff] (!%p189_p2)   ;;  %v512_v20 = vld [vmem:[%s621_s3 + $0x20] ss:$8 sps:$4 sm:$0xff] (!%p189_p2)   ;;  %v513_v21 = vld [vmem:[%s621_s3 + $0x34] ss:$8 sps:$4 sm:$0xff] (!%p189_p2)  }
   0x8   : > { %347 = vmatprep.subr.bf16.mxu0 (!%p189_p2), %v507_v17  ;;  %v515_v22 = vld [vmem:[%s621_s3 + $0x30] ss:$8 sps:$4 sm:$0xff] (!%p189_p2)   ;;  %v528_v23 = vmov (!%p189_p2), 0   ;;  %v473_v32 = vld [vmem:[%s619_s1] ss:$0 sm:$0xff] (!%p189_p2)  ;;  %v293_v42 = vshrl.u32 (!%p189_p2), %v292_v41, 7 }
   0x9   : > { %377 = vmatprep.mubr.bf16.mxu0 (!%p189_p2), %v528_v23  ;;  %v474_v36 = vld [vmem:[%s620_s2] ss:$0 sm:$0xff] (!%p189_p2)  ;;  %vm400_vm1 = vcmask (!%p189_p2), 1043456   ;;  %vm401_vm2 = vcmask (!%p189_p2), 523268  }
   0xa   : > { %v294_v43 = vsub.s32 (!%p189_p2), 0, %v293_v42  ;;  %v290_v44 = vld [vmem:[%s622_s4] sm:$0x3] (!%p189_p2)  ;;  %v298_v45 = vsub.s32 (!%p189_p2), 1, %v293_v42  ;;  %vm402_vm3 = vmor (!%p189_p2), %vm401_vm2, %vm400_vm1 }
   0xb   : > { %348 = vmatpush1.bf16.msra.mxu0 (!%p189_p2), %v509_v18 }
   0xc   : > { %349 = vmatprep.subr.bf16.mxu0 (!%p189_p2), %v510_v19  ;;  %v295_v46 = vrot.slane (!%p189_p2), %v290_v44, %v294_v43  ;;  %v299_v47 = vrot.slane (!%p189_p2), %v290_v44, %v298_v45 }
   0xd   : > { %s625_s20 = smov (!%p218_p3, %s468_s20), 3 }
   0xe   : > { %s469_s21 = sshll.u32 %s625_s20, 2 }
   0xf   : > { %s221_s24 = scalar_lea.vmem %s618_s0, %s469_s21  ;;  %350 = vmatpush1.bf16.msra.mxu0 %v512_v20 }
  0x10   : > { %v492_v0 = vld [vmem:[%s221_s24] sm:$0xff]   ;;  %351 = vmatprep.subr.bf16.mxu0 %v513_v21  ;;  %s488_s24 = sshll.u32 %s625_s20, 3 }
  0x11   : > { %v493_v1 = vunpack.c.l.bf16 %v492_v0  ;;  %v494_v2 = vunpack.c.h.bf16 %v492_v0  ;;  %s228_s27 = scalar_lea.vmem %s623_s5, %s488_s24 }
  0x13   : > { %v238_v3 = vsel %vm237_vm0, %v493_v1, 0.0  ;;  %v241_v4 = vsel %vm237_vm0, %v494_v2, 0.0  ;;  %352 = vmatpush1.bf16.msra.mxu0 %v515_v22 }
  0x14   : > { %239 = vadd.xlane.f32.xlu0 %v238_v3 }
  0x18   : > { %242 = vadd.xlane.f32.xlu0 %v241_v4 }
  0xa1   : > { %v240_v5 = vpop.xlane.xlu0 %239 }
  0xa2   : > { %v245_v6 = vmul.f32 0.015625, %v240_v5 }
  0xa4   : > { %v247_v7 = vsub.f32 %v493_v1, %v245_v6 }
  0xa5   : > { %v243_v8 = vpop.xlane.xlu0 %242 }
  0xa6   : > { %v246_v9 = vmul.f32 0.015625, %v243_v8  ;;  %v249_v10 = vmul.f32 %v247_v7, %v247_v7 }
  0xa8   : > { %v248_v11 = vsub.f32 %v494_v2, %v246_v9  ;;  %v251_v12 = vsel %vm237_vm0, %v249_v10, 0.0 }
  0xa9   : > { %252 = vadd.xlane.f32.xlu1 %v251_v12 }
  0xaa   : > { %v250_v13 = vmul.f32 %v248_v11, %v248_v11 }
  0xac   : > { %v254_v14 = vsel %vm237_vm0, %v250_v13, 0.0 }
  0xad   : > { %255 = vadd.xlane.f32.xlu1 %v254_v14 }
 0x136   : > { %v253_v24 = vpop.xlane.xlu1 %252 }
 0x137   : > { %v257_v25 = vmul.f32 0.015625, %v253_v24 }
 0x139   : > { %v259_v26 = vadd.f32 1e-05, %v257_v25 }
 0x13a   : > { %v256_v27 = vpop.xlane.xlu1 %255 }
 0x13b   : > { %516 = vrsqrt.f32 %v259_v26  ;;  %v258_v28 = vmul.f32 0.015625, %v256_v27 }
 0x13d   : > { %v260_v29 = vadd.f32 1e-05, %v258_v28 }
 0x13f   : > { %518 = vrsqrt.f32 %v260_v29 }
 0x145   : > { %v517_v30 = vpop.eup %516 }
 0x146   : > { %v263_v31 = vmul.f32 %v517_v30, %v247_v7 }
 0x148   : > { %v271_v35 = vmul.f32 %v473_v32, %v263_v31 }
 0x149   : > { %v519_v33 = vpop.eup %518 }
 0x14a   : > { %v264_v34 = vmul.f32 %v519_v33, %v248_v11  ;;  %v279_v38 = vadd.f32 %v474_v36, %v271_v35 }
 0x14c   : > { %v272_v37 = vmul.f32 %v473_v32, %v264_v34 }
 0x14e   : > { %v280_v39 = vadd.f32 %v474_v36, %v272_v37 }
 0x150   : > { %v289_v40 = vpack.c.bf16 %v280_v39, %v279_v38 }
 0x152   : > { %483 = vmatmul.mubr.msk.bf16.vlgmr.msra.gmra.mrb[0].mxu0 %vm237_vm0, %v289_v40 }
 0x225   : > { %v379_v48 = vpop.f32.mrb[0].mxu0 }
 0x226   : > { %v380_v49 = vadd.f32 %v379_v48, %v295_v46  ;;  %v381_v50 = vpop.f32.mrb[1].mxu0 }
 0x227   : > { %v382_v51 = vadd.f32 %v381_v50, %v299_v47  ;;  %v383_v52 = vpop.f32.mrb[2].mxu0 }
 0x228   : > { %v384_v53 = vadd.f32 %v383_v52, %v295_v46  ;;  %v385_v54 = vpop.f32.mrb[3].mxu0 }
 0x229   : > { %v489_v55 = vpack.c.bf16 %v382_v51, %v380_v49  ;;  %v386_v56 = vadd.f32 %v385_v54, %v299_v47 }
 0x22b   : > { %403 = vst.msk [vmem:[%s228_s27] sm:$0xff] %vm402_vm3, %v489_v55  ;;  %v490_v57 = vpack.c.bf16 %v386_v56, %v384_v53 }
 0x22d   : > { %404 = vst.msk [vmem:[%s228_s27 + $0x8] sm:$0xff] %vm402_vm3, %v490_v57 }
 0x22e PF: > { %s15_s18 = sadd.s32 1, %s526_s18  }
 0x22f   : > { %p12_p4 = scmp.ge.s32.totalorder %s15_s18, 4  }
 0x231   :  { %14 = sbr.rel (!%p12_p4) target bundleno = 1 (0x1), region = 70 }

// kernel: swin_forward.20
= control target key start
LH: loop header
LB: loop body
LE: loop exit
PB: predicated region body
PF: predicated region fallthrough
CT: control target
= control target key end

     0   :  { %s1931_s18 = smov 0   ;;  %s2340_s0 = inlined_call_operand.vmem [shape: bf16[8,16,96], index: 0, kind: input, shape index: {}]   ;;  %s2341_s1 = inlined_call_operand.vmem [shape: f32[2,16,16], index: 1, kind: input, shape index: {}]   ;;  %s2342_s2 = inlined_call_operand.vmem [shape: f32[4,16,16], index: 2, kind: input, shape index: {}]   ;;  %s2343_s3 = inlined_call_operand.vmem [shape: bf16[32,32], index: 3, kind: input, shape index: {}]   ;;  %s2344_s4 = inlined_call_operand.vmem [shape: f32[1,32], index: 4, kind: input, shape index: {}]   ;;  %s2345_s5 = inlined_call_operand.vmem [shape: bf16[8,16,32], index: 5, kind: output, shape index: {}]  }
   0x1 LB: > { %s1555_s19 = sadd.s32 4294967295, %s1893_s18   ;;  %p1559_p0 = scmp.ge.s32.totalorder %s1893_s18, 1  ;;  %s1893_s18 = sphi %s1931_s18, %s15_s18  }
   0x2   : > { %p189_p1 = scmp.lt.s32.totalorder %s1893_s18, 3 }
   0x4   : > { %p190_p2 = pnand %p1559_p0, %p189_p1 }
   0x5   : > { %s1560_s20 = sshll.u32 (!%p190_p2), %s1555_s19, 2  ;;  %s1895_s25 = smov (!%p190_p2), 112   ;;  %v1896_v16 = vmov (!%p190_p2), 0.0   ;;  %vm1897_vm0 = vmmov (!%p190_p2), 0   ;;  %vm293_vm1 = vcmask (!%p190_p2), 130048   ;;  %v2036_v54 = vld [vmem:[%s2341_s1 + $0x10] sm:$0xff] (!%p190_p2) }
   0x6   : > { %193 = sbr.rel (%p190_p2) target bundleno = 1387 (0x56b), region = 40  ;;  %p220_p3 = scmp.lt.s32.totalorder (!%p190_p2), %s1560_s20, 7  ;;  %1651 = vmatprep.subr.bf16.mxu1 (!%p190_p2), %v1896_v16  ;;  %1653 = vmatprep.mubr.msk.bf16.mxu1 (!%p190_p2), %vm1897_vm0, %v1896_v16  ;;  %v2041_v58 = vld [vmem:[%s2341_s1 + $0x18] sm:$0xff] (!%p190_p2)  ;;  %v2047_v62 = vld [vmem:[%s2342_s2] sm:$0xff] (!%p190_p2)  ;;  %vm1378_vm2 = vcmask (!%p190_p2), 261120   ;;  %vm1488_vm3 = vcmask (!%p190_p2), 257024  }
   0x7   : > { %1663 = vmatprep.subr.bf16.mxu0 (!%p190_p2), %v1896_v16  ;;  %1665 = vmatprep.mubr.msk.bf16.mxu0 (!%p190_p2), %vm1897_vm0, %v1896_v16  ;;  %s1898_s26 = smov (!%p190_p2), 96   ;;  %s1899_s29 = smov (!%p190_p2), 64  }
   0x8   : > { %s1900_s7 = smov (!%p190_p2), 16  }
   0xd   : > { %s2347_s20 = smov (!%p220_p3, %s1560_s20), 7 }
   0xe   : > { %s1603_s21 = sshll.u32 %s2347_s20, 3 }
   0xf   : > { %s224_s24 = scalar_lea.vmem %s2340_s0, %s1603_s21  ;;  %s231_s14 = scalar_lea.vmem %s2345_s5, %s1603_s21 }
  0x10   : > { %v1947_v0 = vld [vmem:[%s224_s24] sm:$0xff]   ;;  %v1949_v1 = vld [vmem:[%s224_s24 + $0x8] sm:$0xff]   ;;  %v1951_v2 = vld [vmem:[%s224_s24 + $0x10] sm:$0xff]  }
  0x11   : > { %v242_v3 = vunpack.c.l.bf16 %v1947_v0  ;;  %v243_v4 = vunpack.c.h.bf16 %v1947_v0  ;;  %v244_v5 = vunpack.c.l.bf16 %v1949_v1  ;;  %v245_v6 = vunpack.c.h.bf16 %v1949_v1  ;;  %v1957_v7 = vld [vmem:[%s224_s24 + $0x18] sm:$0xff]  }
  0x12   : > { %v246_v8 = vunpack.c.l.bf16 %v1951_v2  ;;  %v247_v9 = vunpack.c.h.bf16 %v1951_v2  ;;  %v248_v10 = vunpack.c.l.bf16 %v1957_v7  ;;  %v249_v11 = vunpack.c.h.bf16 %v1957_v7 }
  0x13   : > { %v1773_v12 = vpack.i.bf16 %v243_v4, %v242_v3  ;;  %v1778_v14 = vpack.i.bf16 %v245_v6, %v244_v5  ;;  %v2056_v4 = vld [vmem:[%s2342_s2 + $0x8] sm:$0xff] }
  0x14   : > { %v1783_v13 = vpack.i.bf16 %v247_v9, %v246_v8  ;;  %v1788_v15 = vpack.i.bf16 %v249_v11, %v248_v10 }
  0x15   : > { %1774 = vrot.lane.b32.xlu0 %v1773_v12, %s1895_s25 }
  0x16   : > { %1784 = vrot.lane.b32.xlu1 %v1783_v13, %s1895_s25  ;;  %v2068_v13 = vld [vmem:[%s2342_s2 + $0x10] sm:$0xff] }
  0x19   : > { %1779 = vrot.lane.b32.xlu0 %v1778_v14, %s1895_s25 }
  0x1a   : > { %1789 = vrot.lane.b32.xlu1 %v1788_v15, %s1895_s25 }
  0x1d   : > { %291 = vrot.lane.b32.xlu0 %v1947_v0, %s1898_s26 }
  0x87   : > { %v1775_v17 = vpop.permute.xlu0 %1774 }
  0x88   : > { %v1777_v18 = vunpack.i.h.bf16 %v1775_v17  ;;  %v1776_v19 = vunpack.i.l.bf16 %v1775_v17  ;;  %v1785_v20 = vpop.permute.xlu1 %1784 }
  0x89   : > { %v1787_v21 = vunpack.i.h.bf16 %v1785_v20  ;;  %v1786_v22 = vunpack.i.l.bf16 %v1785_v20  ;;  %v2074_v20 = vld [vmem:[%s2342_s2 + $0x18] sm:$0xff] }
  0x8a   : > { %v1970_v23 = vpack.c.bf16 %v1777_v18, %v1776_v19 }
  0x8b   : > { %v1780_v24 = vpop.permute.xlu0 %1779  ;;  %v1973_v27 = vpack.c.bf16 %v1787_v21, %v1786_v22 }
  0x8c   : > { %342 = vrot.lane.b32.xlu1 %v1970_v23, %s1898_s26  ;;  %v1782_v25 = vunpack.i.h.bf16 %v1780_v24  ;;  %v1781_v26 = vunpack.i.l.bf16 %v1780_v24  ;;  %v1790_v28 = vpop.permute.xlu1 %1789 }
  0x8d   : > { %v1792_v29 = vunpack.i.h.bf16 %v1790_v28  ;;  %v1791_v30 = vunpack.i.l.bf16 %v1790_v28 }
  0x8e   : > { %v1975_v31 = vpack.c.bf16 %v1782_v25, %v1781_v26 }
  0x8f   : > { %v292_v32 = vpop.permute.xlu0 %291  ;;  %v1979_v33 = vpack.c.bf16 %v1792_v29, %v1791_v30 }
  0x90   : > { %442 = vrot.lane.b32.xlu0 %v1975_v31, %s1898_s26  ;;  %542 = vrot.lane.b32.xlu1 %v1973_v27, %s1898_s26  ;;  %v298_v34 = vsel %vm293_vm1, %v292_v32, 0 }
  0x91   : > { %1652 = vmatpush3.bf16.xpose.msra.mxu1 %v298_v34 }
  0x92   : > { %1657 = vmatprep.subr.bf16.mxu1 %v1896_v16 }
  0x94   : > { %642 = vrot.lane.b32.xlu0 %v1979_v33, %s1898_s26  ;;  %392 = vrot.lane.b32.xlu1 %v1949_v1, %s1898_s26 }
  0x98   : > { %492 = vrot.lane.b32.xlu0 %v1951_v2, %s1898_s26  ;;  %592 = vrot.lane.b32.xlu1 %v1957_v7, %s1898_s26 }
  0x99   : > { %1654 = vmatmul.mubr.msk.bf16.vlgmr.msra.gmra.mrb[0].mxu1 %vm293_vm1, %v1947_v0 }
  0x9a   : > { %1659 = vmatprep.mubr.msk.bf16.mxu1 %vm1897_vm0, %v1896_v16 }
  0xfe   : > { %v343_v35 = vpop.permute.xlu1 %342 }
  0xff   : > { %v348_v36 = vsel %vm293_vm1, %v343_v35, 0  ;;  %v2088_v35 = vld [vmem:[%s2342_s2 + $0x20] sm:$0xff] }
 0x100   : > { %1658 = vmatpush3.bf16.xpose.msra.mxu1 %v348_v36 }
 0x101   : > { %1669 = vmatprep.subr.bf16.mxu1 %v1896_v16 }
 0x102   : > { %v443_v37 = vpop.permute.xlu0 %442  ;;  %v543_v38 = vpop.permute.xlu1 %542 }
 0x103   : > { %v448_v39 = vsel %vm293_vm1, %v443_v37, 0  ;;  %v548_v44 = vsel %vm293_vm1, %v543_v38, 0 }
 0x106   : > { %v393_v40 = vpop.permute.xlu1 %392  ;;  %v643_v42 = vpop.permute.xlu0 %642 }
 0x107   : > { %1660 = vmatmul.mubr.msk.bf16.vlgmr.msra.gmra.mrb[4].mxu1 %vm293_vm1, %v1970_v23  ;;  %v398_v41 = vsel %vm293_vm1, %v393_v40, 0  ;;  %v648_v47 = vsel %vm293_vm1, %v643_v42, 0  ;;  %v732_v42 = vld [vmem:[%s2342_s2 + $0x28] sm:$0xff] }
 0x108   : > { %1670 = vmatpush3.bf16.xpose.msra.mxu1 %v448_v39  ;;  %1671 = vmatprep.mubr.msk.bf16.mxu1 %vm1897_vm0, %v1896_v16 }
 0x109   : > { %1681 = vmatprep.subr.bf16.mxu1 %v1896_v16  ;;  %1664 = vmatpush3.bf16.xpose.msra.mxu0 %v398_v41 }
 0x10a   : > { %1675 = vmatprep.subr.bf16.mxu0 %v1896_v16  ;;  %v493_v43 = vpop.permute.xlu0 %492  ;;  %v593_v46 = vpop.permute.xlu1 %592 }
 0x10b   : > { %v498_v45 = vsel %vm293_vm1, %v493_v43, 0  ;;  %v598_v48 = vsel %vm293_vm1, %v593_v46, 0 }
 0x10f   : > { %1672 = vmatmul.mubr.msk.bf16.vlgmr.msra.gmra.mrb[8].mxu1 %vm293_vm1, %v1975_v31 }
 0x110   : > { %1682 = vmatpush3.bf16.xpose.msra.mxu1 %v548_v44  ;;  %1683 = vmatprep.mubr.msk.bf16.mxu1 %vm1897_vm0, %v1896_v16 }
 0x111   : > { %1693 = vmatprep.subr.bf16.mxu1 %v1896_v16  ;;  %1666 = vmatmul.mubr.msk.bf16.vlgmr.msra.gmra.mrb[0].mxu0 %vm293_vm1, %v1949_v1 }
 0x112   : > { %1676 = vmatpush3.bf16.xpose.msra.mxu0 %v498_v45  ;;  %1677 = vmatprep.mubr.msk.bf16.mxu0 %vm1897_vm0, %v1896_v16 }
 0x113   : > { %1687 = vmatprep.subr.bf16.mxu0 %v1896_v16 }
 0x117   : > { %1684 = vmatmul.mubr.msk.bf16.vlgmr.msra.gmra.mrb[12].mxu1 %vm293_vm1, %v1973_v27 }
 0x118   : > { %1694 = vmatpush3.bf16.xpose.msra.mxu1 %v648_v47  ;;  %1695 = vmatprep.mubr.msk.bf16.mxu1 %vm1897_vm0, %v1896_v16 }
 0x119   : > { %1678 = vmatmul.mubr.msk.bf16.vlgmr.msra.gmra.mrb[4].mxu0 %vm293_vm1, %v1951_v2  ;;  %1705 = vmatprep.subr.bf16.mxu1 %v1896_v16 }
 0x11a   : > { %1688 = vmatpush3.bf16.xpose.msra.mxu0 %v598_v48  ;;  %1689 = vmatprep.mubr.msk.bf16.mxu0 %vm1897_vm0, %v1896_v16  ;;  %v707_v48 = vld [vmem:[%s2341_s1] sm:$0xff] }
 0x11b   : > { %1699 = vmatprep.subr.bf16.mxu0 %v1896_v16 }
 0x11f   : > { %1696 = vmatmul.mubr.msk.bf16.vlgmr.msra.gmra.mrb[16].mxu1 %vm293_vm1, %v1979_v33 }
 0x120   : > { %1707 = vmatprep.mubr.msk.bf16.mxu1 %vm1897_vm0, %v1896_v16 }
 0x121   : > { %1690 = vmatmul.mubr.msk.bf16.vlgmr.msra.gmra.mrb[8].mxu0 %vm293_vm1, %v1957_v7 }
 0x122   : > { %1701 = vmatprep.mubr.msk.bf16.mxu0 %vm1897_vm0, %v1896_v16 }
 0x16c   : > { %v334_v49 = vpop.f32.mrb[0].mxu1 }
 0x16d   : > { %v1655_v50 = vpop.f32.mrb[1].mxu1  ;;  %v691_v47 = vmul.f32 0.25, %v334_v49 }
 0x16e   : > { %v337_v51 = vpop.f32.mrb[2].mxu1 }
 0x16f   : > { %v1656_v52 = vpop.f32.mrb[3].mxu1 }
 0x1da   : > { %v384_v53 = vpop.f32.mrb[4].mxu1 }
 0x1db   : > { %v693_v55 = vmul.f32 0.25, %v384_v53  ;;  %v1661_v56 = vpop.f32.mrb[5].mxu1  ;;  %v692_v53 = vmul.f32 0.25, %v337_v51 }
 0x1dc   : > { %v387_v57 = vpop.f32.mrb[6].mxu1  ;;  %v708_v56 = vld [vmem:[%s2341_s1 + $0x8] sm:$0xff] }
 0x1dd   : > { %v713_v59 = vadd.f32 %v2036_v54, %v693_v55  ;;  %v694_v60 = vmul.f32 0.25, %v387_v57  ;;  %v1662_v61 = vpop.f32.mrb[7].mxu1 }
 0x1de   : > { %v711_v61 = vadd.f32 %v707_v48, %v691_v47 }
 0x1df   : > { %v714_v63 = vadd.f32 %v2041_v58, %v694_v60  ;;  %v2051_v3 = vadd.f32 %v2047_v62, %v713_v59 }
 0x1e1   : > { %v757_v5 = vsel %vm293_vm1, %v2051_v3, -inf  ;;  %v2061_v6 = vadd.f32 %v2056_v4, %v714_v63 }
 0x1e2   : > { %758 = vmax.xlane.f32.xlu0 %v757_v5  ;;  %v484_v8 = vpop.f32.mrb[8].mxu1  ;;  %v733_v5 = vld [vmem:[%s2342_s2 + $0x30] sm:$0xff] }
 0x1e3   : > { %v697_v9 = vmul.f32 0.25, %v484_v8  ;;  %v1673_v10 = vpop.f32.mrb[9].mxu1  ;;  %v760_v11 = vsel %vm293_vm1, %v2061_v6, -inf }
 0x1e4   : > { %761 = vmax.xlane.f32.xlu1 %v760_v11  ;;  %v487_v12 = vpop.f32.mrb[10].mxu1  ;;  %v434_v14 = vpop.f32.mrb[0].mxu0 }
 0x1e5   : > { %v717_v15 = vadd.f32 %v2036_v54, %v697_v9  ;;  %v698_v17 = vmul.f32 0.25, %v487_v12  ;;  %v1674_v18 = vpop.f32.mrb[11].mxu1  ;;  %v1667_v19 = vpop.f32.mrb[1].mxu0  ;;  %v695_v60 = vmul.f32 0.25, %v434_v14 }
 0x1e6   : > { %v437_v21 = vpop.f32.mrb[2].mxu0 }
 0x1e7   : > { %v718_v22 = vadd.f32 %v2041_v58, %v698_v17  ;;  %v2078_v24 = vadd.f32 %v2068_v13, %v717_v15  ;;  %v1668_v25 = vpop.f32.mrb[3].mxu0  ;;  %v696_v11 = vmul.f32 0.25, %v437_v21  ;;  %v712_v15 = vadd.f32 %v708_v56, %v692_v53  ;;  %v734_v17 = vld [vmem:[%s2342_s2 + $0x38] sm:$0xff] }
 0x1e9   : > { %v769_v26 = vsel %vm293_vm1, %v2078_v24, -inf  ;;  %v2083_v28 = vadd.f32 %v2074_v20, %v718_v22  ;;  %v715_v22 = vadd.f32 %v707_v48, %v695_v60 }
 0x1ea   : > { %770 = vmax.xlane.f32.xlu0 %v769_v26  ;;  %v584_v29 = vpop.f32.mrb[12].mxu1 }
 0x1eb   : > { %v701_v30 = vmul.f32 0.25, %v584_v29  ;;  %v1685_v32 = vpop.f32.mrb[13].mxu1  ;;  %v772_v40 = vsel %vm293_vm1, %v2083_v28, -inf  ;;  %v2123_v29 = vadd.f32 %v2047_v62, %v711_v61 }
 0x1ec   : > { %v587_v34 = vpop.f32.mrb[14].mxu1  ;;  %v534_v36 = vpop.f32.mrb[4].mxu0 }
 0x1ed   : > { %v721_v37 = vadd.f32 %v2036_v54, %v701_v30  ;;  %v702_v38 = vmul.f32 0.25, %v587_v34  ;;  %v1686_v39 = vpop.f32.mrb[15].mxu1  ;;  %v1679_v41 = vpop.f32.mrb[5].mxu0  ;;  %v699_v25 = vmul.f32 0.25, %v534_v36  ;;  %v716_v30 = vadd.f32 %v708_v56, %v696_v11 }
 0x1ee   : > { %773 = vmax.xlane.f32.xlu0 %v772_v40  ;;  %v537_v43 = vpop.f32.mrb[6].mxu0  ;;  %v2130_v34 = vadd.f32 %v2056_v4, %v712_v15  ;;  %v2135_v36 = vadd.f32 %v2068_v13, %v715_v22 }
 0x1ef   : > { %v722_v44 = vadd.f32 %v2041_v58, %v702_v38  ;;  %v2098_v45 = vadd.f32 %v2088_v35, %v721_v37  ;;  %v1680_v46 = vpop.f32.mrb[7].mxu0  ;;  %v700_v32 = vmul.f32 0.25, %v537_v43  ;;  %v719_v37 = vadd.f32 %v707_v48, %v699_v25 }
 0x1f0   : > { %v751_v38 = vsel %vm293_vm1, %v2123_v29, -inf  ;;  %v2140_v40 = vadd.f32 %v2074_v20, %v716_v30  ;;  %v754_v4 = vsel %vm293_vm1, %v2130_v34, -inf  ;;  %v763_v43 = vsel %vm293_vm1, %v2135_v36, -inf }
 0x1f1   : > { %v781_v50 = vsel %vm293_vm1, %v2098_v45, -inf  ;;  %v2105_v52 = vadd.f32 %v732_v42, %v722_v44  ;;  %v720_v39 = vadd.f32 %v708_v56, %v700_v32  ;;  %v2147_v13 = vadd.f32 %v2088_v35, %v719_v37 }
 0x1f2   : > { %782 = vmax.xlane.f32.xlu1 %v781_v50  ;;  %v684_v55 = vpop.f32.mrb[16].mxu1  ;;  %v766_v46 = vsel %vm293_vm1, %v2140_v40, -inf }
 0x1f3   : > { %v705_v57 = vmul.f32 0.25, %v684_v55  ;;  %v1697_v59 = vpop.f32.mrb[17].mxu1  ;;  %v784_v49 = vsel %vm293_vm1, %v2105_v52, -inf  ;;  %v2151_v50 = vadd.f32 %v732_v42, %v720_v39  ;;  %v775_v20 = vsel %vm293_vm1, %v2147_v13, -inf }
 0x1f4   : > { %785 = vmax.xlane.f32.xlu0 %v784_v49  ;;  %v687_v63 = vpop.f32.mrb[18].mxu1  ;;  %v634_v51 = vpop.f32.mrb[8].mxu0 }
 0x1f5   : > { %v725_v8 = vadd.f32 %v2036_v54, %v705_v57  ;;  %v706_v9 = vmul.f32 0.25, %v687_v63  ;;  %v1698_v10 = vpop.f32.mrb[19].mxu1  ;;  %v1691_v12 = vpop.f32.mrb[9].mxu0  ;;  %v703_v62 = vmul.f32 0.25, %v634_v51 }
 0x1f6   : > { %v637_v14 = vpop.f32.mrb[10].mxu0 }
 0x1f7   : > { %v726_v18 = vadd.f32 %v2041_v58, %v706_v9  ;;  %v2120_v19 = vadd.f32 %v733_v5, %v725_v8  ;;  %v1692_v26 = vpop.f32.mrb[11].mxu0  ;;  %v704_v41 = vmul.f32 0.25, %v637_v14  ;;  %v723_v44 = vadd.f32 %v707_v48, %v703_v62 }
 0x1f8   : > { %v778_v48 = vsel %vm293_vm1, %v2151_v50, -inf }
 0x1f9   : > { %v793_v54 = vsel %vm293_vm1, %v2120_v19, -inf  ;;  %v2127_v21 = vadd.f32 %v734_v17, %v726_v18  ;;  %v724_v47 = vadd.f32 %v708_v56, %v704_v41  ;;  %v2155_v53 = vadd.f32 %v733_v5, %v723_v44 }
 0x1fa   : > { %794 = vmax.xlane.f32.xlu1 %v793_v54 }
 0x1fb   : > { %v796_v58 = vsel %vm293_vm1, %v2127_v21, -inf  ;;  %v2159_v55 = vadd.f32 %v734_v17, %v724_v47  ;;  %v787_v35 = vsel %vm293_vm1, %v2155_v53, -inf }
 0x1fc   : > { %797 = vmax.xlane.f32.xlu0 %v796_v58 }
 0x1fd   : > { %v790_v42 = vsel %vm293_vm1, %v2159_v55, -inf }
 0x1fe   : > { %752 = vmax.xlane.f32.xlu1 %v751_v38 }
 0x200   : > { %755 = vmax.xlane.f32.xlu0 %v754_v4 }
 0x202   : > { %764 = vmax.xlane.f32.xlu1 %v763_v43 }
 0x204   : > { %767 = vmax.xlane.f32.xlu0 %v766_v46 }
 0x206   : > { %776 = vmax.xlane.f32.xlu1 %v775_v20 }
 0x208   : > { %779 = vmax.xlane.f32.xlu0 %v778_v48 }
 0x20a   : > { %788 = vmax.xlane.f32.xlu1 %v787_v35 }
 0x20c   : > { %791 = vmax.xlane.f32.xlu0 %v790_v42 }
 0x21b   : > { %982 = vrot.lane.b32.xlu1 %v1970_v23, %s1899_s29 }
 0x26f   : > { %v759_v56 = vpop.xlane.xlu0 %758 }
 0x270   : > { %v801_v57 = vsub.f32 %v2051_v3, %v759_v56 }
 0x271   : > { %v762_v59 = vpop.xlane.xlu1 %761 }
 0x272   : > { %v819_v49 = vmul.f32 1.442695, %v801_v57  ;;  %v802_v60 = vsub.f32 %v2061_v6, %v762_v59 }
 0x274   : > { %1823 = vpow2.f32 %v819_v49  ;;  %v821_v61 = vmul.f32 1.442695, %v802_v60 }
 0x276   : > { %1825 = vpow2.f32 %v821_v61 }
 0x277   : > { %v771_v63 = vpop.xlane.xlu0 %770 }
 0x278   : > { %v805_v5 = vsub.f32 %v2078_v24, %v771_v63 }
 0x27a   : > { %v827_v51 = vmul.f32 1.442695, %v805_v5 }
 0x27b   : > { %v774_v8 = vpop.xlane.xlu0 %773 }
 0x27c   : > { %1827 = vpow2.f32 %v827_v51  ;;  %v806_v9 = vsub.f32 %v2083_v28, %v774_v8 }
 0x27e   : > { %v2171_v10 = vpop.eup %1823  ;;  %v829_v23 = vmul.f32 1.442695, %v806_v9 }
 0x27f   : > { %v783_v11 = vpop.xlane.xlu1 %782  ;;  %v853_v3 = vsel %vm293_vm1, %v2171_v10, 0.0 }
 0x280   : > { %v2175_v12 = vpop.eup %1825  ;;  %1829 = vpow2.f32 %v829_v23  ;;  %v809_v6 = vsub.f32 %v2098_v45, %v783_v11  ;;  %854 = vadd.xlane.f32.xlu1 %v853_v3 }
 0x281   : > { %v786_v15 = vpop.xlane.xlu0 %785  ;;  %v856_v24 = vsel %vm293_vm1, %v2175_v12, 0.0 }
 0x282   : > { %v835_v17 = vmul.f32 1.442695, %v809_v6  ;;  %v810_v28 = vsub.f32 %v2105_v52, %v786_v15  ;;  %857 = vadd.xlane.f32.xlu0 %v856_v24 }
 0x284   : > { %1831 = vpow2.f32 %v835_v17  ;;  %v837_v14 = vmul.f32 1.442695, %v810_v28 }
 0x286   : > { %v2181_v18 = vpop.eup %1827  ;;  %1833 = vpow2.f32 %v837_v14 }
 0x287   : > { %v795_v22 = vpop.xlane.xlu1 %794  ;;  %v865_v25 = vsel %vm293_vm1, %v2181_v18, 0.0 }
 0x288   : > { %v813_v45 = vsub.f32 %v2120_v19, %v795_v22  ;;  %866 = vadd.xlane.f32.xlu1 %v865_v25 }
 0x289   : > { %v798_v26 = vpop.xlane.xlu0 %797 }
 0x28a   : > { %v2186_v54 = vpop.eup %1829  ;;  %v843_v30 = vmul.f32 1.442695, %v813_v45  ;;  %v814_v32 = vsub.f32 %v2127_v21, %v798_v26 }
 0x28b   : > { %v753_v52 = vpop.xlane.xlu1 %752  ;;  %v868_v58 = vsel %vm293_vm1, %v2186_v54, 0.0 }
 0x28c   : > { %1835 = vpow2.f32 %v843_v30  ;;  %v845_v37 = vmul.f32 1.442695, %v814_v32  ;;  %869 = vadd.xlane.f32.xlu0 %v868_v58  ;;  %v799_v35 = vsub.f32 %v2123_v29, %v753_v52 }
 0x28d   : > { %v756_v48 = vpop.xlane.xlu0 %755 }
 0x28e   : > { %v2191_v62 = vpop.eup %1831  ;;  %1837 = vpow2.f32 %v845_v37  ;;  %v800_v56 = vsub.f32 %v2130_v34, %v756_v48  ;;  %v815_v57 = vmul.f32 1.442695, %v799_v35 }
 0x28f   : > { %v765_v38 = vpop.xlane.xlu1 %764  ;;  %v877_v19 = vsel %vm293_vm1, %v2191_v62, 0.0 }
 0x290   : > { %v2195_v39 = vpop.eup %1833  ;;  %878 = vadd.xlane.f32.xlu1 %v877_v19  ;;  %v803_v59 = vsub.f32 %v2135_v36, %v765_v38  ;;  %v817_v49 = vmul.f32 1.442695, %v800_v56  ;;  %1839 = vpow2.f32 %v815_v57 }
 0x291   : > { %v880_v21 = vsel %vm293_vm1, %v2195_v39, 0.0  ;;  %v768_v42 = vpop.xlane.xlu0 %767 }
 0x292   : > { %881 = vadd.xlane.f32.xlu0 %v880_v21  ;;  %1841 = vpow2.f32 %v817_v49 }
 0x293   : > { %v777_v41 = vpop.xlane.xlu1 %776 }
 0x294   : > { %v807_v60 = vsub.f32 %v2147_v13, %v777_v41 }
 0x295   : > { %v780_v61 = vpop.xlane.xlu0 %779 }
 0x296   : > { %v2199_v4 = vpop.eup %1835  ;;  %v831_v63 = vmul.f32 1.442695, %v807_v60  ;;  %v808_v5 = vsub.f32 %v2151_v50, %v780_v61 }
 0x297   : > { %v789_v43 = vpop.xlane.xlu1 %788  ;;  %v889_v44 = vsel %vm293_vm1, %v2199_v4, 0.0 }
 0x298   : > { %v2203_v46 = vpop.eup %1837  ;;  %890 = vadd.xlane.f32.xlu1 %v889_v44  ;;  %v833_v36 = vmul.f32 1.442695, %v808_v5 }
 0x299   : > { %v892_v47 = vsel %vm293_vm1, %v2203_v46, 0.0  ;;  %v792_v34 = vpop.xlane.xlu0 %791 }
 0x29a   : > { %893 = vadd.xlane.f32.xlu0 %v892_v47  ;;  %v812_v13 = vsub.f32 %v2159_v55, %v792_v34  ;;  %v2222_v8 = vpop.eup %1839 }
 0x29b   : > { %v983_v20 = vpop.permute.xlu1 %982 }
 0x29c   : > { %1706 = vmatpush3.bf16.msra.mxu1 %v983_v20  ;;  %v2224_v9 = vpop.eup %1841 }
 0x29d   : > { %1717 = vmatprep.subr.bf16.mxu1 %v1896_v16  ;;  %v850_v50 = vsel %vm293_vm1, %v2224_v9, 0.0 }
 0x2a9   : > { %1170 = vrot.lane.b32.xlu1 %v1973_v27, %s1899_s29  ;;  %v823_v27 = vmul.f32 1.442695, %v803_v59 }
 0x2ab   : > { %1843 = vpow2.f32 %v823_v27 }
 0x2ac   : > { %1845 = vpow2.f32 %v831_v63 }
 0x2ad   : > { %1264 = vrot.lane.b32.xlu1 %v1979_v33, %s1899_s29  ;;  %v804_v33 = vsub.f32 %v2140_v40, %v768_v42  ;;  %v841_v40 = vmul.f32 1.442695, %v812_v13 }
 0x2af   : > { %v825_v29 = vmul.f32 1.442695, %v804_v33 }
 0x2b0   : > { %1076 = vrot.lane.b32.xlu0 %v1975_v31, %s1899_s29  ;;  %v811_v31 = vsub.f32 %v2155_v53, %v789_v43  ;;  %v847_v53 = vsel %vm293_vm1, %v2222_v8, 0.0 }
 0x2b1   : > { %1847 = vpow2.f32 %v825_v29 }
 0x2b2   : > { %v839_v51 = vmul.f32 1.442695, %v811_v31 }
 0x2b4   : > { %1849 = vpow2.f32 %v839_v51 }
 0x2b5   : > { %1851 = vpow2.f32 %v833_v36  ;;  %v2228_v23 = vpop.eup %1843 }
 0x2b6   : > { %v2232_v11 = vpop.eup %1845  ;;  %1853 = vpow2.f32 %v841_v40  ;;  %v859_v55 = vsel %vm293_vm1, %v2228_v23, 0.0 }
 0x2b7   : > { %v871_v6 = vsel %vm293_vm1, %v2232_v11, 0.0 }
 0x2bb   : > { %v2236_v3 = vpop.eup %1847 }
 0x2bc   : > { %v862_v24 = vsel %vm293_vm1, %v2236_v3, 0.0 }
 0x2be   : > { %v2240_v15 = vpop.eup %1849 }
 0x2bf   : > { %v2244_v17 = vpop.eup %1851  ;;  %v883_v28 = vsel %vm293_vm1, %v2240_v15, 0.0 }
 0x2c0   : > { %v874_v14 = vsel %vm293_vm1, %v2244_v17, 0.0  ;;  %v2250_v22 = vpop.eup %1853 }
 0x2c1   : > { %v886_v25 = vsel %vm293_vm1, %v2250_v22, 0.0 }
 0x2cf   : > { %848 = vadd.xlane.f32.xlu0 %v847_v53 }
 0x2d1   : > { %851 = vadd.xlane.f32.xlu1 %v850_v50 }
 0x2d3   : > { %860 = vadd.xlane.f32.xlu0 %v859_v55 }
 0x2d5   : > { %872 = vadd.xlane.f32.xlu1 %v871_v6 }
 0x2d7   : > { %863 = vadd.xlane.f32.xlu0 %v862_v24 }
 0x2d9   : > { %884 = vadd.xlane.f32.xlu1 %v883_v28 }
 0x2db   : > { %875 = vadd.xlane.f32.xlu0 %v874_v14 }
 0x2df   : > { %887 = vadd.xlane.f32.xlu0 %v886_v25 }
 0x2ea   : > { %935 = vrot.lane.b32.xlu1 %v1947_v0, %s1899_s29 }
 0x2ee   : > { %1123 = vrot.lane.b32.xlu1 %v1951_v2, %s1899_s29 }
 0x2f2   : > { %1217 = vrot.lane.b32.xlu1 %v1957_v7, %s1899_s29 }
 0x2f5   : > { %1029 = vrot.lane.b32.xlu0 %v1949_v1, %s1899_s29 }
 0x30d   : > { %v855_v45 = vpop.xlane.xlu1 %854 }
 0x30e   : > { %1855 = vrcp.f32 %v855_v45 }
 0x30f   : > { %v858_v26 = vpop.xlane.xlu0 %857 }
 0x310   : > { %1857 = vrcp.f32 %v858_v26 }
 0x315   : > { %v867_v37 = vpop.xlane.xlu1 %866 }
 0x318   : > { %v1856_v30 = vpop.eup %1855 }
 0x319   : > { %v870_v32 = vpop.xlane.xlu0 %869  ;;  %v913_v58 = vmul.f32 %v1856_v30, %v2171_v10 }
 0x31a   : > { %v1858_v52 = vpop.eup %1857  ;;  %1859 = vrcp.f32 %v870_v32 }
 0x31b   : > { %v914_v0 = vmul.f32 %v1858_v52, %v2175_v12  ;;  %1861 = vrcp.f32 %v867_v37 }
 0x31d   : > { %v928_v2 = vpack.c.bf16 %v914_v0, %v913_v58  ;;  %v879_v7 = vpop.xlane.xlu1 %878 }
 0x31f   : > { %1708 = vmatmul.mubr.msk.bf16.vlgmr.msra.gmra.mrb[20].mxu1 %vm293_vm1, %v928_v2  ;;  %v882_v1 = vpop.xlane.xlu0 %881 }
 0x320   : > { %1719 = vmatprep.mubr.msk.bf16.mxu1 %vm1897_vm0, %v1896_v16  ;;  %1863 = vrcp.f32 %v882_v1 }
 0x321   : > { %1865 = vrcp.f32 %v879_v7 }
 0x324   : > { %v1860_v38 = vpop.eup %1859 }
 0x325   : > { %v1862_v21 = vpop.eup %1861  ;;  %v918_v10 = vmul.f32 %v1860_v38, %v2186_v54  ;;  %v891_v41 = vpop.xlane.xlu1 %890 }
 0x326   : > { %v917_v12 = vmul.f32 %v1862_v21, %v2181_v18 }
 0x327   : > { %v894_v19 = vpop.xlane.xlu0 %893 }
 0x328   : > { %1867 = vrcp.f32 %v894_v19  ;;  %v930_v44 = vpack.c.bf16 %v918_v10, %v917_v12 }
 0x329   : > { %1869 = vrcp.f32 %v891_v41  ;;  %v1171_v20 = vpop.permute.xlu1 %1170 }
 0x32a   : > { %v1864_v47 = vpop.eup %1863 }
 0x32b   : > { %v1077_v43 = vpop.permute.xlu0 %1076  ;;  %v1866_v48 = vpop.eup %1865  ;;  %v922_v54 = vmul.f32 %v1864_v47, %v2195_v39 }
 0x32c   : > { %1718 = vmatpush3.bf16.msra.mxu1 %v1077_v43  ;;  %v921_v18 = vmul.f32 %v1866_v48, %v2191_v62 }
 0x32d   : > { %1729 = vmatprep.subr.bf16.mxu1 %v1896_v16  ;;  %v1265_v56 = vpop.permute.xlu1 %1264 }
 0x32e   : > { %v932_v35 = vpack.c.bf16 %v922_v54, %v921_v18 }
 0x32f   : > { %1720 = vmatmul.mubr.msk.bf16.vlgmr.msra.gmra.mrb[24].mxu1 %vm293_vm1, %v930_v44 }
 0x330   : > { %1730 = vmatpush3.bf16.msra.mxu1 %v1171_v20  ;;  %1731 = vmatprep.mubr.msk.bf16.mxu1 %vm1897_vm0, %v1896_v16 }
 0x331   : > { %1741 = vmatprep.subr.bf16.mxu1 %v1896_v16 }
 0x332   : > { %v1868_v42 = vpop.eup %1867 }
 0x333   : > { %v1870_v57 = vpop.eup %1869  ;;  %v926_v59 = vmul.f32 %v1868_v42, %v2203_v46 }
 0x334   : > { %v925_v49 = vmul.f32 %v1870_v57, %v2199_v4 }
 0x336   : > { %v934_v60 = vpack.c.bf16 %v926_v59, %v925_v49 }
 0x337   : > { %1732 = vmatmul.mubr.msk.bf16.vlgmr.msra.gmra.mrb[28].mxu1 %vm293_vm1, %v932_v35 }
 0x338   : > { %1742 = vmatpush3.bf16.msra.mxu1 %v1265_v56  ;;  %1743 = vmatprep.mubr.msk.bf16.mxu1 %vm1897_vm0, %v1896_v16 }
 0x33f   : > { %1744 = vmatmul.mubr.msk.bf16.vlgmr.msra.gmra.mrb[32].mxu1 %vm293_vm1, %v934_v60 }
 0x35c   : > { %v849_v39 = vpop.xlane.xlu0 %848 }
 0x35d   : > { %1871 = vrcp.f32 %v849_v39 }
 0x35e   : > { %v852_v62 = vpop.xlane.xlu1 %851 }
 0x35f   : > { %1873 = vrcp.f32 %v852_v62 }
 0x360   : > { %v861_v61 = vpop.xlane.xlu0 %860 }
 0x361   : > { %1875 = vrcp.f32 %v861_v61 }
 0x362   : > { %v873_v27 = vpop.xlane.xlu1 %872 }
 0x364   : > { %v864_v33 = vpop.xlane.xlu0 %863 }
 0x365   : > { %1877 = vrcp.f32 %v864_v33 }
 0x366   : > { %v885_v63 = vpop.xlane.xlu1 %884 }
 0x367   : > { %v1872_v31 = vpop.eup %1871 }
 0x368   : > { %v876_v29 = vpop.xlane.xlu0 %875  ;;  %v911_v46 = vmul.f32 %v1872_v31, %v2222_v8 }
 0x369   : > { %v1874_v5 = vpop.eup %1873  ;;  %1879 = vrcp.f32 %v876_v29 }
 0x36a   : > { %v912_v4 = vmul.f32 %v1874_v5, %v2224_v9  ;;  %v936_v34 = vpop.permute.xlu1 %935  ;;  %1881 = vrcp.f32 %v873_v27 }
 0x36b   : > { %1700 = vmatpush3.bf16.msra.mxu0 %v936_v34  ;;  %v1876_v13 = vpop.eup %1875 }
 0x36c   : > { %v888_v51 = vpop.xlane.xlu0 %887  ;;  %v927_v36 = vpack.c.bf16 %v912_v4, %v911_v46  ;;  %1711 = vmatprep.subr.bf16.mxu0 %v1896_v16  ;;  %v915_v9 = vmul.f32 %v1876_v13, %v2228_v23 }
 0x36d   : > { %1883 = vrcp.f32 %v888_v51 }
 0x36e   : > { %1702 = vmatmul.mubr.msk.bf16.vlgmr.msra.gmra.mrb[12].mxu0 %vm293_vm1, %v927_v36  ;;  %v1124_v55 = vpop.permute.xlu1 %1123  ;;  %1885 = vrcp.f32 %v885_v63 }
 0x36f   : > { %v1878_v40 = vpop.eup %1877  ;;  %1713 = vmatprep.mubr.msk.bf16.mxu0 %vm1897_vm0, %v1896_v16 }
 0x370   : > { %v916_v53 = vmul.f32 %v1878_v40, %v2236_v3  ;;  %v1030_v8 = vpop.permute.xlu0 %1029 }
 0x371   : > { %1712 = vmatpush3.bf16.msra.mxu0 %v1030_v8 }
 0x372   : > { %1723 = vmatprep.subr.bf16.mxu0 %v1896_v16  ;;  %v929_v50 = vpack.c.bf16 %v916_v53, %v915_v9  ;;  %v1218_v14 = vpop.permute.xlu1 %1217 }
 0x373   : > { %v1880_v6 = vpop.eup %1879 }
 0x374   : > { %v1882_v24 = vpop.eup %1881  ;;  %v920_v3 = vmul.f32 %v1880_v6, %v2244_v17 }
 0x375   : > { %v919_v23 = vmul.f32 %v1882_v24, %v2232_v11  ;;  %v1817_v11 = vld [vmem:[%s2343_s3] sm:$0xff]  }
 0x376   : > { %1714 = vmatmul.mubr.msk.bf16.vlgmr.msra.gmra.mrb[16].mxu0 %vm293_vm1, %v929_v50 }
 0x377   : > { %1724 = vmatpush3.bf16.msra.mxu0 %v1124_v55  ;;  %1725 = vmatprep.mubr.msk.bf16.mxu0 %vm1897_vm0, %v1896_v16  ;;  %v931_v28 = vpack.c.bf16 %v920_v3, %v919_v23  ;;  %v1884_v25 = vpop.eup %1883 }
 0x378   : > { %1735 = vmatprep.subr.bf16.mxu0 %v1896_v16  ;;  %v1886_v45 = vpop.eup %1885  ;;  %v924_v26 = vmul.f32 %v1884_v25, %v2250_v22 }
 0x379   : > { %v923_v30 = vmul.f32 %v1886_v45, %v2240_v15 }
 0x37b   : > { %v933_v32 = vpack.c.bf16 %v924_v26, %v923_v30  ;;  %v1586_v30 = vld [vmem:[%s2344_s4] ss:$0 sm:$0xff] }
 0x37e   : > { %1726 = vmatmul.mubr.msk.bf16.vlgmr.msra.gmra.mrb[20].mxu0 %vm293_vm1, %v931_v28 }
 0x37f   : > { %1736 = vmatpush3.bf16.msra.mxu0 %v1218_v14  ;;  %1737 = vmatprep.mubr.msk.bf16.mxu0 %vm1897_vm0, %v1896_v16  ;;  %v1818_v16 = vld [vmem:[%s2343_s3 + $0x8] sm:$0xff]  }
 0x380   : > { %1747 = vmatprep.subr.bf16.mxu0 %v1817_v11 }
 0x386   : > { %1738 = vmatmul.mubr.msk.bf16.vlgmr.msra.gmra.mrb[24].mxu0 %vm293_vm1, %v933_v32 }
 0x387   : > { %1748 = vmatpush3.bf16.msra.mxu0 %v1817_v11 }
 0x388   : > { %1749 = vmatprep.subr.bf16.mxu0 %v1818_v16 }
 0x38b   : > { %1750 = vmatpush3.bf16.msra.mxu0 %v1818_v16 }
 0x3f2   : > { %v1022_v17 = vpop.f32.mrb[20].mxu1 }
 0x3f3   : > { %v1709_v52 = vpop.f32.mrb[21].mxu1 }
 0x3f4   : > { %v1025_v58 = vpop.f32.mrb[22].mxu1 }
 0x3f5   : > { %v1793_v0 = vpack.i.bf16 %v1025_v58, %v1022_v17  ;;  %v1710_v37 = vpop.f32.mrb[23].mxu1 }
 0x3f7   : > { %1794 = vrot.lane.b32.xlu0 %v1793_v0, %s1900_s7 }
 0x402   : > { %v1116_v15 = vpop.f32.mrb[24].mxu1 }
 0x403   : > { %v1721_v22 = vpop.f32.mrb[25].mxu1 }
 0x404   : > { %v1119_v2 = vpop.f32.mrb[26].mxu1 }
 0x405   : > { %v1798_v1 = vpack.i.bf16 %v1119_v2, %v1116_v15  ;;  %v1722_v7 = vpop.f32.mrb[27].mxu1 }
 0x407   : > { %1799 = vrot.lane.b32.xlu1 %v1798_v1, %s1900_s7 }
 0x40a   : > { %v1210_v38 = vpop.f32.mrb[28].mxu1 }
 0x40b   : > { %v1733_v19 = vpop.f32.mrb[29].mxu1 }
 0x40c   : > { %v1213_v21 = vpop.f32.mrb[30].mxu1 }
 0x40d   : > { %v1803_v10 = vpack.i.bf16 %v1213_v21, %v1210_v38  ;;  %v1734_v41 = vpop.f32.mrb[31].mxu1 }
 0x40f   : > { %1804 = vrot.lane.b32.xlu0 %v1803_v10, %s1900_s7 }
 0x412   : > { %v1304_v12 = vpop.f32.mrb[32].mxu1 }
 0x413   : > { %v1745_v43 = vpop.f32.mrb[33].mxu1 }
 0x414   : > { %v1307_v44 = vpop.f32.mrb[34].mxu1 }
 0x415   : > { %v1808_v47 = vpack.i.bf16 %v1307_v44, %v1304_v12  ;;  %v1746_v20 = vpop.f32.mrb[35].mxu1 }
 0x417   : > { %1809 = vrot.lane.b32.xlu1 %v1808_v47, %s1900_s7 }
 0x441   : > { %v975_v48 = vpop.f32.mrb[12].mxu0 }
 0x442   : > { %v1703_v54 = vpop.f32.mrb[13].mxu0 }
 0x443   : > { %v978_v18 = vpop.f32.mrb[14].mxu0 }
 0x444   : > { %v1704_v35 = vpop.f32.mrb[15].mxu0 }
 0x449   : > { %v1069_v42 = vpop.f32.mrb[16].mxu0 }
 0x44a   : > { %v1715_v56 = vpop.f32.mrb[17].mxu0 }
 0x44b   : > { %v1072_v57 = vpop.f32.mrb[18].mxu0 }
 0x44c   : > { %v1716_v59 = vpop.f32.mrb[19].mxu0 }
 0x451   : > { %v1163_v49 = vpop.f32.mrb[20].mxu0 }
 0x452   : > { %v1727_v60 = vpop.f32.mrb[21].mxu0 }
 0x453   : > { %v1166_v39 = vpop.f32.mrb[22].mxu0 }
 0x454   : > { %v1728_v62 = vpop.f32.mrb[23].mxu0 }
 0x459   : > { %v1257_v61 = vpop.f32.mrb[24].mxu0 }
 0x45a   : > { %v1739_v27 = vpop.f32.mrb[25].mxu0 }
 0x45b   : > { %v1260_v33 = vpop.f32.mrb[26].mxu0 }
 0x45c   : > { %v1740_v63 = vpop.f32.mrb[27].mxu0 }
 0x469   : > { %v1795_v31 = vpop.permute.xlu0 %1794 }
 0x46a   : > { %v1797_v29 = vunpack.i.h.bf16 %v1795_v31  ;;  %v1796_v5 = vunpack.i.l.bf16 %v1795_v31 }
 0x46c   : > { %v1343_v46 = vsel %vm293_vm1, %v975_v48, %v1796_v5  ;;  %v1344_v4 = vsel %vm293_vm1, %v978_v18, %v1797_v29 }
 0x46d   : > { %v1355_v34 = vpack.c.bf16 %v1344_v4, %v1343_v46 }
 0x46f   : > { %1751 = vmatprep.mubr.msk.bf16.mxu0 %vm1378_vm2, %v1355_v34 }
 0x479   : > { %v1800_v51 = vpop.permute.xlu1 %1799 }
 0x47a   : > { %v1802_v36 = vunpack.i.h.bf16 %v1800_v51  ;;  %v1801_v13 = vunpack.i.l.bf16 %v1800_v51 }
 0x47c   : > { %v1346_v40 = vsel %vm293_vm1, %v1072_v57, %v1802_v36  ;;  %v1345_v53 = vsel %vm293_vm1, %v1069_v42, %v1801_v13 }
 0x47d   : > { %v1356_v8 = vpack.c.bf16 %v1346_v40, %v1345_v53 }
 0x47f   : > { %1752 = vmatmul.mubr.msk.bf16.vlgmr.msra.gmra.mrb[28].mxu0 %vm1378_vm2, %v1356_v8 }
 0x481   : > { %v1805_v9 = vpop.permute.xlu0 %1804 }
 0x482   : > { %v1807_v50 = vunpack.i.h.bf16 %v1805_v9  ;;  %v1806_v55 = vunpack.i.l.bf16 %v1805_v9 }
 0x484   : > { %v1347_v6 = vsel %vm293_vm1, %v1163_v49, %v1806_v55  ;;  %v1348_v24 = vsel %vm293_vm1, %v1166_v39, %v1807_v50 }
 0x485   : > { %v1357_v3 = vpack.c.bf16 %v1348_v24, %v1347_v6 }
 0x487   : > { %1755 = vmatprep.mubr.msk.bf16.mxu0 %vm1378_vm2, %v1357_v3 }
 0x489   : > { %v1810_v23 = vpop.permute.xlu1 %1809 }
 0x48a   : > { %v1812_v28 = vunpack.i.h.bf16 %v1810_v23  ;;  %v1811_v14 = vunpack.i.l.bf16 %v1810_v23 }
 0x48c   : > { %v1350_v25 = vsel %vm293_vm1, %v1260_v33, %v1812_v28  ;;  %v1349_v45 = vsel %vm293_vm1, %v1257_v61, %v1811_v14 }
 0x48d   : > { %v1358_v26 = vpack.c.bf16 %v1350_v25, %v1349_v45 }
 0x48f   : > { %1756 = vmatmul.mubr.msk.bf16.gmra.mrb[32].mxu0 %vm1378_vm2, %v1358_v26 }
 0x552   : > { %v1753_v32 = vpop.f32.mrb[28].mxu0 }
 0x553   : > { %v1434_v11 = vadd.f32 %v1753_v32, %v1586_v30  ;;  %v1425_v17 = vpop.f32.mrb[29].mxu0 }
 0x554   : > { %v1426_v52 = vadd.f32 %v1586_v30, %v1425_v17  ;;  %v1754_v58 = vpop.f32.mrb[30].mxu0 }
 0x555   : > { %v1437_v0 = vadd.f32 %v1754_v58, %v1586_v30  ;;  %v1428_v37 = vpop.f32.mrb[31].mxu0  ;;  %v1607_v22 = vpack.c.bf16 %v1434_v11, %v1434_v11 }
 0x556   : > { %v1605_v16 = vpack.c.bf16 %v1426_v52, %v1426_v52  ;;  %v1429_v15 = vadd.f32 %v1586_v30, %v1428_v37 }
 0x557   : > { %1491 = vst.msk [vmem:[%s231_s14 + $0x8] sm:$0xf] %vm1488_vm3, %v1607_v22  ;;  %v1608_v1 = vpack.c.bf16 %v1437_v0, %v1437_v0 }
 0x558   : > { %1489 = vst.msk [vmem:[%s231_s14] sm:$0xf] %vm1488_vm3, %v1605_v16  ;;  %v1606_v2 = vpack.c.bf16 %v1429_v15, %v1429_v15 }
 0x559   : > { %1492 = vst.msk [vmem:[%s231_s14 + $0xc] sm:$0xf] %vm1488_vm3, %v1608_v1 }
 0x55a   : > { %1490 = vst.msk [vmem:[%s231_s14 + $0x4] sm:$0xf] %vm1488_vm3, %v1606_v2 }
 0x562   : > { %v1757_v7 = vpop.f32.mrb[32].mxu0 }
 0x563   : > { %v1450_v38 = vadd.f32 %v1757_v7, %v1586_v30  ;;  %v1441_v19 = vpop.f32.mrb[33].mxu0 }
 0x564   : > { %v1442_v21 = vadd.f32 %v1586_v30, %v1441_v19  ;;  %v1758_v10 = vpop.f32.mrb[34].mxu0 }
 0x565   : > { %v1453_v41 = vadd.f32 %v1758_v10, %v1586_v30  ;;  %v1444_v12 = vpop.f32.mrb[35].mxu0  ;;  %v1611_v47 = vpack.c.bf16 %v1450_v38, %v1450_v38 }
 0x566   : > { %v1609_v43 = vpack.c.bf16 %v1442_v21, %v1442_v21  ;;  %v1445_v44 = vadd.f32 %v1586_v30, %v1444_v12 }
 0x567   : > { %1495 = vst.msk [vmem:[%s231_s14 + $0x18] sm:$0xf] %vm1488_vm3, %v1611_v47  ;;  %v1612_v48 = vpack.c.bf16 %v1453_v41, %v1453_v41 }
 0x568   : > { %1493 = vst.msk [vmem:[%s231_s14 + $0x10] sm:$0xf] %vm1488_vm3, %v1609_v43  ;;  %v1610_v20 = vpack.c.bf16 %v1445_v44, %v1445_v44 }
 0x569   : > { %1496 = vst.msk [vmem:[%s231_s14 + $0x1c] sm:$0xf] %vm1488_vm3, %v1612_v48 }
 0x56a   : > { %1494 = vst.msk [vmem:[%s231_s14 + $0x14] sm:$0xf] %vm1488_vm3, %v1610_v20 }
 0x56b PF: > { %s15_s18 = sadd.s32 1, %s1893_s18  }
 0x56c   : > { %p12_p4 = scmp.ge.s32.totalorder %s15_s18, 4  }
 0x56e   :  { %14 = sbr.rel (!%p12_p4) target bundleno = 1 (0x1), region = 70 }

// kernel: swin_forward.22
= control target key start
LH: loop header
LB: loop body
LE: loop exit
PB: predicated region body
PF: predicated region fallthrough
CT: control target
= control target key end

     0   :  { %s535_s15 = smov 0   ;;  %s589_s0 = inlined_call_operand.vmem [shape: bf16[32,128], index: 0, kind: input, shape index: {}]   ;;  %s590_s1 = inlined_call_operand.vmem [shape: f32[1,128], index: 1, kind: input, shape index: {}]   ;;  %s591_s2 = inlined_call_operand.vmem [shape: f32[1,128], index: 2, kind: input, shape index: {}]   ;;  %s592_s3 = inlined_call_operand.vmem [shape: bf16[128,64], index: 3, kind: input, shape index: {}]   ;;  %s593_s4 = inlined_call_operand.vmem [shape: bf16[32,64], index: 4, kind: output, shape index: {}]  }
   0x1 LB: > { %s420_s16 = sadd.s32 4294967295, %s506_s15   ;;  %p424_p0 = scmp.ge.s32.totalorder %s506_s15, 1  ;;  %s506_s15 = sphi %s535_s15, %s14_s15  }
   0x2   : > { %p163_p1 = scmp.lt.s32.totalorder %s506_s15, 3 }
   0x4   : > { %p164_p2 = pnand %p424_p0, %p163_p1 }
   0x5   : > { %s425_s17 = sshll.u32 (!%p164_p2), %s420_s16, 1  ;;  %v488_v3 = vld [vmem:[%s592_s3] sm:$0xff] (!%p164_p2)   ;;  %v508_v4 = vmov (!%p164_p2), 0.0   ;;  %v489_v13 = vld [vmem:[%s592_s3 + $0x8] sm:$0xff] (!%p164_p2)   ;;  %v490_v14 = vld [vmem:[%s592_s3 + $0x10] sm:$0xff] (!%p164_p2)   ;;  %vm509_vm0 = vmmov (!%p164_p2), 0  }
   0x6   : > { %167 = sbr.rel (%p164_p2) target bundleno = 553 (0x229), region = 36  ;;  %p190_p3 = scmp.lt.s32.totalorder (!%p164_p2), %s425_s17, 3  ;;  %458 = vmatprep.subr.bf16.mxu0 (!%p164_p2), %v508_v4  ;;  %v491_v15 = vld [vmem:[%s592_s3 + $0x18] sm:$0xff] (!%p164_p2)   ;;  %v492_v16 = vld [vmem:[%s592_s3 + $0x20] sm:$0xff] (!%p164_p2)   ;;  %474 = vmatprep.mubr.msk.bf16.mxu0 (!%p164_p2), %vm509_vm0, %v508_v4  ;;  %v493_v17 = vld [vmem:[%s592_s3 + $0x28] sm:$0xff] (!%p164_p2)   ;;  %vm361_vm1 = vcmask (!%p164_p2), 519168  }
   0x7   : > { %459 = vmatpush3.bf16.msra.mxu0 (!%p164_p2), %v488_v3  ;;  %v494_v18 = vld [vmem:[%s592_s3 + $0x30] sm:$0xff] (!%p164_p2)   ;;  %v495_v19 = vld [vmem:[%s592_s3 + $0x38] sm:$0xff] (!%p164_p2)   ;;  %v429_v28 = vld [vmem:[%s590_s1] ss:$0 sm:$0xff] (!%p164_p2) }
   0x8   : > { %460 = vmatprep.subr.bf16.mxu0 (!%p164_p2), %v508_v4  ;;  %v430_v32 = vld [vmem:[%s591_s2] ss:$0 sm:$0xff] (!%p164_p2) }
   0xb   : > { %461 = vmatpush3.bf16.msra.mxu0 (!%p164_p2), %v489_v13 }
   0xc   : > { %462 = vmatprep.subr.bf16.mxu0 (!%p164_p2), %v508_v4 }
   0xd   : > { %s595_s17 = smov (!%p190_p3, %s425_s17), 3 }
   0xe   : > { %s426_s18 = sshll.u32 %s595_s17, 2 }
   0xf   : > { %s193_s21 = scalar_lea.vmem %s589_s0, %s426_s18  ;;  %463 = vmatpush3.bf16.msra.mxu0 %v490_v14 }
  0x10   : > { %v446_v0 = vld [vmem:[%s193_s21] sm:$0xff]   ;;  %464 = vmatprep.subr.bf16.mxu0 %v508_v4  ;;  %s199_s21 = scalar_lea.vmem %s593_s4, %s426_s18 }
  0x11   : > { %v447_v1 = vunpack.c.l.bf16 %v446_v0  ;;  %v448_v2 = vunpack.c.h.bf16 %v446_v0 }
  0x13   : > { %208 = vadd.xlane.f32.xlu0 %v447_v1  ;;  %465 = vmatpush3.bf16.msra.mxu0 %v491_v15 }
  0x14   : > { %466 = vmatprep.subr.bf16.mxu0 %v508_v4 }
  0x17   : > { %210 = vadd.xlane.f32.xlu0 %v448_v2  ;;  %467 = vmatpush3.bf16.msra.mxu0 %v492_v16 }
  0x18   : > { %468 = vmatprep.subr.bf16.mxu0 %v508_v4 }
  0x1b   : > { %469 = vmatpush3.bf16.msra.mxu0 %v493_v17 }
  0x1c   : > { %470 = vmatprep.subr.bf16.mxu0 %v508_v4 }
  0x1f   : > { %471 = vmatpush3.bf16.msra.mxu0 %v494_v18 }
  0x20   : > { %472 = vmatprep.subr.bf16.mxu0 %v508_v4 }
  0x23   : > { %473 = vmatpush3.bf16.msra.mxu0 %v495_v19 }
  0xa0   : > { %v209_v5 = vpop.xlane.xlu0 %208 }
  0xa1   : > { %v213_v6 = vmul.f32 0.0078125, %v209_v5 }
  0xa3   : > { %v215_v7 = vsub.f32 %v447_v1, %v213_v6 }
  0xa4   : > { %v211_v8 = vpop.xlane.xlu0 %210 }
  0xa5   : > { %v214_v9 = vmul.f32 0.0078125, %v211_v8  ;;  %v217_v10 = vmul.f32 %v215_v7, %v215_v7 }
  0xa7   : > { %v216_v11 = vsub.f32 %v448_v2, %v214_v9  ;;  %219 = vadd.xlane.f32.xlu1 %v217_v10 }
  0xa9   : > { %v218_v12 = vmul.f32 %v216_v11, %v216_v11 }
  0xab   : > { %221 = vadd.xlane.f32.xlu1 %v218_v12 }
 0x134   : > { %v220_v20 = vpop.xlane.xlu1 %219 }
 0x135   : > { %v223_v21 = vmul.f32 0.0078125, %v220_v20 }
 0x137   : > { %v225_v22 = vadd.f32 1e-05, %v223_v21 }
 0x138   : > { %v222_v23 = vpop.xlane.xlu1 %221 }
 0x139   : > { %496 = vrsqrt.f32 %v225_v22  ;;  %v224_v24 = vmul.f32 0.0078125, %v222_v23 }
 0x13b   : > { %v226_v25 = vadd.f32 1e-05, %v224_v24 }
 0x13d   : > { %498 = vrsqrt.f32 %v226_v25 }
 0x143   : > { %v497_v26 = vpop.eup %496 }
 0x144   : > { %v229_v27 = vmul.f32 %v497_v26, %v215_v7 }
 0x146   : > { %v237_v31 = vmul.f32 %v429_v28, %v229_v27 }
 0x147   : > { %v499_v29 = vpop.eup %498 }
 0x148   : > { %v230_v30 = vmul.f32 %v499_v29, %v216_v11  ;;  %v245_v34 = vadd.f32 %v430_v32, %v237_v31 }
 0x14a   : > { %v238_v33 = vmul.f32 %v429_v28, %v230_v30 }
 0x14c   : > { %v246_v35 = vadd.f32 %v430_v32, %v238_v33 }
 0x14e   : > { %v263_v36 = vpack.c.bf16 %v246_v35, %v245_v34 }
 0x150   : > { %475 = vmatmul.mubr.bf16.vlgmr.msra.gmra.mrb[0].mxu0 %v263_v36 }
 0x223   : > { %v346_v37 = vpop.f32.mrb[0].mxu0 }
 0x224   : > { %v443_v38 = vpack.c.bf16 %v346_v37, %v346_v37  ;;  %v476_v39 = vpop.f32.mrb[1].mxu0 }
 0x225   : > { %v349_v40 = vpop.f32.mrb[2].mxu0 }
 0x226   : > { %362 = vst.msk [vmem:[%s199_s21] sm:$0xf] %vm361_vm1, %v443_v38  ;;  %v444_v41 = vpack.c.bf16 %v349_v40, %v349_v40  ;;  %v477_v42 = vpop.f32.mrb[3].mxu0 }
 0x228   : > { %363 = vst.msk [vmem:[%s199_s21 + $0x4] sm:$0xf] %vm361_vm1, %v444_v41 }
 0x229 PF: > { %s14_s15 = sadd.s32 1, %s506_s15  }
 0x22a   : > { %p11_p4 = scmp.ge.s32.totalorder %s14_s15, 4  }
 0x22c   :  { %13 = sbr.rel (!%p11_p4) target bundleno = 1 (0x1), region = 66 }

// kernel: swin_forward.24
= control target key start
LH: loop header
LB: loop body
LE: loop exit
PB: predicated region body
PF: predicated region fallthrough
CT: control target
= control target key end

     0   :  { %s1185_s15 = smov 0   ;;  %s1331_s0 = inlined_call_operand.vmem [shape: bf16[2,16,192], index: 0, kind: input, shape index: {}]   ;;  %s1332_s1 = inlined_call_operand.vmem [shape: f32[4,16,16], index: 1, kind: input, shape index: {}]   ;;  %s1333_s2 = inlined_call_operand.vmem [shape: bf16[64,64], index: 2, kind: input, shape index: {}]   ;;  %s1334_s3 = inlined_call_operand.vmem [shape: f32[1,64], index: 3, kind: input, shape index: {}]   ;;  %s1335_s4 = inlined_call_operand.vmem [shape: bf16[2,16,64], index: 4, kind: output, shape index: {}]  }
   0x1 LB: > { %s929_s16 = sadd.s32 4294967295, %s1149_s15   ;;  %p933_p0 = scmp.ge.s32.totalorder %s1149_s15, 1  ;;  %s1149_s15 = sphi %s1185_s15, %s14_s15  }
   0x2   : > { %p162_p1 = scmp.lt.s32.totalorder %s1149_s15, 3 }
   0x4   : > { %p163_p2 = pnand %p933_p0, %p162_p1 }
   0x5   : > { %p188_p3 = scmp.lt.s32.totalorder (!%p163_p2), %s929_s16, 1  ;;  %v1151_v0 = vmov (!%p163_p2), 0.0   ;;  %vm1152_vm0 = vmmov (!%p163_p2), 0   ;;  %s1153_s21 = smov (!%p163_p2), 80   ;;  %vm256_vm1 = vcmask (!%p163_p2), 130048   ;;  %v462_v28 = vld [vmem:[%s1332_s1] sm:$0xff] (!%p163_p2) }
   0x6   : > { %166 = sbr.rel (%p163_p2) target bundleno = 1409 (0x581), region = 36  ;;  %983 = vmatprep.subr.bf16.mxu1 (!%p163_p2), %v1151_v0  ;;  %995 = vmatprep.subr.bf16.mxu0 (!%p163_p2), %v1151_v0  ;;  %s1154_s22 = smov (!%p163_p2), 112   ;;  %v463_v32 = vld [vmem:[%s1332_s1 + $0x8] sm:$0xff] (!%p163_p2)  ;;  %v464_v40 = vld [vmem:[%s1332_s1 + $0x10] sm:$0xff] (!%p163_p2)  ;;  %v465_v44 = vld [vmem:[%s1332_s1 + $0x18] sm:$0xff] (!%p163_p2)  ;;  %vm772_vm2 = vcmask (!%p163_p2), 261120  }
   0x7   : > { %985 = vmatprep.mubr.msk.bf16.mxu1 (!%p163_p2), %vm1152_vm0, %v1151_v0  ;;  %997 = vmatprep.mubr.msk.bf16.mxu0 (!%p163_p2), %vm1152_vm0, %v1151_v0  ;;  %s1155_s23 = smov (!%p163_p2), 64   ;;  %s1156_s24 = smov (!%p163_p2), 96   ;;  %v466_v49 = vld [vmem:[%s1332_s1 + $0x20] sm:$0xff] (!%p163_p2)  ;;  %v467_v55 = vld [vmem:[%s1332_s1 + $0x28] sm:$0xff] (!%p163_p2)  ;;  %v468_v61 = vld [vmem:[%s1332_s1 + $0x30] sm:$0xff] (!%p163_p2)  ;;  %vm775_vm3 = vcmask (!%p163_p2), 392192  }
   0x8   : > { %s1159_s27 = smov (!%p163_p2), 48   ;;  %vm818_vm4 = vcmask (!%p163_p2), 523264   ;;  %vm871_vm5 = vcmask (!%p163_p2), 519168  }
   0xd   : > { %s1337_s16 = smov (!%p188_p3, %s929_s16), 1 }
   0xe   : > { %s958_s17 = sshll.u32 %s1337_s16, 4  ;;  %s959_s30 = sshll.u32 %s1337_s16, 3 }
   0xf   : > { %s192_s20 = scalar_lea.vmem %s1331_s0, %s958_s17  ;;  %s197_s7 = scalar_lea.vmem %s1335_s4, %s959_s30 }
  0x10   : > { %v1201_v1 = vld [vmem:[%s192_s20] sm:$0xff]  ;;  %v1203_v2 = vld [vmem:[%s192_s20 + $0x8] sm:$0xff] }
  0x11   : > { %v201_v3 = vunpack.c.l.bf16 %v1201_v1  ;;  %v203_v4 = vunpack.c.l.bf16 %v1203_v2  ;;  %v938_v6 = vcombine.low %v1201_v1, %v1203_v2 }
  0x13   : > { %v1070_v5 = vpack.i.bf16 %v203_v4, %v201_v3 }
  0x15   : > { %1071 = vrot.lane.b32.xlu1 %v1070_v5, %s1153_s21  ;;  %1061 = vrot.lane.b32.xlu0 %v1070_v5, %s1154_s22 }
  0x19   : > { %254 = vrot.lane.b32.xlu1 %v938_v6, %s1155_s23  ;;  %1066 = vrot.lane.b32.xlu0 %v1070_v5, %s1156_s24 }
  0x87   : > { %v1072_v7 = vpop.permute.xlu1 %1071  ;;  %v1062_v8 = vpop.permute.xlu0 %1061 }
  0x88   : > { %v1074_v9 = vunpack.i.h.bf16 %v1072_v7  ;;  %v1073_v10 = vunpack.i.l.bf16 %v1072_v7  ;;  %v1064_v11 = vunpack.i.h.bf16 %v1062_v8  ;;  %v1063_v12 = vunpack.i.l.bf16 %v1062_v8 }
  0x8a   : > { %v226_v13 = vpack.c.bf16 %v1064_v11, %v1063_v12  ;;  %v228_v16 = vpack.c.bf16 %v1074_v9, %v1073_v10 }
  0x8b   : > { %v255_v14 = vpop.permute.xlu1 %254  ;;  %v1067_v15 = vpop.permute.xlu0 %1066 }
  0x8c   : > { %v1069_v17 = vunpack.i.h.bf16 %v1067_v15  ;;  %v1068_v18 = vunpack.i.l.bf16 %v1067_v15  ;;  %305 = vrot.lane.b32.xlu0 %v226_v13, %s1155_s23  ;;  %v261_v19 = vsel %vm256_vm1, %v255_v14, 0 }
  0x8d   : > { %984 = vmatpush3.bf16.xpose.msra.mxu1 %v261_v19 }
  0x8e   : > { %v227_v20 = vpack.c.bf16 %v1069_v17, %v1068_v18  ;;  %989 = vmatprep.subr.bf16.mxu1 %v1151_v0 }
  0x90   : > { %355 = vrot.lane.b32.xlu1 %v227_v20, %s1155_s23  ;;  %405 = vrot.lane.b32.xlu0 %v228_v16, %s1155_s23  ;;  %s1157_s23 = smov 16  }
  0x94   : > { %986 = vmatmul.mubr.msk.bf16.vlgmr.msra.gmra.mrb[0].mxu1 %vm256_vm1, %v938_v6  ;;  %v469_v6 = vld [vmem:[%s1332_s1 + $0x38] sm:$0xff] }
  0x95   : > { %991 = vmatprep.mubr.msk.bf16.mxu1 %vm1152_vm0, %v1151_v0 }
  0xfe   : > { %v306_v21 = vpop.permute.xlu0 %305 }
  0xff   : > { %v311_v22 = vsel %vm256_vm1, %v306_v21, 0 }
 0x100   : > { %990 = vmatpush3.bf16.xpose.msra.mxu1 %v311_v22 }
 0x101   : > { %1001 = vmatprep.subr.bf16.mxu1 %v1151_v0 }
 0x102   : > { %v356_v23 = vpop.permute.xlu1 %355  ;;  %v406_v24 = vpop.permute.xlu0 %405 }
 0x103   : > { %v361_v25 = vsel %vm256_vm1, %v356_v23, 0  ;;  %v411_v26 = vsel %vm256_vm1, %v406_v24, 0  ;;  %v939_v24 = vcombine.high %v1201_v1, %v1203_v2 }
 0x104   : > { %996 = vmatpush3.bf16.xpose.msra.mxu0 %v361_v25 }
 0x105   : > { %1007 = vmatprep.subr.bf16.mxu0 %v1151_v0 }
 0x107   : > { %992 = vmatmul.mubr.msk.bf16.vlgmr.msra.gmra.mrb[4].mxu1 %vm256_vm1, %v226_v13 }
 0x108   : > { %1002 = vmatpush3.bf16.xpose.msra.mxu1 %v411_v26  ;;  %1003 = vmatprep.mubr.msk.bf16.mxu1 %vm1152_vm0, %v1151_v0 }
 0x109   : > { %1013 = vmatprep.subr.bf16.mxu1 %v1151_v0 }
 0x10b   : > { %998 = vmatmul.mubr.msk.bf16.vlgmr.msra.gmra.mrb[0].mxu0 %vm256_vm1, %v227_v20 }
 0x10c   : > { %1009 = vmatprep.mubr.msk.bf16.mxu0 %vm1152_vm0, %v1151_v0  ;;  %1008 = vmatpush3.bf16.msra.mxu0 %v939_v24 }
 0x10d   : > { %1019 = vmatprep.subr.bf16.mxu0 %v1151_v0 }
 0x10f   : > { %1004 = vmatmul.mubr.msk.bf16.vlgmr.msra.gmra.mrb[8].mxu1 %vm256_vm1, %v228_v16 }
 0x110   : > { %1015 = vmatprep.mubr.msk.bf16.mxu1 %vm1152_vm0, %v1151_v0 }
 0x167   : > { %v297_v27 = vpop.f32.mrb[0].mxu1 }
 0x168   : > { %v454_v29 = vmul.f32 0.25, %v297_v27  ;;  %v987_v30 = vpop.f32.mrb[1].mxu1 }
 0x169   : > { %v300_v31 = vpop.f32.mrb[2].mxu1 }
 0x16a   : > { %v455_v33 = vmul.f32 0.25, %v300_v31  ;;  %v470_v34 = vadd.f32 %v462_v28, %v454_v29  ;;  %v988_v35 = vpop.f32.mrb[3].mxu1 }
 0x16c   : > { %v478_v36 = vsel %vm256_vm1, %v470_v34, -inf  ;;  %v471_v37 = vadd.f32 %v463_v32, %v455_v33 }
 0x16d   : > { %479 = vmax.xlane.f32.xlu1 %v478_v36 }
 0x16e   : > { %v481_v38 = vsel %vm256_vm1, %v471_v37, -inf }
 0x16f   : > { %482 = vmax.xlane.f32.xlu0 %v481_v38 }
 0x1da   : > { %v347_v39 = vpop.f32.mrb[4].mxu1 }
 0x1db   : > { %v456_v41 = vmul.f32 0.25, %v347_v39  ;;  %v993_v42 = vpop.f32.mrb[5].mxu1 }
 0x1dc   : > { %v350_v43 = vpop.f32.mrb[6].mxu1 }
 0x1dd   : > { %v457_v45 = vmul.f32 0.25, %v350_v43  ;;  %v994_v46 = vpop.f32.mrb[7].mxu1  ;;  %v472_v47 = vadd.f32 %v464_v40, %v456_v41 }
 0x1de   : > { %v397_v48 = vpop.f32.mrb[0].mxu0 }
 0x1df   : > { %v458_v50 = vmul.f32 0.25, %v397_v48  ;;  %v999_v51 = vpop.f32.mrb[1].mxu0  ;;  %v484_v52 = vsel %vm256_vm1, %v472_v47, -inf  ;;  %v473_v53 = vadd.f32 %v465_v44, %v457_v45 }
 0x1e0   : > { %v400_v54 = vpop.f32.mrb[2].mxu0  ;;  %485 = vmax.xlane.f32.xlu0 %v484_v52  ;;  %v204_v51 = vunpack.c.h.bf16 %v1203_v2 }
 0x1e1   : > { %v459_v56 = vmul.f32 0.25, %v400_v54  ;;  %v1000_v57 = vpop.f32.mrb[3].mxu0  ;;  %v487_v58 = vsel %vm256_vm1, %v473_v53, -inf  ;;  %v474_v59 = vadd.f32 %v466_v49, %v458_v50  ;;  %v202_v50 = vunpack.c.h.bf16 %v1201_v1 }
 0x1e2   : > { %488 = vmax.xlane.f32.xlu1 %v487_v58  ;;  %v447_v60 = vpop.f32.mrb[8].mxu1 }
 0x1e3   : > { %v460_v62 = vmul.f32 0.25, %v447_v60  ;;  %v1005_v63 = vpop.f32.mrb[9].mxu1  ;;  %v490_v3 = vsel %vm256_vm1, %v474_v59, -inf  ;;  %v475_v4 = vadd.f32 %v467_v55, %v459_v56  ;;  %v1080_v52 = vpack.i.bf16 %v204_v51, %v202_v50 }
 0x1e4   : > { %491 = vmax.xlane.f32.xlu0 %v490_v3  ;;  %v450_v5 = vpop.f32.mrb[10].mxu1 }
 0x1e5   : > { %v461_v7 = vmul.f32 0.25, %v450_v5  ;;  %v1006_v8 = vpop.f32.mrb[11].mxu1  ;;  %v493_v9 = vsel %vm256_vm1, %v475_v4, -inf  ;;  %v476_v10 = vadd.f32 %v468_v61, %v460_v62 }
 0x1e6   : > { %494 = vmax.xlane.f32.xlu1 %v493_v9 }
 0x1e7   : > { %v496_v11 = vsel %vm256_vm1, %v476_v10, -inf  ;;  %v1267_v12 = vadd.f32 %v469_v6, %v461_v7 }
 0x1e8   : > { %497 = vmax.xlane.f32.xlu0 %v496_v11 }
 0x1e9   : > { %v499_v13 = vsel %vm256_vm1, %v1267_v12, -inf }
 0x1ea   : > { %500 = vmax.xlane.f32.xlu1 %v499_v13 }
 0x1fa   : > { %v480_v14 = vpop.xlane.xlu1 %479 }
 0x1fb   : > { %v502_v15 = vsub.f32 %v470_v34, %v480_v14 }
 0x1fc   : > { %v483_v16 = vpop.xlane.xlu0 %482 }
 0x1fd   : > { %v510_v17 = vmul.f32 1.442695, %v502_v15  ;;  %v503_v18 = vsub.f32 %v471_v37, %v483_v16 }
 0x1ff   : > { %1111 = vpow2.f32 %v510_v17  ;;  %v512_v19 = vmul.f32 1.442695, %v503_v18 }
 0x201   : > { %1113 = vpow2.f32 %v512_v19 }
 0x209   : > { %v1112_v20 = vpop.eup %1111 }
 0x20a   : > { %v526_v21 = vsel %vm256_vm1, %v1112_v20, 0.0 }
 0x20b   : > { %v1114_v22 = vpop.eup %1113  ;;  %527 = vadd.xlane.f32.xlu0 %v526_v21 }
 0x20c   : > { %v529_v23 = vsel %vm256_vm1, %v1114_v22, 0.0 }
 0x20d   : > { %530 = vadd.xlane.f32.xlu1 %v529_v23 }
 0x26d   : > { %v486_v25 = vpop.xlane.xlu0 %485 }
 0x26e   : > { %v504_v26 = vsub.f32 %v472_v47, %v486_v25 }
 0x26f   : > { %v489_v27 = vpop.xlane.xlu1 %488 }
 0x270   : > { %v514_v28 = vmul.f32 1.442695, %v504_v26  ;;  %v505_v29 = vsub.f32 %v473_v53, %v489_v27 }
 0x271   : > { %v492_v30 = vpop.xlane.xlu0 %491 }
 0x272   : > { %1115 = vpow2.f32 %v514_v28  ;;  %v516_v31 = vmul.f32 1.442695, %v505_v29  ;;  %v506_v32 = vsub.f32 %v474_v59, %v492_v30 }
 0x273   : > { %v495_v33 = vpop.xlane.xlu1 %494 }
 0x274   : > { %1117 = vpow2.f32 %v516_v31  ;;  %v518_v34 = vmul.f32 1.442695, %v506_v32  ;;  %v507_v35 = vsub.f32 %v475_v4, %v495_v33 }
 0x275   : > { %v498_v36 = vpop.xlane.xlu0 %497 }
 0x276   : > { %1119 = vpow2.f32 %v518_v34  ;;  %v520_v37 = vmul.f32 1.442695, %v507_v35  ;;  %v508_v38 = vsub.f32 %v476_v10, %v498_v36 }
 0x277   : > { %v501_v53 = vpop.xlane.xlu1 %500 }
 0x278   : > { %1121 = vpow2.f32 %v520_v37  ;;  %v522_v39 = vmul.f32 1.442695, %v508_v38  ;;  %v509_v57 = vsub.f32 %v1267_v12, %v501_v53 }
 0x27a   : > { %1123 = vpow2.f32 %v522_v39  ;;  %v524_v61 = vmul.f32 1.442695, %v509_v57  ;;  %v1107_v39 = vld [vmem:[%s1333_s2] sm:$0xff]  }
 0x27c   : > { %v1116_v40 = vpop.eup %1115 }
 0x27d   : > { %v532_v41 = vsel %vm256_vm1, %v1116_v40, 0.0 }
 0x27e   : > { %v1118_v42 = vpop.eup %1117  ;;  %533 = vadd.xlane.f32.xlu0 %v532_v41 }
 0x27f   : > { %v535_v43 = vsel %vm256_vm1, %v1118_v42, 0.0 }
 0x280   : > { %v1120_v44 = vpop.eup %1119  ;;  %536 = vadd.xlane.f32.xlu1 %v535_v43 }
 0x281   : > { %v538_v45 = vsel %vm256_vm1, %v1120_v44, 0.0 }
 0x282   : > { %v1122_v46 = vpop.eup %1121  ;;  %539 = vadd.xlane.f32.xlu0 %v538_v45  ;;  %v1109_v45 = vld [vmem:[%s1333_s2 + $0x10] sm:$0xff]  }
 0x283   : > { %v541_v47 = vsel %vm256_vm1, %v1122_v46, 0.0 }
 0x284   : > { %v1280_v48 = vpop.eup %1123  ;;  %542 = vadd.xlane.f32.xlu1 %v541_v47 }
 0x285   : > { %v544_v49 = vsel %vm256_vm1, %v1280_v48, 0.0 }
 0x286   : > { %545 = vadd.xlane.f32.xlu0 %v544_v49 }
 0x295   : > { %1081 = vrot.lane.b32.xlu1 %v1080_v52, %s1156_s24  ;;  %s1158_s24 = smov 32  }
 0x298   : > { %v528_v54 = vpop.xlane.xlu0 %527 }
 0x299   : > { %1125 = vrcp.f32 %v528_v54 }
 0x29a   : > { %v531_v55 = vpop.xlane.xlu1 %530 }
 0x29b   : > { %1127 = vrcp.f32 %v531_v55 }
 0x29c   : > { %1076 = vrot.lane.b32.xlu0 %v1080_v52, %s1154_s22  ;;  %1129 = vpow2.f32 %v524_v61 }
 0x2a3   : > { %v1126_v56 = vpop.eup %1125 }
 0x2a4   : > { %v558_v59 = vmul.f32 %v1126_v56, %v1112_v20 }
 0x2a5   : > { %v1128_v58 = vpop.eup %1127 }
 0x2a6   : > { %v559_v60 = vmul.f32 %v1128_v58, %v1114_v22  ;;  %v1130_v2 = vpop.eup %1129 }
 0x2a7   : > { %v547_v62 = vsel %vm256_vm1, %v1130_v2, 0.0 }
 0x2a8   : > { %v566_v1 = vpack.c.bf16 %v559_v60, %v558_v59 }
 0x2aa   : > { %1010 = vmatmul.mubr.msk.bf16.vlgmr.msra.gmra.mrb[4].mxu0 %vm256_vm1, %v566_v1 }
 0x2ab   : > { %1021 = vmatprep.mubr.msk.bf16.mxu0 %vm1152_vm0, %v1151_v0 }
 0x2b9   : > { %548 = vadd.xlane.f32.xlu1 %v547_v62 }
 0x2ca   : > { %1086 = vrot.lane.b32.xlu1 %v1080_v52, %s1153_s21  ;;  %v1110_v52 = vld [vmem:[%s1333_s2 + $0x18] sm:$0xff]  }
 0x30b   : > { %v534_v63 = vpop.xlane.xlu0 %533 }
 0x30c   : > { %1131 = vrcp.f32 %v534_v63 }
 0x30d   : > { %v537_v3 = vpop.xlane.xlu1 %536 }
 0x30e   : > { %1133 = vrcp.f32 %v537_v3 }
 0x30f   : > { %v540_v4 = vpop.xlane.xlu0 %539 }
 0x310   : > { %1135 = vrcp.f32 %v540_v4 }
 0x311   : > { %v543_v5 = vpop.xlane.xlu1 %542 }
 0x312   : > { %1137 = vrcp.f32 %v543_v5 }
 0x313   : > { %v546_v6 = vpop.xlane.xlu0 %545 }
 0x314   : > { %1139 = vrcp.f32 %v546_v6 }
 0x315   : > { %v1082_v7 = vpop.permute.xlu1 %1081 }
 0x316   : > { %v1084_v8 = vunpack.i.h.bf16 %v1082_v7  ;;  %v1083_v9 = vunpack.i.l.bf16 %v1082_v7  ;;  %v1132_v10 = vpop.eup %1131 }
 0x317   : > { %v1077_v11 = vpop.permute.xlu0 %1076  ;;  %v560_v19 = vmul.f32 %v1132_v10, %v1116_v40  ;;  %v1108_v40 = vld [vmem:[%s1333_s2 + $0x8] sm:$0xff]   ;;  %v948_v10 = vld [vmem:[%s1334_s3] ss:$0 sm:$0xff] }
 0x318   : > { %v1134_v12 = vpop.eup %1133  ;;  %v251_v13 = vpack.c.bf16 %v1084_v8, %v1083_v9  ;;  %v1079_v14 = vunpack.i.h.bf16 %v1077_v11  ;;  %v1078_v15 = vunpack.i.l.bf16 %v1077_v11 }
 0x319   : > { %v561_v16 = vmul.f32 %v1134_v12, %v1118_v42 }
 0x31a   : > { %v1136_v17 = vpop.eup %1135  ;;  %v250_v18 = vpack.c.bf16 %v1079_v14, %v1078_v15  ;;  %1020 = vmatpush3.bf16.msra.mxu0 %v251_v13 }
 0x31b   : > { %1031 = vmatprep.subr.bf16.mxu0 %v1151_v0  ;;  %v562_v21 = vmul.f32 %v1136_v17, %v1120_v44  ;;  %v567_v23 = vpack.c.bf16 %v561_v16, %v560_v19 }
 0x31c   : > { %v1138_v20 = vpop.eup %1137  ;;  %1014 = vmatpush3.bf16.msra.mxu1 %v250_v18 }
 0x31d   : > { %v563_v22 = vmul.f32 %v1138_v20, %v1122_v46  ;;  %1025 = vmatprep.subr.bf16.mxu1 %v1151_v0 }
 0x31e   : > { %v1140_v30 = vpop.eup %1139 }
 0x31f   : > { %1016 = vmatmul.mubr.msk.bf16.vlgmr.msra.gmra.mrb[12].mxu1 %vm256_vm1, %v567_v23  ;;  %v568_v24 = vpack.c.bf16 %v563_v22, %v562_v21  ;;  %v564_v32 = vmul.f32 %v1140_v30, %v1280_v48 }
 0x320   : > { %1027 = vmatprep.mubr.msk.bf16.mxu1 %vm1152_vm0, %v1151_v0 }
 0x321   : > { %1022 = vmatmul.mubr.msk.bf16.vlgmr.msra.gmra.mrb[8].mxu0 %vm256_vm1, %v568_v24 }
 0x322   : > { %1039 = vmatprep.mubr.msk.bf16.mxu0 %vm1152_vm0, %v1151_v0  ;;  %1032 = vmatpush3.bf16.msra.mxu0 %v1107_v39 }
 0x323   : > { %1033 = vmatprep.subr.bf16.mxu0 %v1151_v0 }
 0x326   : > { %1034 = vmatpush3.bf16.msra.mxu0 %v1108_v40 }
 0x327   : > { %1035 = vmatprep.subr.bf16.mxu0 %v1151_v0 }
 0x32a   : > { %1036 = vmatpush3.bf16.msra.mxu0 %v1109_v45 }
 0x32b   : > { %1037 = vmatprep.subr.bf16.mxu0 %v1151_v0 }
 0x32e   : > { %1038 = vmatpush3.bf16.msra.mxu0 %v1110_v52 }
 0x346   : > { %v549_v25 = vpop.xlane.xlu1 %548 }
 0x347   : > { %1141 = vrcp.f32 %v549_v25 }
 0x34a   : > { %v1087_v26 = vpop.permute.xlu1 %1086 }
 0x34b   : > { %v1089_v27 = vunpack.i.h.bf16 %v1087_v26  ;;  %v1088_v28 = vunpack.i.l.bf16 %v1087_v26 }
 0x34d   : > { %v252_v29 = vpack.c.bf16 %v1089_v27, %v1088_v28 }
 0x34f   : > { %1026 = vmatpush3.bf16.msra.mxu1 %v252_v29 }
 0x351   : > { %v1142_v31 = vpop.eup %1141 }
 0x352   : > { %v565_v33 = vmul.f32 %v1142_v31, %v1130_v2 }
 0x354   : > { %v569_v34 = vpack.c.bf16 %v565_v33, %v564_v32 }
 0x356   : > { %1028 = vmatmul.mubr.msk.bf16.vlgmr.msra.gmra.mrb[16].mxu1 %vm256_vm1, %v569_v34 }
 0x37d   : > { %v607_v35 = vpop.f32.mrb[4].mxu0 }
 0x37e   : > { %v1011_v36 = vpop.f32.mrb[5].mxu0 }
 0x37f   : > { %v610_v37 = vpop.f32.mrb[6].mxu0 }
 0x380   : > { %v1012_v38 = vpop.f32.mrb[7].mxu0 }
 0x3f2   : > { %v651_v41 = vpop.f32.mrb[12].mxu1 }
 0x3f3   : > { %v1017_v42 = vpop.f32.mrb[13].mxu1 }
 0x3f4   : > { %v654_v43 = vpop.f32.mrb[14].mxu1  ;;  %v695_v44 = vpop.f32.mrb[8].mxu0 }
 0x3f5   : > { %v1090_v46 = vpack.i.bf16 %v654_v43, %v651_v41  ;;  %v1018_v47 = vpop.f32.mrb[15].mxu1  ;;  %v1023_v48 = vpop.f32.mrb[9].mxu0 }
 0x3f6   : > { %v698_v49 = vpop.f32.mrb[10].mxu0 }
 0x3f7   : > { %v1095_v50 = vpack.i.bf16 %v698_v49, %v695_v44  ;;  %v1024_v51 = vpop.f32.mrb[11].mxu0  ;;  %1091 = vrot.lane.b32.xlu0 %v1090_v46, %s1157_s23 }
 0x3f9   : > { %1096 = vrot.lane.b32.xlu1 %v1095_v50, %s1158_s24 }
 0x429   : > { %v739_v53 = vpop.f32.mrb[16].mxu1 }
 0x42a   : > { %v1029_v54 = vpop.f32.mrb[17].mxu1 }
 0x42b   : > { %v742_v55 = vpop.f32.mrb[18].mxu1 }
 0x42c   : > { %v1100_v56 = vpack.i.bf16 %v742_v55, %v739_v53  ;;  %v1030_v57 = vpop.f32.mrb[19].mxu1 }
 0x42e   : > { %1101 = vrot.lane.b32.xlu0 %v1100_v56, %s1159_s27 }
 0x469   : > { %v1092_v58 = vpop.permute.xlu0 %1091 }
 0x46a   : > { %v1094_v59 = vunpack.i.h.bf16 %v1092_v58  ;;  %v1093_v60 = vunpack.i.l.bf16 %v1092_v58 }
 0x46b   : > { %v1097_v61 = vpop.permute.xlu1 %1096 }
 0x46c   : > { %v1099_v1 = vunpack.i.h.bf16 %v1097_v61  ;;  %v1098_v2 = vunpack.i.l.bf16 %v1097_v61  ;;  %v771_v0 = vsel %vm256_vm1, %v610_v37, %v1094_v59  ;;  %v770_v62 = vsel %vm256_vm1, %v607_v35, %v1093_v60 }
 0x46e   : > { %v773_v5 = vsel %vm772_vm2, %v770_v62, %v1098_v2  ;;  %v774_v6 = vsel %vm772_vm2, %v771_v0, %v1099_v1 }
 0x4a0   : > { %v1102_v63 = vpop.permute.xlu0 %1101 }
 0x4a1   : > { %v1104_v3 = vunpack.i.h.bf16 %v1102_v63  ;;  %v1103_v4 = vunpack.i.l.bf16 %v1102_v63 }
 0x4a3   : > { %v777_v7 = vsel %vm775_vm3, %v774_v6, %v1104_v3  ;;  %v776_v8 = vsel %vm775_vm3, %v773_v5, %v1103_v4 }
 0x4a4   : > { %v786_v9 = vpack.c.bf16 %v777_v7, %v776_v8 }
 0x4a6   : > { %1040 = vmatmul.mubr.msk.bf16.vlgmr.msra.gmra.mrb[12].mxu0 %vm818_vm4, %v786_v9 }
 0x579   : > { %v856_v11 = vpop.f32.mrb[12].mxu0 }
 0x57a   : > { %v857_v12 = vadd.f32 %v948_v10, %v856_v11  ;;  %v1041_v13 = vpop.f32.mrb[13].mxu0 }
 0x57b   : > { %v859_v14 = vpop.f32.mrb[14].mxu0 }
 0x57c   : > { %v960_v15 = vpack.c.bf16 %v857_v12, %v857_v12  ;;  %v860_v16 = vadd.f32 %v948_v10, %v859_v14  ;;  %v1042_v17 = vpop.f32.mrb[15].mxu0 }
 0x57e   : > { %872 = vst.msk [vmem:[%s197_s7] sm:$0xf] %vm871_vm5, %v960_v15  ;;  %v961_v18 = vpack.c.bf16 %v860_v16, %v860_v16 }
 0x580   : > { %873 = vst.msk [vmem:[%s197_s7 + $0x4] sm:$0xf] %vm871_vm5, %v961_v18 }
 0x581 PF: > { %s14_s15 = sadd.s32 1, %s1149_s15  }
 0x582   : > { %p11_p4 = scmp.ge.s32.totalorder %s14_s15, 4  }
 0x584   :  { %13 = sbr.rel (!%p11_p4) target bundleno = 1 (0x1), region = 66 }

// kernel: swin_forward.25
= control target key start
LH: loop header
LB: loop body
LE: loop exit
PB: predicated region body
PF: predicated region fallthrough
CT: control target
= control target key end

     0   :  { %s954_s27 = smov 0   ;;  %s1078_s0 = inlined_call_operand.vmem [shape: bf16[32,64], index: 0, kind: input, shape index: {}]   ;;  %s1079_s1 = inlined_call_operand.vmem [shape: bf16[32,64], index: 1, kind: input, shape index: {}]   ;;  %s1080_s2 = inlined_call_operand.vmem [shape: f32[1,64], index: 2, kind: input, shape index: {}]   ;;  %s1081_s3 = inlined_call_operand.vmem [shape: f32[1,64], index: 3, kind: input, shape index: {}]   ;;  %s1082_s4 = inlined_call_operand.vmem [shape: bf16[64,256], index: 4, kind: input, shape index: {}]   ;;  %s1083_s5 = inlined_call_operand.vmem [shape: f32[1,256], index: 5, kind: input, shape index: {}]   ;;  %s1084_s6 = inlined_call_operand.vmem [shape: bf16[256,64], index: 6, kind: input, shape index: {}]   ;;  %s1085_s7 = inlined_call_operand.vmem [shape: f32[1,64], index: 7, kind: input, shape index: {}]   ;;  %s1086_s8 = inlined_call_operand.vmem [shape: bf16[32,64], index: 8, kind: output, shape index: {}]  }
   0x1 LB: > { %s776_s28 = sadd.s32 4294967295, %s906_s27   ;;  %p780_p0 = scmp.ge.s32.totalorder %s906_s27, 1  ;;  %s906_s27 = sphi %s954_s27, %s18_s27  }
   0x2   : > { %p274_p1 = scmp.lt.s32.totalorder %s906_s27, 3 }
   0x4   : > { %p275_p2 = pnand %p780_p0, %p274_p1 }
   0x5   : > { %s781_s29 = sshll.u32 (!%p275_p2), %s776_s28, 1  ;;  %vm344_vm0 = vcmask (!%p275_p2), 523264   ;;  %v860_v20 = vld [vmem:[%s1082_s4 + $0x4] ss:$8 sps:$4 sm:$0xff] (!%p275_p2)   ;;  %v862_v21 = vld [vmem:[%s1082_s4] ss:$8 sps:$4 sm:$0xff] (!%p275_p2)   ;;  %v399_v62 = vlaneseq (!%p275_p2) }
   0x6   : > { %278 = sbr.rel (%p275_p2) target bundleno = 802 (0x322), region = 52  ;;  %p314_p3 = scmp.lt.s32.totalorder (!%p275_p2), %s781_s29, 3  ;;  %452 = vmatprep.subr.bf16.mxu0 (!%p275_p2), %v860_v20  ;;  %v863_v22 = vld [vmem:[%s1082_s4 + $0x14] ss:$8 sps:$4 sm:$0xff] (!%p275_p2)   ;;  %v865_v23 = vld [vmem:[%s1082_s4 + $0x10] ss:$8 sps:$4 sm:$0xff] (!%p275_p2)  }
   0x7   : > { %453 = vmatpush1.bf16.msra.mxu0 (!%p275_p2), %v862_v21  ;;  %v866_v24 = vld [vmem:[%s1082_s4 + $0x24] ss:$8 sps:$4 sm:$0xff] (!%p275_p2)   ;;  %v868_v25 = vld [vmem:[%s1082_s4 + $0x20] ss:$8 sps:$4 sm:$0xff] (!%p275_p2)   ;;  %v869_v26 = vld [vmem:[%s1082_s4 + $0x34] ss:$8 sps:$4 sm:$0xff] (!%p275_p2)  }
   0x8   : > { %454 = vmatprep.subr.bf16.mxu0 (!%p275_p2), %v863_v22  ;;  %v871_v27 = vld [vmem:[%s1082_s4 + $0x30] ss:$8 sps:$4 sm:$0xff] (!%p275_p2)   ;;  %v908_v28 = vmov (!%p275_p2), 0   ;;  %v872_v29 = vld [vmem:[%s1084_s6 + $0x40] sm:$0xff] (!%p275_p2)   ;;  %v874_v31 = vld [vmem:[%s1084_s6 + $0x48] sm:$0xff] (!%p275_p2)   ;;  %v400_v63 = vshrl.u32 (!%p275_p2), %v399_v62, 7 }
   0x9   : > { %484 = vmatprep.mubr.bf16.mxu0 (!%p275_p2), %v908_v28  ;;  %v873_v30 = vld [vmem:[%s1084_s6] sm:$0xff] (!%p275_p2)   ;;  %829 = vmatprep.subr.bf16.mxu1 (!%p275_p2), %v872_v29  ;;  %v875_v32 = vld [vmem:[%s1084_s6 + $0x8] sm:$0xff] (!%p275_p2)   ;;  %v876_v50 = vld [vmem:[%s1084_s6 + $0x50] sm:$0xff] (!%p275_p2)   ;;  %vm705_vm1 = vcmask (!%p275_p2), 519168  }
   0xa   : > { %830 = vmatpush3.bf16.msra.mxu1 (!%p275_p2), %v873_v30  ;;  %v787_v41 = vld [vmem:[%s1080_s2] ss:$0 sm:$0xff] (!%p275_p2)  ;;  %v877_v51 = vld [vmem:[%s1084_s6 + $0x10] sm:$0xff] (!%p275_p2)   ;;  %v878_v52 = vld [vmem:[%s1084_s6 + $0x58] sm:$0xff] (!%p275_p2)  }
   0xb   : > { %455 = vmatpush1.bf16.msra.mxu0 (!%p275_p2), %v865_v23  ;;  %831 = vmatprep.subr.bf16.mxu1 (!%p275_p2), %v874_v31  ;;  %v788_v45 = vld [vmem:[%s1081_s3] ss:$0 sm:$0xff] (!%p275_p2)  ;;  %v879_v53 = vld [vmem:[%s1084_s6 + $0x18] sm:$0xff] (!%p275_p2)   ;;  %v882_v56 = vld [vmem:[%s1084_s6 + $0x68] sm:$0xff] (!%p275_p2)  }
   0xc   : > { %456 = vmatprep.subr.bf16.mxu0 (!%p275_p2), %v866_v24  ;;  %v880_v54 = vld [vmem:[%s1084_s6 + $0x60] sm:$0xff] (!%p275_p2)   ;;  %v883_v57 = vld [vmem:[%s1084_s6 + $0x28] sm:$0xff] (!%p275_p2)   ;;  %v884_v58 = vld [vmem:[%s1084_s6 + $0x70] sm:$0xff] (!%p275_p2)  }
   0xd   : > { %s1088_s29 = smov (!%p314_p3, %s781_s29), 3  ;;  %v881_v55 = vld [vmem:[%s1084_s6 + $0x20] sm:$0xff]   ;;  %v885_v59 = vld [vmem:[%s1084_s6 + $0x30] sm:$0xff]   ;;  %v886_v60 = vld [vmem:[%s1084_s6 + $0x78] sm:$0xff]  }
   0xe   : > { %s962_s30 = sshll.u32 %s1088_s29, 2  ;;  %832 = vmatpush3.bf16.msra.mxu1 %v875_v32  ;;  %v887_v61 = vld [vmem:[%s1084_s6 + $0x38] sm:$0xff]  }
   0xf   : > { %s317_s11 = scalar_lea.vmem %s1078_s0, %s962_s30  ;;  %s323_s14 = scalar_lea.vmem %s1079_s1, %s962_s30  ;;  %457 = vmatpush1.bf16.msra.mxu0 %v868_v25  ;;  %833 = vmatprep.subr.bf16.mxu1 %v876_v50 }
  0x10   : > { %v822_v0 = vld [vmem:[%s317_s11] sm:$0xff]   ;;  %458 = vmatprep.subr.bf16.mxu0 %v869_v26  ;;  %s329_s13 = scalar_lea.vmem %s1086_s8, %s962_s30 }
  0x11   : > { %v826_v1 = vld [vmem:[%s323_s14] sm:$0xff]   ;;  %v823_v2 = vunpack.c.l.bf16 %v822_v0  ;;  %v824_v4 = vunpack.c.h.bf16 %v822_v0  ;;  %v401_v0 = vsub.s32 0, %v400_v63 }
  0x12   : > { %v827_v3 = vunpack.c.l.bf16 %v826_v1  ;;  %v828_v5 = vunpack.c.h.bf16 %v826_v1  ;;  %834 = vmatpush3.bf16.msra.mxu1 %v877_v51  ;;  %v397_v1 = vld [vmem:[%s1083_s5] sm:$0x3] }
  0x13   : > { %459 = vmatpush1.bf16.msra.mxu0 %v871_v27  ;;  %835 = vmatprep.subr.bf16.mxu1 %v878_v52 }
  0x14   : > { %v972_v6 = vadd.f32 %v827_v3, %v823_v2  ;;  %v974_v7 = vadd.f32 %v828_v5, %v824_v4  ;;  %v405_v2 = vsub.s32 1, %v400_v63  ;;  %v402_v3 = vrot.slane %v397_v1, %v401_v0 }
  0x16   : > { %v345_v8 = vsel %vm344_vm0, %v972_v6, 0.0  ;;  %v348_v9 = vsel %vm344_vm0, %v974_v7, 0.0  ;;  %836 = vmatpush3.bf16.msra.mxu1 %v879_v53  ;;  %v406_v4 = vrot.slane %v397_v1, %v405_v2 }
  0x17   : > { %346 = vadd.xlane.f32.xlu0 %v345_v8  ;;  %837 = vmatprep.subr.bf16.mxu1 %v880_v54 }
  0x1a   : > { %838 = vmatpush3.bf16.msra.mxu1 %v881_v55 }
  0x1b   : > { %349 = vadd.xlane.f32.xlu0 %v348_v9  ;;  %839 = vmatprep.subr.bf16.mxu1 %v882_v56 }
  0x1e   : > { %840 = vmatpush3.bf16.msra.mxu1 %v883_v57 }
  0x1f   : > { %841 = vmatprep.subr.bf16.mxu1 %v884_v58 }
  0x22   : > { %842 = vmatpush3.bf16.msra.mxu1 %v885_v59 }
  0x23   : > { %843 = vmatprep.subr.bf16.mxu1 %v886_v60 }
  0x26   : > { %844 = vmatpush3.bf16.msra.mxu1 %v887_v61 }
  0xa4   : > { %v347_v10 = vpop.xlane.xlu0 %346 }
  0xa5   : > { %v352_v11 = vmul.f32 0.015625, %v347_v10 }
  0xa7   : > { %v354_v12 = vsub.f32 %v972_v6, %v352_v11 }
  0xa8   : > { %v350_v13 = vpop.xlane.xlu0 %349 }
  0xa9   : > { %v353_v14 = vmul.f32 0.015625, %v350_v13  ;;  %v356_v15 = vmul.f32 %v354_v12, %v354_v12 }
  0xab   : > { %v355_v16 = vsub.f32 %v974_v7, %v353_v14  ;;  %v358_v17 = vsel %vm344_vm0, %v356_v15, 0.0 }
  0xac   : > { %359 = vadd.xlane.f32.xlu1 %v358_v17 }
  0xad   : > { %v357_v18 = vmul.f32 %v355_v16, %v355_v16 }
  0xaf   : > { %v361_v19 = vsel %vm344_vm0, %v357_v18, 0.0 }
  0xb0   : > { %362 = vadd.xlane.f32.xlu1 %v361_v19 }
 0x139   : > { %v360_v33 = vpop.xlane.xlu1 %359 }
 0x13a   : > { %v364_v34 = vmul.f32 0.015625, %v360_v33 }
 0x13c   : > { %v366_v35 = vadd.f32 1e-05, %v364_v34 }
 0x13d   : > { %v363_v36 = vpop.xlane.xlu1 %362 }
 0x13e   : > { %888 = vrsqrt.f32 %v366_v35  ;;  %v365_v37 = vmul.f32 0.015625, %v363_v36 }
 0x140   : > { %v367_v38 = vadd.f32 1e-05, %v365_v37 }
 0x142   : > { %890 = vrsqrt.f32 %v367_v38 }
 0x148   : > { %v889_v39 = vpop.eup %888 }
 0x149   : > { %v370_v40 = vmul.f32 %v889_v39, %v354_v12 }
 0x14b   : > { %v378_v44 = vmul.f32 %v787_v41, %v370_v40 }
 0x14c   : > { %v891_v42 = vpop.eup %890 }
 0x14d   : > { %v371_v43 = vmul.f32 %v891_v42, %v355_v16  ;;  %v386_v47 = vadd.f32 %v788_v45, %v378_v44 }
 0x14f   : > { %v379_v46 = vmul.f32 %v787_v41, %v371_v43  ;;  %v814_v41 = vld [vmem:[%s1085_s7] ss:$0 sm:$0xff] }
 0x151   : > { %v387_v48 = vadd.f32 %v788_v45, %v379_v46 }
 0x153   : > { %v396_v49 = vpack.c.bf16 %v387_v48, %v386_v47 }
 0x155   : > { %797 = vmatmul.mubr.msk.bf16.vlgmr.msra.gmra.mrb[0].mxu0 %vm344_vm0, %v396_v49 }
 0x228   : > { %v486_v5 = vpop.f32.mrb[0].mxu0 }
 0x229   : > { %v487_v8 = vadd.f32 %v486_v5, %v402_v3  ;;  %v488_v9 = vpop.f32.mrb[1].mxu0 }
 0x22a   : > { %v489_v10 = vadd.f32 %v488_v9, %v406_v4  ;;  %v490_v11 = vpop.f32.mrb[2].mxu0 }
 0x22b   : > { %v499_v12 = vmul.f32 0.70710677, %v487_v8  ;;  %v491_v13 = vadd.f32 %v490_v11, %v402_v3  ;;  %v492_v14 = vpop.f32.mrb[3].mxu0  ;;  %v495_v25 = vmul.f32 0.5, %v487_v8 }
 0x22c   : > { %v500_v15 = vmul.f32 0.70710677, %v489_v10  ;;  %v493_v16 = vadd.f32 %v492_v14, %v406_v4  ;;  %v496_v28 = vmul.f32 0.5, %v489_v10 }
 0x22d   : > { %892 = verf.f32 %v499_v12  ;;  %v501_v17 = vmul.f32 0.70710677, %v491_v13  ;;  %v497_v26 = vmul.f32 0.5, %v491_v13 }
 0x22e   : > { %894 = verf.f32 %v500_v15  ;;  %v502_v18 = vmul.f32 0.70710677, %v493_v16  ;;  %v498_v29 = vmul.f32 0.5, %v493_v16 }
 0x22f   : > { %896 = verf.f32 %v501_v17 }
 0x230   : > { %898 = verf.f32 %v502_v18 }
 0x237   : > { %v893_v19 = vpop.eup %892 }
 0x238   : > { %v895_v20 = vpop.eup %894  ;;  %v507_v21 = vadd.f32 1.0, %v893_v19 }
 0x239   : > { %v897_v22 = vpop.eup %896  ;;  %v508_v23 = vadd.f32 1.0, %v895_v20 }
 0x23a   : > { %v899_v24 = vpop.eup %898  ;;  %v509_v27 = vadd.f32 1.0, %v897_v22  ;;  %v511_v31 = vmul.f32 %v507_v21, %v495_v25 }
 0x23b   : > { %v510_v30 = vadd.f32 1.0, %v899_v24  ;;  %v512_v33 = vmul.f32 %v508_v23, %v496_v28 }
 0x23c   : > { %v513_v32 = vmul.f32 %v509_v27, %v497_v26 }
 0x23d   : > { %v514_v34 = vmul.f32 %v510_v30, %v498_v29 }
 0x23e   : > { %v547_v35 = vpack.c.bf16 %v513_v32, %v511_v31 }
 0x23f   : > { %v548_v36 = vpack.c.bf16 %v514_v34, %v512_v33 }
 0x241   : > { %677 = vmatprep.mubr.bf16.mxu1 %v548_v36 }
 0x242   : > { %678 = vmatmul.mubr.bf16.vlgmr.msra.gmra.mrb[0].mxu1 %v547_v35 }
 0x315   : > { %v845_v37 = vpop.f32.mrb[0].mxu1 }
 0x316   : > { %v846_v38 = vpop.f32.mrb[1].mxu1 }
 0x317   : > { %v847_v39 = vadd.f32 %v846_v38, %v845_v37  ;;  %v848_v40 = vpop.f32.mrb[2].mxu1 }
 0x318   : > { %v849_v42 = vpop.f32.mrb[3].mxu1 }
 0x319   : > { %v686_v43 = vadd.f32 %v847_v39, %v972_v6  ;;  %v850_v44 = vadd.f32 %v849_v42, %v848_v40 }
 0x31b   : > { %v695_v45 = vadd.f32 %v814_v41, %v686_v43  ;;  %v687_v46 = vadd.f32 %v850_v44, %v974_v7 }
 0x31d   : > { %v819_v47 = vpack.c.bf16 %v695_v45, %v695_v45  ;;  %v696_v48 = vadd.f32 %v814_v41, %v687_v46 }
 0x31f   : > { %706 = vst.msk [vmem:[%s329_s13] sm:$0xf] %vm705_vm1, %v819_v47  ;;  %v820_v49 = vpack.c.bf16 %v696_v48, %v696_v48 }
 0x321   : > { %707 = vst.msk [vmem:[%s329_s13 + $0x4] sm:$0xf] %vm705_vm1, %v820_v49 }
 0x322 PF: > { %s18_s27 = sadd.s32 1, %s906_s27  }
 0x323   : > { %p15_p4 = scmp.ge.s32.totalorder %s18_s27, 4  }
 0x325   :  { %17 = sbr.rel (!%p15_p4) target bundleno = 1 (0x1), region = 85 }

// kernel: swin_forward.29
= control target key start
LH: loop header
LB: loop body
LE: loop exit
PB: predicated region body
PF: predicated region fallthrough
CT: control target
= control target key end

     0   :  { %vm32_vm0 = vcmask 523264   ;;  %s392_s0 = inlined_call_operand.vmem [shape: bf16[2,16,64], index: 0, kind: input, shape index: {}]   ;;  %s393_s1 = inlined_call_operand.vmem [shape: f32[1,64], index: 1, kind: input, shape index: {}]   ;;  %s394_s2 = inlined_call_operand.vmem [shape: f32[1,64], index: 2, kind: input, shape index: {}]   ;;  %s395_s3 = inlined_call_operand.vmem [shape: bf16[64,16], index: 3, kind: input, shape index: {}]   ;;  %s396_s4 = inlined_call_operand.vmem [shape: f32[1,16], index: 4, kind: input, shape index: {}]   ;;  %s397_s5 = inlined_call_operand.hbm [shape: f32[2,16], index: 5, kind: output, shape index: {}]  }
   0x1   :  { %v243_v0 = vld [vmem:[%s392_s0] sm:$0xff]   ;;  %v250_v1 = vld [vmem:[%s392_s0 + $0x8] sm:$0xff]  }
   0x2   :  { %v244_v2 = vunpack.c.l.bf16 %v243_v0  ;;  %v248_v3 = vunpack.c.l.bf16 %v250_v1  ;;  %v245_v4 = vunpack.c.h.bf16 %v243_v0  ;;  %v249_v5 = vunpack.c.h.bf16 %v250_v1 }
   0x4   :  { %v33_v6 = vsel %vm32_vm0, %v244_v2, 0.0  ;;  %v39_v7 = vsel %vm32_vm0, %v248_v3, 0.0 }
   0x5   :  { %34 = vadd.xlane.f32.xlu0 %v33_v6  ;;  %40 = vadd.xlane.f32.xlu1 %v39_v7 }
   0x6   :  { %10 = vsyncpa [#allocation3], 0  ;;  %v36_v8 = vsel %vm32_vm0, %v245_v4, 0.0  ;;  %v42_v9 = vsel %vm32_vm0, %v249_v5, 0.0  ;;  %v271_v30 = vld [vmem:[%s395_s3] sm:$0xff]   ;;  %v307_v31 = vmov 0.0  }
   0x7   :  { %256 = vmatprep.subr.bf16.mxu0 %v307_v31  ;;  %vm308_vm1 = vmmov 0   ;;  %v272_v32 = vld [vmem:[%s395_s3 + $0x8] sm:$0xff]   ;;  %v273_v33 = vld [vmem:[%s395_s3 + $0x10] sm:$0xff]   ;;  %v274_v34 = vld [vmem:[%s395_s3 + $0x18] sm:$0xff]   ;;  %vm148_vm2 = vcmask 1041409   ;;  %s309_s7 = smov [#allocation2]  }
   0x8   :  { %264 = vmatprep.mubr.msk.bf16.mxu0 %vm308_vm1, %v307_v31  ;;  %257 = vmatpush3.bf16.msra.mxu0 %v271_v30  ;;  %v234_v48 = vld [vmem:[%s393_s1] ss:$0 sm:$0xff]  ;;  %s226_s8 = sshll.u32 %s309_s7, 4  ;;  %vm218_vm3 = vcmask 123904   ;;  %s227_s8 = int_to_ptr.vmem [resolvable:$true] %s226_s8 }
   0x9   :  { %37 = vadd.xlane.f32.xlu0 %v36_v8  ;;  %43 = vadd.xlane.f32.xlu1 %v42_v9  ;;  %v235_v52 = vld [vmem:[%s394_s2] ss:$0 sm:$0xff]  ;;  %s283_s9 = scalar_lea.vmem %s227_s8, 32  ;;  %p288_p1 = scmp.lt.s32.totalorder %s227_s8, %s227_s8 }
   0xa   :  { %258 = vmatprep.subr.bf16.mxu0 %v307_v31  ;;  %p284_p0 = scmp.ne.s32.totalorder %s227_s8, %s283_s9  ;;  %p289_p2 = scmp.lt.s32.totalorder %s283_s9, %s283_s9 }
   0xc   :  { %259 = vmatpush3.bf16.msra.mxu0 %v272_v32  ;;  %p290_p3 = por %p289_p2, %p288_p1 }
   0xd   :  { %260 = vmatprep.subr.bf16.mxu0 %v307_v31 }
   0xe   :  { %p291_p4 = pnand %p290_p3, %p284_p0 }
  0x10   :  { %261 = vmatpush3.bf16.msra.mxu0 %v273_v33 }
  0x11   :  { %262 = vmatprep.subr.bf16.mxu0 %v307_v31 }
  0x14   :  { %263 = vmatpush3.bf16.msra.mxu0 %v274_v34 }
  0x92   :  { %v35_v10 = vpop.xlane.xlu0 %34  ;;  %v41_v11 = vpop.xlane.xlu1 %40 }
  0x93   :  { %v46_v12 = vmul.f32 0.015625, %v35_v10  ;;  %v48_v13 = vmul.f32 0.015625, %v41_v11 }
  0x95   :  { %v50_v14 = vsub.f32 %v244_v2, %v46_v12  ;;  %v52_v15 = vsub.f32 %v248_v3, %v48_v13 }
  0x96   :  { %v38_v16 = vpop.xlane.xlu0 %37  ;;  %v44_v17 = vpop.xlane.xlu1 %43 }
  0x97   :  { %v47_v18 = vmul.f32 0.015625, %v38_v16  ;;  %v49_v19 = vmul.f32 0.015625, %v44_v17  ;;  %v54_v20 = vmul.f32 %v50_v14, %v50_v14  ;;  %v56_v21 = vmul.f32 %v52_v15, %v52_v15 }
  0x99   :  { %v51_v22 = vsub.f32 %v245_v4, %v47_v18  ;;  %v53_v23 = vsub.f32 %v249_v5, %v49_v19  ;;  %v58_v24 = vsel %vm32_vm0, %v54_v20, 0.0  ;;  %v64_v25 = vsel %vm32_vm0, %v56_v21, 0.0 }
  0x9a   :  { %59 = vadd.xlane.f32.xlu0 %v58_v24 }
  0x9b   :  { %v55_v26 = vmul.f32 %v51_v22, %v51_v22  ;;  %v57_v27 = vmul.f32 %v53_v23, %v53_v23 }
  0x9d   :  { %v61_v28 = vsel %vm32_vm0, %v55_v26, 0.0  ;;  %v67_v29 = vsel %vm32_vm0, %v57_v27, 0.0  ;;  %v236_v27 = vld [vmem:[%s396_s4] ss:$0 sm:$0xff] }
  0x9e   :  { %65 = vadd.xlane.f32.xlu0 %v64_v25  ;;  %62 = vadd.xlane.f32.xlu1 %v61_v28 }
  0xa2   :  { %68 = vadd.xlane.f32.xlu1 %v67_v29 }
 0x127   :  { %v60_v35 = vpop.xlane.xlu0 %59 }
 0x128   :  { %v70_v36 = vmul.f32 0.015625, %v60_v35 }
 0x12a   :  { %v74_v37 = vadd.f32 1e-05, %v70_v36 }
 0x12b   :  { %v63_v38 = vpop.xlane.xlu1 %62  ;;  %v66_v39 = vpop.xlane.xlu0 %65 }
 0x12c   :  { %275 = vrsqrt.f32 %v74_v37  ;;  %v71_v40 = vmul.f32 0.015625, %v63_v38  ;;  %v72_v41 = vmul.f32 0.015625, %v66_v39 }
 0x12e   :  { %v75_v42 = vadd.f32 1e-05, %v71_v40  ;;  %v76_v43 = vadd.f32 1e-05, %v72_v41 }
 0x12f   :  { %v69_v44 = vpop.xlane.xlu1 %68 }
 0x130   :  { %277 = vrsqrt.f32 %v75_v42  ;;  %v73_v45 = vmul.f32 0.015625, %v69_v44 }
 0x131   :  { %279 = vrsqrt.f32 %v76_v43 }
 0x132   :  { %v77_v46 = vadd.f32 1e-05, %v73_v45 }
 0x134   :  { %281 = vrsqrt.f32 %v77_v46 }
 0x136   :  { %v276_v47 = vpop.eup %275 }
 0x137   :  { %v82_v49 = vmul.f32 %v276_v47, %v50_v14 }
 0x139   :  { %v92_v50 = vmul.f32 %v234_v48, %v82_v49 }
 0x13a   :  { %v278_v51 = vpop.eup %277 }
 0x13b   :  { %v280_v53 = vpop.eup %279  ;;  %v83_v54 = vmul.f32 %v278_v51, %v51_v22  ;;  %v102_v56 = vadd.f32 %v235_v52, %v92_v50 }
 0x13c   :  { %v84_v55 = vmul.f32 %v280_v53, %v52_v15 }
 0x13d   :  { %v93_v57 = vmul.f32 %v234_v48, %v83_v54  ;;  %v106_v62 = vsel %vm32_vm0, %v102_v56, 0.0 }
 0x13e   :  { %v282_v58 = vpop.eup %281  ;;  %v94_v59 = vmul.f32 %v234_v48, %v84_v55 }
 0x13f   :  { %v103_v60 = vadd.f32 %v235_v52, %v93_v57  ;;  %v85_v61 = vmul.f32 %v282_v58, %v53_v23 }
 0x140   :  { %v104_v0 = vadd.f32 %v235_v52, %v94_v59 }
 0x141   :  { %v107_v63 = vsel %vm32_vm0, %v103_v60, 0.0  ;;  %v95_v1 = vmul.f32 %v234_v48, %v85_v61 }
 0x142   :  { %v108_v2 = vadd.f32 %v107_v63, %v106_v62  ;;  %v115_v5 = vsel %vm32_vm0, %v104_v0, 0.0 }
 0x143   :  { %v105_v3 = vadd.f32 %v235_v52, %v95_v1 }
 0x144   :  { %v109_v4 = vrot.slane %v108_v2, 4 }
 0x145   :  { %v116_v6 = vsel %vm32_vm0, %v105_v3, 0.0 }
 0x146   :  { %v117_v7 = vadd.f32 %v116_v6, %v115_v5  ;;  %v110_v8 = vadd.f32 %v109_v4, %v108_v2 }
 0x148   :  { %v111_v9 = vrot.slane %v110_v8, 2  ;;  %v118_v10 = vrot.slane %v117_v7, 4 }
 0x14a   :  { %v112_v11 = vadd.f32 %v111_v9, %v110_v8  ;;  %v119_v12 = vadd.f32 %v118_v10, %v117_v7 }
 0x14c   :  { %v113_v13 = vrot.slane %v112_v11, 1  ;;  %v120_v14 = vrot.slane %v119_v12, 2 }
 0x14e   :  { %v114_v15 = vadd.f32 %v113_v13, %v112_v11  ;;  %v121_v16 = vadd.f32 %v120_v14, %v119_v12 }
 0x150   :  { %v122_v17 = vrot.slane %v121_v16, 1  ;;  %v125_v18 = vmul.f32 0.0625, %v114_v15 }
 0x152   :  { %v123_v19 = vadd.f32 %v122_v17, %v121_v16  ;;  %v135_v21 = vpack.c.bf16 %v125_v18, %v125_v18 }
 0x154   :  { %v126_v20 = vmul.f32 0.0625, %v123_v19  ;;  %v146_v23 = vunpack.c.l.b16 %v135_v21 }
 0x156   :  { %v136_v22 = vpack.c.bf16 %v126_v20, %v126_v20 }
 0x158   :  { %v147_v24 = vunpack.c.l.b16 %v136_v22 }
 0x15a   :  { %v149_v25 = vsel %vm148_vm2, %v147_v24, %v146_v23 }
 0x15b   :  { %v150_v26 = vpack.c.b16 %v149_v25, %v149_v25 }
 0x15d   :  { %265 = vmatmul.mubr.msk.bf16.vlgmr.msra.gmra.mrb[0].mxu0 %vm32_vm0, %v150_v26 }
 0x230   :  { %v212_v28 = vpop.f32.mrb[0].mxu0 }
 0x231   :  { %v213_v29 = vadd.f32 %v236_v27, %v212_v28  ;;  %v266_v30 = vpop.f32.mrb[1].mxu0 }
 0x232   :  { %v215_v31 = vpop.f32.mrb[2].mxu0 }
 0x233   :  { %v267_v32 = vpop.f32.mrb[3].mxu0  ;;  %219 = vst.msk [vmem:[#allocation2] sm:$0x3] %vm218_vm3, %v213_v29 }
 0x234   :  { %294 = shalt.err (!%p291_p4)
}
 0x235   :  { %s295_s4 = scalar_lea.hbm %s397_s5, 32 }
 0x236   :  { %p296_p5 = scmp.ne.s32.totalorder %s397_s5, %s295_s4  ;;  %p299_p6 = scmp.lt.u32.totalorder %s295_s4, %s397_s5 }
 0x238   :  { %p301_p7 = pnand %p299_p6, %p296_p5 }
 0x23a   :  { %304 = shalt.err (!%p301_p7)
}
 0x23b   :  { %229 = dma.vmem_to_hbm [thread:$0]  %s227_s8, 32, %s397_s5, [#allocation3]  }
 0x23c   :  { %305 = dma.done.wait [#allocation3], 32  }
 0x23d   :  { %306 = vsyncadd [#allocation3], 4294967264 }
 0x23e   :  { %233 = vsyncpa [#allocation3], 1 }

</bundles_post_ra>
